<compile_context>
chip_gen: v7x
topology: tpu7x:2x2x1
jax: 0.10.0
libtpu: 0.0.40
codegen_flags: <defaults>
</compile_context>

<pallas_src>
import functools

import jax
import jax.numpy as jnp
from jax import lax
from jax.experimental import pallas as pl
from jax.experimental.pallas import tpu as pltpu

_VMEM_LIMIT = 32 * 1024 * 1024  # modest explicit scoped-VMEM budget (safe on v5e/v6e/v7x)


# ----------------------------------------------------------------------------
# small helpers
# ----------------------------------------------------------------------------
def _row_tile(m, target=256):
    """Largest row tile <= target that is a multiple of 8 and divides m.
    Prefers >= 2 tiles so the 'parallel' grid can shard across v7x's 2 TCs."""
    divs = [t for t in range(8, min(m, target) + 1, 8) if m % t == 0]
    if not divs:
        return m
    sub = [t for t in divs if t < m]
    return max(sub) if sub else max(divs)


def _compiler_params():
    return pltpu.CompilerParams(
        dimension_semantics=("parallel",), vmem_limit_bytes=_VMEM_LIMIT
    )


# ----------------------------------------------------------------------------
# Kernel 1: series decomposition, all unique moving-average kernels in one call
#           (edge replication done in-kernel; no padded HBM copy, src read once)
# ----------------------------------------------------------------------------
def pallas_multi_decomp(x, dks):
    B, L, D = x.shape
    for k in dks:
        assert k % 2 == 1, "MICN decomp kernels must be odd"

    def kernel(x_ref, *o_refs):
        v = x_ref[0].astype(jnp.float32)  # (L, D)
        for o_ref, k in zip(o_refs, dks):
            pad = (k - 1) // 2
            acc = jnp.zeros((L, D), jnp.float32)
            for j in range(k):                       # small static unroll
                sh = j - pad
                if sh < 0:                           # replicate first row
                    part = jnp.concatenate(
                        [jnp.broadcast_to(v[0:1, :], (-sh, D)), v[: L + sh, :]], axis=0)
                elif sh > 0:                         # replicate last row
                    part = jnp.concatenate(
                        [v[sh:, :], jnp.broadcast_to(v[L - 1:L, :], (sh, D))], axis=0)
                else:
                    part = v
                acc = acc + part
            o_ref[0] = (v - acc * (1.0 / k)).astype(o_ref.dtype)

    outs = pl.pallas_call(
        kernel,
        out_shape=tuple(jax.ShapeDtypeStruct((B, L, D), x.dtype) for _ in dks),
        grid=(B,),
        in_specs=[pl.BlockSpec((1, L, D), lambda b: (b, 0, 0))],
        out_specs=tuple(pl.BlockSpec((1, L, D), lambda b: (b, 0, 0)) for _ in dks),
        compiler_params=_compiler_params(),
    )(x)
    return {k: o for k, o in zip(dks, outs)}


# ----------------------------------------------------------------------------
# Kernel 2: fused conv_trans_conv for one scale
#   down-conv(stride=ck,pad=ck//2)+tanh -> iso-conv(zero-front-pad)+tanh
#   -> LN(residual) -> ConvTranspose(kernel=stride=ck)+tanh -> LN(residual)
#   Output stays in the lane-dense "folded" (L1, ck*D) layout.
# ----------------------------------------------------------------------------
def pallas_scale_block(seasonal, sp, ck, ik):
    B, L, D = seasonal.shape
    p = ck // 2
    L1 = (L + 2 * p - ck) // ck + 1
    L2 = 2 * L1 - ik
    assert L2 == L1, "MICN requires isometric_kernel == down-sampled length"
    Lc = L1 * ck

    # stride == kernel  =>  the "unfold" is just zero-pad + row-major reshape (no gather)
    unf = jnp.pad(seasonal, ((0, 0), (p, max(0, Lc - L - p)), (0, 0)))[:, :Lc, :]
    unf = unf.reshape(B, L1, ck * D)
    # seasonal in the same folded layout, offset 0, for the final residual
    res = jnp.pad(seasonal, ((0, 0), (0, Lc - L), (0, 0))).reshape(B, L1, ck * D)

    wd, wi, wu = sp["down_w"], sp["iso_w"], sp["up_w"]
    vec, upb = sp["vec"], sp["up_b"]

    def kernel(unf_ref, res_ref, wd_ref, wi_ref, wu_ref, vec_ref, upb_ref, o_ref):
        f32 = jnp.float32
        g = vec_ref[2:3, :]
        bt = vec_ref[3:4, :]

        def ln(v):
            m = jnp.mean(v, axis=-1, keepdims=True)
            c = v - m
            var = jnp.mean(c * c, axis=-1, keepdims=True)
            return c * lax.rsqrt(var + 1e-5) * g + bt

        # down-sampling conv + tanh  (single lane-dense matmul)
        x1 = jnp.tanh(
            jnp.dot(unf_ref[0].astype(f32), wd_ref[...],
                    preferred_element_type=f32) + vec_ref[0:1, :])          # (L1, D)

        # isometric conv on zero-front-padded sequence + tanh (static tap loop;
        # no (L2, ik*D) im2col is ever materialised -> VMEM-safe on v7x)
        if L1 > 1:
            xin = jnp.concatenate([jnp.zeros((L1 - 1, D), f32), x1], axis=0)
        else:
            xin = x1
        acc = jnp.zeros((L2, D), f32) + vec_ref[1:2, :]
        for tap in range(ik):
            acc = acc + jnp.dot(xin[tap:tap + L2, :],
                                wi_ref[tap * D:(tap + 1) * D, :],
                                preferred_element_type=f32)
        xn = ln(jnp.tanh(acc) + x1)                                          # (L1, D)

        # up-sampling transposed conv (kernel == stride) + tanh, folded layout
        up = jnp.tanh(
            jnp.dot(xn, wu_ref[...], preferred_element_type=f32) + upb_ref[...])

        # residual with the block input + shared LayerNorm, per D-wide lane chunk
        v = up + res_ref[0].astype(f32)
        chunks = [ln(v[:, t * D:(t + 1) * D]) for t in range(ck)]
        o_ref[0] = jnp.concatenate(chunks, axis=1).astype(o_ref.dtype)

    return pl.pallas_call(
        kernel,
        out_shape=jax.ShapeDtypeStruct((B, L1, ck * D), seasonal.dtype),
        grid=(B,),
        in_specs=[
            pl.BlockSpec((1, L1, ck * D), lambda b: (b, 0, 0)),
            pl.BlockSpec((1, L1, ck * D), lambda b: (b, 0, 0)),
            pl.BlockSpec(wd.shape, lambda b: (0, 0)),
            pl.BlockSpec(wi.shape, lambda b: (0, 0)),
            pl.BlockSpec(wu.shape, lambda b: (0, 0)),
            pl.BlockSpec(vec.shape, lambda b: (0, 0)),
            pl.BlockSpec(upb.shape, lambda b: (0, 0)),
        ],
        out_specs=pl.BlockSpec((1, L1, ck * D), lambda b: (b, 0, 0)),
        compiler_params=_compiler_params(),
    )(unf, res, wd, wi, wu, vec, upb)


# ----------------------------------------------------------------------------
# Kernel 3: fused merge Conv2d + norm1 + FFN + norm2 (+ final Linear projection)
#           row-tiled over M = B*L, grid marked "parallel" (megacore on v7x)
# ----------------------------------------------------------------------------
def pallas_merge_ffn(stacked, lp, proj=None):
    M, SD = stacked.shape
    wm, w1, w2 = lp["merge_w"], lp["ffn_w1"], lp["ffn_w2"]
    vecd, b1 = lp["vecd"], lp["ffn_b1"]
    D = wm.shape[1]
    N = D if proj is None else proj[0].shape[1]
    tm = _row_tile(M)

    def kernel(x_ref, wm_ref, w1_ref, w2_ref, vd_ref, b1_ref, *rest):
        if proj is None:
            (o_ref,) = rest
        else:
            pw_ref, pb_ref, o_ref = rest
        f32 = jnp.float32

        def ln(v, gi, bi):
            m = jnp.mean(v, axis=-1, keepdims=True)
            c = v - m
            var = jnp.mean(c * c, axis=-1, keepdims=True)
            return c * lax.rsqrt(var + 1e-5) * vd_ref[gi:gi + 1, :] + vd_ref[bi:bi + 1, :]

        mg = jnp.dot(x_ref[...].astype(f32), wm_ref[...],
                     preferred_element_type=f32) + vd_ref[0:1, :]
        y = ln(mg, 1, 2)
        y = jnp.dot(y, w1_ref[...], preferred_element_type=f32) + b1_ref[...]
        y = jnp.dot(y, w2_ref[...], preferred_element_type=f32) + vd_ref[5:6, :]
        out = ln(mg + y, 3, 4)
        if proj is not None:                  # final layer: fold in the projection
            out = jnp.dot(out, pw_ref[...], preferred_element_type=f32) + pb_ref[...]
        o_ref[...] = out.astype(o_ref.dtype)

    ins = [stacked, wm, w1, w2, vecd, b1]
    in_specs = [
        pl.BlockSpec((tm, SD), lambda i: (i, 0)),
        pl.BlockSpec(wm.shape, lambda i: (0, 0)),
        pl.BlockSpec(w1.shape, lambda i: (0, 0)),
        pl.BlockSpec(w2.shape, lambda i: (0, 0)),
        pl.BlockSpec(vecd.shape, lambda i: (0, 0)),
        pl.BlockSpec(b1.shape, lambda i: (0, 0)),
    ]
    if proj is not None:
        pw, pb = proj
        ins += [pw, pb]
        in_specs += [pl.BlockSpec(pw.shape, lambda i: (0, 0)),
                     pl.BlockSpec(pb.shape, lambda i: (0, 0))]

    return pl.pallas_call(
        kernel,
        out_shape=jax.ShapeDtypeStruct((M, N), stacked.dtype),
        grid=(M // tm,),
        in_specs=in_specs,
        out_specs=pl.BlockSpec((tm, N), lambda i: (i, 0)),
        compiler_params=_compiler_params(),
    )(*ins)


# ----------------------------------------------------------------------------
# Parameters: raw PyTorch-shaped tensors + packing into matmul layouts
# ----------------------------------------------------------------------------
def init_raw_params(key, d_model, n_layers, c_out, conv_kernel, isometric_kernel):
    D = d_model
    S = len(conv_kernel)
    ks = iter(jax.random.split(key, 4096))

    def nrm(shape, s=0.05):
        return s * jax.random.normal(next(ks), shape, dtype=jnp.float32)

    layers = []
    for _ in range(n_layers):
        lp = {"scales": []}
        for ck, ik in zip(conv_kernel, isometric_kernel):
            lp["scales"].append({
                "down_w": nrm((D, D, ck)), "down_b": nrm((D,)),     # Conv1d (Cout,Cin,K)
                "iso_w": nrm((D, D, ik)), "iso_b": nrm((D,)),       # Conv1d (Cout,Cin,K)
                "up_w": nrm((D, D, ck)), "up_b": nrm((D,)),         # ConvTranspose1d (Cin,Cout,K)
            })
        lp["merge_w"] = nrm((D, D, S, 1)); lp["merge_b"] = nrm((D,))   # Conv2d (Cout,Cin,S,1)
        lp["ffn_w1"] = nrm((4 * D, D, 1)); lp["ffn_b1"] = nrm((4 * D,))
        lp["ffn_w2"] = nrm((D, 4 * D, 1)); lp["ffn_b2"] = nrm((D,))
        for nm in ("norm", "norm1", "norm2"):
            lp[nm + "_g"] = 1.0 + nrm((D,), 0.1)
            lp[nm + "_b"] = nrm((D,), 0.1)
        layers.append(lp)
    return {"layers": layers, "proj_w": nrm((c_out, D)), "proj_b": nrm((c_out,))}


def pack_params(raw, conv_kernel, isometric_kernel):
    S = len(conv_kernel)
    layers = []
    for lp in raw["layers"]:
        D = lp["merge_b"].shape[0]
        pk = {"scales": []}
        for sp, ck, ik in zip(lp["scales"], conv_kernel, isometric_kernel):
            pk["scales"].append({
                # rows ordered (tap, ci) to match the pad+reshape unfold layout
                "down_w": jnp.transpose(sp["down_w"], (2, 1, 0)).reshape(ck * D, D),
                "iso_w": jnp.transpose(sp["iso_w"], (2, 1, 0)).reshape(ik * D, D),
                # columns ordered (tap, co) -> folded (L1, ck*D) up-conv output
                "up_w": jnp.transpose(sp["up_w"], (0, 2, 1)).reshape(D, ck * D),
                "up_b": jnp.tile(sp["up_b"], ck).reshape(1, ck * D),
                "vec": jnp.stack([sp["down_b"], sp["iso_b"],
                                  lp["norm_g"], lp["norm_b"]], axis=0),
            })
        pk["merge_w"] = jnp.transpose(lp["merge_w"][:, :, :, 0], (2, 1, 0)).reshape(S * D, D)
        pk["ffn_w1"] = jnp.transpose(lp["ffn_w1"][:, :, 0])
        pk["ffn_w2"] = jnp.transpose(lp["ffn_w2"][:, :, 0])
        pk["ffn_b1"] = lp["ffn_b1"].reshape(1, -1)
        pk["vecd"] = jnp.stack([lp["merge_b"], lp["norm1_g"], lp["norm1_b"],
                                lp["norm2_g"], lp["norm2_b"], lp["ffn_b2"]], axis=0)
        layers.append(pk)
    return {"layers": layers,
            "proj": (jnp.transpose(raw["proj_w"]), raw["proj_b"].reshape(1, -1))}


# ----------------------------------------------------------------------------
# Forward pass (SeasonalPrediction: n_layers MIC blocks + Linear projection)
# ----------------------------------------------------------------------------
def backbone_micn_forward(packed, x, conv_kernel, isometric_kernel, decomp_kernel):
    B, L, D = x.shape
    S = len(conv_kernel)
    n_layers = len(packed["layers"])
    uniq_dk = list(dict.fromkeys(decomp_kernel))

    for li, lp in enumerate(packed["layers"]):
        seas = pallas_multi_decomp(x, uniq_dk)             # hoisted + de-duplicated
        multi = []
        for i, (ck, ik, dk) in enumerate(zip(conv_kernel, isometric_kernel, decomp_kernel)):
            folded = pallas_scale_block(seas[dk], lp["scales"][i], ck, ik)   # (B,L1,ck*D)
            L1 = folded.shape[1]
            # un-fold + truncate: free row-major reshape + slice
            multi.append(folded.reshape(B, L1, ck, D).reshape(B, L1 * ck, D)[:, :L, :])
        stacked = jnp.stack(multi, axis=2).reshape(B * L, S * D)
        is_last = li == n_layers - 1
        out = pallas_merge_ffn(stacked, lp, proj=packed["proj"] if is_last else None)
        if is_last:
            return out.reshape(B, L, -1)
        x = out.reshape(B, L, D)


# ----------------------------------------------------------------------------
# Pure-JAX reference (PyTorch-shaped weights, straightforward ops) for checking
# ----------------------------------------------------------------------------
def _ref_ln(v, g, b, eps=1e-5):
    m = v.mean(-1, keepdims=True)
    c = v - m
    var = (c * c).mean(-1, keepdims=True)
    return c * lax.rsqrt(var + eps) * g + b


def _ref_decomp(x, k):
    pad = (k - 1) // 2
    xp = jnp.concatenate(
        [jnp.repeat(x[:, :1], pad, 1), x, jnp.repeat(x[:, -1:], pad, 1)], axis=1)
    ma = jnp.mean(jnp.stack([xp[:, j:j + x.shape[1]] for j in range(k)], 0), 0)
    return x - ma


def _ref_conv1d(x, w, b, stride, pad):
    B, L, C = x.shape
    K = w.shape[2]
    xp = jnp.pad(x, ((0, 0), (pad, pad), (0, 0)))
    Lo = (L + 2 * pad - K) // stride + 1
    win = jnp.stack([xp[:, t * stride:t * stride + K, :] for t in range(Lo)], axis=1)
    return jnp.einsum("blkc,ock->blo", win, w) + b


def _ref_conv_trans1d(x, w, b, stride):
    y = jnp.einsum("blc,cok->blko", x, w)
    B, L, K, Co = y.shape
    return y.reshape(B, L * K, Co) + b


def ref_backbone(raw, x, conv_kernel, isometric_kernel, decomp_kernel):
    for lp in raw["layers"]:
        B, L, D = x.shape
        multi = []
        for sp, ck, ik, dk in zip(lp["scales"], conv_kernel, isometric_kernel, decomp_kernel):
            seas = _ref_decomp(x, dk)
            x1 = jnp.tanh(_ref_conv1d(seas, sp["down_w"], sp["down_b"], stride=ck, pad=ck // 2))
            L1 = x1.shape[1]
            xz = jnp.concatenate([jnp.zeros((B, L1 - 1, D), x.dtype), x1], axis=1)
            xi = jnp.tanh(_ref_conv1d(xz, sp["iso_w"], sp["iso_b"], stride=1, pad=0))
            xn = _ref_ln(xi + x1, lp["norm_g"], lp["norm_b"])
            up = jnp.tanh(_ref_conv_trans1d(xn, sp["up_w"], sp["up_b"], stride=ck))[:, :L, :]
            multi.append(_ref_ln(up + seas, lp["norm_g"], lp["norm_b"]))
        stk = jnp.stack(multi, axis=1)                                    # (B, S, L, D)
        mg = jnp.einsum("bsld,ods->blo", stk, lp["merge_w"][:, :, :, 0]) + lp["merge_b"]
        y = _ref_ln(mg, lp["norm1_g"], lp["norm1_b"])
        y = jnp.einsum("bld,fd->blf", y, lp["ffn_w1"][:, :, 0]) + lp["ffn_b1"]
        y = jnp.einsum("blf,df->bld", y, lp["ffn_w2"][:, :, 0]) + lp["ffn_b2"]
        x = _ref_ln(mg + y, lp["norm2_g"], lp["norm2_b"])
    return jnp.einsum("bld,od->blo", x, raw["proj_w"]) + raw["proj_b"]


# ----------------------------------------------------------------------------
if __name__ == "__main__":
    # Small, internally consistent MICN config (decomp_kernel / isometric_kernel
    # derived from conv_kernel and the sequence length exactly like pypots does).
    B = 2
    n_steps, n_pred_steps = 8, 8
    n_features, n_pred_features = 4, 4
    d_model = 32
    n_layers = 2
    conv_kernel = [2, 4]

    decomp_kernel, isometric_kernel = [], []
    for ii in conv_kernel:
        if ii % 2 == 0:
            decomp_kernel.append(ii + 1)
            isometric_kernel.append((n_steps + n_pred_steps + ii) // ii)
        else:
            decomp_kernel.append(ii)
            isometric_kernel.append((n_steps + n_pred_steps + ii - 1) // ii)

    L = n_steps + n_pred_steps  # sequence length fed to the backbone

    key = jax.random.PRNGKey(0)
    kx, kp = jax.random.split(key)
    x = jax.random.normal(kx, (B, L, d_model), dtype=jnp.float32)
    raw = init_raw_params(kp, d_model, n_layers, n_pred_features,
                          conv_kernel, isometric_kernel)
    packed = pack_params(raw, conv_kernel, isometric_kernel)

    fwd = jax.jit(functools.partial(
        backbone_micn_forward,
        conv_kernel=conv_kernel,
        isometric_kernel=isometric_kernel,
        decomp_kernel=decomp_kernel))

    out = jax.block_until_ready(fwd(packed, x))
    assert out.shape == (B, L, n_pred_features), out.shape
    assert bool(jnp.all(jnp.isfinite(out)))

    # correctness check against a straightforward pure-JAX reference
    ref = ref_backbone(raw, x, conv_kernel, isometric_kernel, decomp_kernel)
    assert jnp.allclose(out, ref, atol=5e-2, rtol=5e-2), float(jnp.max(jnp.abs(out - ref)))

    print("KERNEL_OK")
</pallas_src>

<mosaic_0001>
module attributes {stable_mosaic.version = 11 : i64} {
  func.func @kernel(%arg0: i32, %arg1: memref<1x16x32xf32, #tpu.memory_space<vmem>>, %arg2: memref<1x16x32xf32, #tpu.memory_space<vmem>>, %arg3: memref<1x16x32xf32, #tpu.memory_space<vmem>>) attributes {dimension_semantics = [#tpu.dimension_semantics<parallel>], iteration_bounds = array<i64: 2>, scalar_prefetch = 0 : i64, scratch_operands = 0 : i64, tpu.core_type = #tpu.core_type<tc>, window_params = [{transform_indices = @transform_0, window_bounds = array<i64: 1, 16, 32>}, {transform_indices = @transform_1, window_bounds = array<i64: 1, 16, 32>}, {transform_indices = @transform_2, window_bounds = array<i64: 1, 16, 32>}]} {
    %c0 = arith.constant 0 : index
    %c0_0 = arith.constant 0 : index
    %c0_1 = arith.constant 0 : index
    %0 = vector.load %arg1[%c0, %c0_0, %c0_1] : memref<1x16x32xf32, #tpu.memory_space<vmem>>, vector<1x16x32xf32>
    %1 = vector.shape_cast %0 : vector<1x16x32xf32> to vector<16x32xf32>
    %cst = arith.constant 0.000000e+00 : f32
    %2 = vector.broadcast %cst : f32 to vector<16x32xf32>
    %3 = vector.extract_strided_slice %1 {offsets = [0, 0], sizes = [1, 32], strides = [1, 1]} : vector<16x32xf32> to vector<1x32xf32>
    %4 = vector.extract_strided_slice %1 {offsets = [0, 0], sizes = [15, 32], strides = [1, 1]} : vector<16x32xf32> to vector<15x32xf32>
    %5 = tpu.concatenate %3, %4 in 0 : vector<1x32xf32>, vector<15x32xf32> -> vector<16x32xf32>
    %6 = arith.addf %2, %5 : vector<16x32xf32>
    %7 = arith.addf %6, %1 : vector<16x32xf32>
    %8 = vector.extract_strided_slice %1 {offsets = [1, 0], sizes = [15, 32], strides = [1, 1]} : vector<16x32xf32> to vector<15x32xf32>
    %9 = vector.extract_strided_slice %1 {offsets = [15, 0], sizes = [1, 32], strides = [1, 1]} : vector<16x32xf32> to vector<1x32xf32>
    %10 = tpu.concatenate %8, %9 in 0 : vector<15x32xf32>, vector<1x32xf32> -> vector<16x32xf32>
    %11 = arith.addf %7, %10 : vector<16x32xf32>
    %cst_2 = arith.constant 0.333333343 : f32
    %12 = vector.broadcast %cst_2 : f32 to vector<16x32xf32>
    %13 = arith.mulf %11, %12 : vector<16x32xf32>
    %14 = arith.subf %1, %13 : vector<16x32xf32>
    %c0_3 = arith.constant 0 : index
    %c0_4 = arith.constant 0 : index
    %c0_5 = arith.constant 0 : index
    %15 = vector.load %arg2[%c0_3, %c0_4, %c0_5] : memref<1x16x32xf32, #tpu.memory_space<vmem>>, vector<1x16x32xf32>
    %16 = vector.shape_cast %15 : vector<1x16x32xf32> to vector<16x32xf32>
    %17 = vector.shape_cast %14 : vector<16x32xf32> to vector<1x16x32xf32>
    tpu.vector_store %arg2[%c0_3, %c0_4, %c0_5], %17 {strides = array<i32>} : memref<1x16x32xf32, #tpu.memory_space<vmem>>, vector<1x16x32xf32>,
    %cst_6 = arith.constant 0.000000e+00 : f32
    %18 = vector.broadcast %cst_6 : f32 to vector<16x32xf32>
    %19 = vector.extract_strided_slice %1 {offsets = [0, 0], sizes = [1, 32], strides = [1, 1]} : vector<16x32xf32> to vector<1x32xf32>
    %20 = vector.shape_cast %19 : vector<1x32xf32> to vector<1x32xf32>
    %21 = vector.broadcast %20 : vector<1x32xf32> to vector<2x32xf32>
    %22 = vector.extract_strided_slice %1 {offsets = [0, 0], sizes = [14, 32], strides = [1, 1]} : vector<16x32xf32> to vector<14x32xf32>
    %23 = tpu.concatenate %21, %22 in 0 : vector<2x32xf32>, vector<14x32xf32> -> vector<16x32xf32>
    %24 = arith.addf %18, %23 : vector<16x32xf32>
    %25 = vector.extract_strided_slice %1 {offsets = [0, 0], sizes = [1, 32], strides = [1, 1]} : vector<16x32xf32> to vector<1x32xf32>
    %26 = vector.extract_strided_slice %1 {offsets = [0, 0], sizes = [15, 32], strides = [1, 1]} : vector<16x32xf32> to vector<15x32xf32>
    %27 = tpu.concatenate %25, %26 in 0 : vector<1x32xf32>, vector<15x32xf32> -> vector<16x32xf32>
    %28 = arith.addf %24, %27 : vector<16x32xf32>
    %29 = arith.addf %28, %1 : vector<16x32xf32>
    %30 = vector.extract_strided_slice %1 {offsets = [1, 0], sizes = [15, 32], strides = [1, 1]} : vector<16x32xf32> to vector<15x32xf32>
    %31 = vector.extract_strided_slice %1 {offsets = [15, 0], sizes = [1, 32], strides = [1, 1]} : vector<16x32xf32> to vector<1x32xf32>
    %32 = tpu.concatenate %30, %31 in 0 : vector<15x32xf32>, vector<1x32xf32> -> vector<16x32xf32>
    %33 = arith.addf %29, %32 : vector<16x32xf32>
    %34 = vector.extract_strided_slice %1 {offsets = [2, 0], sizes = [14, 32], strides = [1, 1]} : vector<16x32xf32> to vector<14x32xf32>
    %35 = vector.extract_strided_slice %1 {offsets = [15, 0], sizes = [1, 32], strides = [1, 1]} : vector<16x32xf32> to vector<1x32xf32>
    %36 = vector.shape_cast %35 : vector<1x32xf32> to vector<1x32xf32>
    %37 = vector.broadcast %36 : vector<1x32xf32> to vector<2x32xf32>
    %38 = tpu.concatenate %34, %37 in 0 : vector<14x32xf32>, vector<2x32xf32> -> vector<16x32xf32>
    %39 = arith.addf %33, %38 : vector<16x32xf32>
    %cst_7 = arith.constant 2.000000e-01 : f32
    %40 = vector.broadcast %cst_7 : f32 to vector<16x32xf32>
    %41 = arith.mulf %39, %40 : vector<16x32xf32>
    %42 = arith.subf %1, %41 : vector<16x32xf32>
    %c0_8 = arith.constant 0 : index
    %c0_9 = arith.constant 0 : index
    %c0_10 = arith.constant 0 : index
    %43 = vector.load %arg3[%c0_8, %c0_9, %c0_10] : memref<1x16x32xf32, #tpu.memory_space<vmem>>, vector<1x16x32xf32>
    %44 = vector.shape_cast %43 : vector<1x16x32xf32> to vector<16x32xf32>
    %45 = vector.shape_cast %42 : vector<16x32xf32> to vector<1x16x32xf32>
    tpu.vector_store %arg3[%c0_8, %c0_9, %c0_10], %45 {strides = array<i32>} : memref<1x16x32xf32, #tpu.memory_space<vmem>>, vector<1x16x32xf32>,
    return
  }
  func.func @transform_0(%arg0: i32) -> (i32, i32, i32) {
    %c0_i32 = arith.constant 0 : i32
    %c0_i32_0 = arith.constant 0 : i32
    %c0_i32_1 = arith.constant 0 : i32
    return %arg0, %c0_i32, %c0_i32_0 : i32, i32, i32
  }
  func.func @transform_1(%arg0: i32) -> (i32, i32, i32) {
    %c0_i32 = arith.constant 0 : i32
    %c0_i32_0 = arith.constant 0 : i32
    %c0_i32_1 = arith.constant 0 : i32
    return %arg0, %c0_i32, %c0_i32_0 : i32, i32, i32
  }
  func.func @transform_2(%arg0: i32) -> (i32, i32, i32) {
    %c0_i32 = arith.constant 0 : i32
    %c0_i32_0 = arith.constant 0 : i32
    %c0_i32_1 = arith.constant 0 : i32
    return %arg0, %c0_i32, %c0_i32_0 : i32, i32, i32
  }
}

module attributes {stable_mosaic.version = 11 : i64} {
  func.func @kernel(%arg0: i32, %arg1: memref<1x9x64xf32, #tpu.memory_space<vmem>>, %arg2: memref<1x9x64xf32, #tpu.memory_space<vmem>>, %arg3: memref<64x32xf32, #tpu.memory_space<vmem>>, %arg4: memref<288x32xf32, #tpu.memory_space<vmem>>, %arg5: memref<32x64xf32, #tpu.memory_space<vmem>>, %arg6: memref<4x32xf32, #tpu.memory_space<vmem>>, %arg7: memref<1x64xf32, #tpu.memory_space<vmem>>, %arg8: memref<1x9x64xf32, #tpu.memory_space<vmem>>) attributes {dimension_semantics = [#tpu.dimension_semantics<parallel>], iteration_bounds = array<i64: 2>, scalar_prefetch = 0 : i64, scratch_operands = 0 : i64, tpu.core_type = #tpu.core_type<tc>, window_params = [{transform_indices = @transform_0, window_bounds = array<i64: 1, 9, 64>}, {transform_indices = @transform_1, window_bounds = array<i64: 1, 9, 64>}, {pipeline_mode = #tpu.pipeline_mode<synchronous>, transform_indices = @transform_2, window_bounds = array<i64: 64, 32>}, {pipeline_mode = #tpu.pipeline_mode<synchronous>, transform_indices = @transform_3, window_bounds = array<i64: 288, 32>}, {pipeline_mode = #tpu.pipeline_mode<synchronous>, transform_indices = @transform_4, window_bounds = array<i64: 32, 64>}, {pipeline_mode = #tpu.pipeline_mode<synchronous>, transform_indices = @transform_5, window_bounds = array<i64: 4, 32>}, {pipeline_mode = #tpu.pipeline_mode<synchronous>, transform_indices = @transform_6, window_bounds = array<i64: 1, 64>}, {transform_indices = @transform_7, window_bounds = array<i64: 1, 9, 64>}]} {
    %c2 = arith.constant 2 : index
    %c0 = arith.constant 0 : index
    %0 = vector.load %arg6[%c2, %c0] : memref<4x32xf32, #tpu.memory_space<vmem>>, vector<1x32xf32>
    %c3 = arith.constant 3 : index
    %c0_0 = arith.constant 0 : index
    %1 = vector.load %arg6[%c3, %c0_0] : memref<4x32xf32, #tpu.memory_space<vmem>>, vector<1x32xf32>
    %c0_1 = arith.constant 0 : index
    %c0_2 = arith.constant 0 : index
    %c0_3 = arith.constant 0 : index
    %2 = vector.load %arg1[%c0_1, %c0_2, %c0_3] : memref<1x9x64xf32, #tpu.memory_space<vmem>>, vector<1x9x64xf32>
    %3 = vector.shape_cast %2 : vector<1x9x64xf32> to vector<9x64xf32>
    %c0_4 = arith.constant 0 : index
    %c0_5 = arith.constant 0 : index
    %4 = vector.load %arg3[%c0_4, %c0_5] : memref<64x32xf32, #tpu.memory_space<vmem>>, vector<64x32xf32>
    %cst = arith.constant dense<0.000000e+00> : vector<9x32xf32>
    %5 = tpu.matmul %3, %4, %cst {dimension_numbers = #tpu.dot_dimension_numbers<[1], [0], [0], [1], [0, 0, 1, 1], [], []>} : vector<9x64xf32>, vector<64x32xf32>, vector<9x32xf32> -> vector<9x32xf32>
    %c0_6 = arith.constant 0 : index
    %c0_7 = arith.constant 0 : index
    %6 = vector.load %arg6[%c0_6, %c0_7] : memref<4x32xf32, #tpu.memory_space<vmem>>, vector<1x32xf32>
    %7 = vector.broadcast %6 : vector<1x32xf32> to vector<9x32xf32>
    %8 = arith.addf %5, %7 : vector<9x32xf32>
    %9 = math.tanh %8 : vector<9x32xf32>
    %cst_8 = arith.constant 0.000000e+00 : f32
    %10 = vector.broadcast %cst_8 : f32 to vector<8x32xf32>
    %11 = tpu.concatenate %10, %9 in 0 : vector<8x32xf32>, vector<9x32xf32> -> vector<17x32xf32>
    %cst_9 = arith.constant 0.000000e+00 : f32
    %12 = vector.broadcast %cst_9 : f32 to vector<9x32xf32>
    %c1 = arith.constant 1 : index
    %c0_10 = arith.constant 0 : index
    %13 = vector.load %arg6[%c1, %c0_10] : memref<4x32xf32, #tpu.memory_space<vmem>>, vector<1x32xf32>
    %14 = vector.broadcast %13 : vector<1x32xf32> to vector<9x32xf32>
    %15 = arith.addf %12, %14 : vector<9x32xf32>
    %16 = vector.extract_strided_slice %11 {offsets = [0, 0], sizes = [9, 32], strides = [1, 1]} : vector<17x32xf32> to vector<9x32xf32>
    %c0_11 = arith.constant 0 : index
    %c0_12 = arith.constant 0 : index
    %17 = vector.load %arg4[%c0_11, %c0_12] : memref<288x32xf32, #tpu.memory_space<vmem>>, vector<32x32xf32>
    %cst_13 = arith.constant dense<0.000000e+00> : vector<9x32xf32>
    %18 = tpu.matmul %16, %17, %cst_13 {dimension_numbers = #tpu.dot_dimension_numbers<[1], [0], [0], [1], [0, 0, 1, 1], [], []>} : vector<9x32xf32>, vector<32x32xf32>, vector<9x32xf32> -> vector<9x32xf32>
    %19 = arith.addf %15, %18 : vector<9x32xf32>
    %20 = vector.extract_strided_slice %11 {offsets = [1, 0], sizes = [9, 32], strides = [1, 1]} : vector<17x32xf32> to vector<9x32xf32>
    %c32 = arith.constant 32 : index
    %c0_14 = arith.constant 0 : index
    %21 = vector.load %arg4[%c32, %c0_14] : memref<288x32xf32, #tpu.memory_space<vmem>>, vector<32x32xf32>
    %cst_15 = arith.constant dense<0.000000e+00> : vector<9x32xf32>
    %22 = tpu.matmul %20, %21, %cst_15 {dimension_numbers = #tpu.dot_dimension_numbers<[1], [0], [0], [1], [0, 0, 1, 1], [], []>} : vector<9x32xf32>, vector<32x32xf32>, vector<9x32xf32> -> vector<9x32xf32>
    %23 = arith.addf %19, %22 : vector<9x32xf32>
    %24 = vector.extract_strided_slice %11 {offsets = [2, 0], sizes = [9, 32], strides = [1, 1]} : vector<17x32xf32> to vector<9x32xf32>
    %c64 = arith.constant 64 : index
    %c0_16 = arith.constant 0 : index
    %25 = vector.load %arg4[%c64, %c0_16] : memref<288x32xf32, #tpu.memory_space<vmem>>, vector<32x32xf32>
    %cst_17 = arith.constant dense<0.000000e+00> : vector<9x32xf32>
    %26 = tpu.matmul %24, %25, %cst_17 {dimension_numbers = #tpu.dot_dimension_numbers<[1], [0], [0], [1], [0, 0, 1, 1], [], []>} : vector<9x32xf32>, vector<32x32xf32>, vector<9x32xf32> -> vector<9x32xf32>
    %27 = arith.addf %23, %26 : vector<9x32xf32>
    %28 = vector.extract_strided_slice %11 {offsets = [3, 0], sizes = [9, 32], strides = [1, 1]} : vector<17x32xf32> to vector<9x32xf32>
    %c96 = arith.constant 96 : index
    %c0_18 = arith.constant 0 : index
    %29 = vector.load %arg4[%c96, %c0_18] : memref<288x32xf32, #tpu.memory_space<vmem>>, vector<32x32xf32>
    %cst_19 = arith.constant dense<0.000000e+00> : vector<9x32xf32>
    %30 = tpu.matmul %28, %29, %cst_19 {dimension_numbers = #tpu.dot_dimension_numbers<[1], [0], [0], [1], [0, 0, 1, 1], [], []>} : vector<9x32xf32>, vector<32x32xf32>, vector<9x32xf32> -> vector<9x32xf32>
    %31 = arith.addf %27, %30 : vector<9x32xf32>
    %32 = vector.extract_strided_slice %11 {offsets = [4, 0], sizes = [9, 32], strides = [1, 1]} : vector<17x32xf32> to vector<9x32xf32>
    %c128 = arith.constant 128 : index
    %c0_20 = arith.constant 0 : index
    %33 = vector.load %arg4[%c128, %c0_20] : memref<288x32xf32, #tpu.memory_space<vmem>>, vector<32x32xf32>
    %cst_21 = arith.constant dense<0.000000e+00> : vector<9x32xf32>
    %34 = tpu.matmul %32, %33, %cst_21 {dimension_numbers = #tpu.dot_dimension_numbers<[1], [0], [0], [1], [0, 0, 1, 1], [], []>} : vector<9x32xf32>, vector<32x32xf32>, vector<9x32xf32> -> vector<9x32xf32>
    %35 = arith.addf %31, %34 : vector<9x32xf32>
    %36 = vector.extract_strided_slice %11 {offsets = [5, 0], sizes = [9, 32], strides = [1, 1]} : vector<17x32xf32> to vector<9x32xf32>
    %c160 = arith.constant 160 : index
    %c0_22 = arith.constant 0 : index
    %37 = vector.load %arg4[%c160, %c0_22] : memref<288x32xf32, #tpu.memory_space<vmem>>, vector<32x32xf32>
    %cst_23 = arith.constant dense<0.000000e+00> : vector<9x32xf32>
    %38 = tpu.matmul %36, %37, %cst_23 {dimension_numbers = #tpu.dot_dimension_numbers<[1], [0], [0], [1], [0, 0, 1, 1], [], []>} : vector<9x32xf32>, vector<32x32xf32>, vector<9x32xf32> -> vector<9x32xf32>
    %39 = arith.addf %35, %38 : vector<9x32xf32>
    %40 = vector.extract_strided_slice %11 {offsets = [6, 0], sizes = [9, 32], strides = [1, 1]} : vector<17x32xf32> to vector<9x32xf32>
    %c192 = arith.constant 192 : index
    %c0_24 = arith.constant 0 : index
    %41 = vector.load %arg4[%c192, %c0_24] : memref<288x32xf32, #tpu.memory_space<vmem>>, vector<32x32xf32>
    %cst_25 = arith.constant dense<0.000000e+00> : vector<9x32xf32>
    %42 = tpu.matmul %40, %41, %cst_25 {dimension_numbers = #tpu.dot_dimension_numbers<[1], [0], [0], [1], [0, 0, 1, 1], [], []>} : vector<9x32xf32>, vector<32x32xf32>, vector<9x32xf32> -> vector<9x32xf32>
    %43 = arith.addf %39, %42 : vector<9x32xf32>
    %44 = vector.extract_strided_slice %11 {offsets = [7, 0], sizes = [9, 32], strides = [1, 1]} : vector<17x32xf32> to vector<9x32xf32>
    %c224 = arith.constant 224 : index
    %c0_26 = arith.constant 0 : index
    %45 = vector.load %arg4[%c224, %c0_26] : memref<288x32xf32, #tpu.memory_space<vmem>>, vector<32x32xf32>
    %cst_27 = arith.constant dense<0.000000e+00> : vector<9x32xf32>
    %46 = tpu.matmul %44, %45, %cst_27 {dimension_numbers = #tpu.dot_dimension_numbers<[1], [0], [0], [1], [0, 0, 1, 1], [], []>} : vector<9x32xf32>, vector<32x32xf32>, vector<9x32xf32> -> vector<9x32xf32>
    %47 = arith.addf %43, %46 : vector<9x32xf32>
    %48 = vector.extract_strided_slice %11 {offsets = [8, 0], sizes = [9, 32], strides = [1, 1]} : vector<17x32xf32> to vector<9x32xf32>
    %c256 = arith.constant 256 : index
    %c0_28 = arith.constant 0 : index
    %49 = vector.load %arg4[%c256, %c0_28] : memref<288x32xf32, #tpu.memory_space<vmem>>, vector<32x32xf32>
    %cst_29 = arith.constant dense<0.000000e+00> : vector<9x32xf32>
    %50 = tpu.matmul %48, %49, %cst_29 {dimension_numbers = #tpu.dot_dimension_numbers<[1], [0], [0], [1], [0, 0, 1, 1], [], []>} : vector<9x32xf32>, vector<32x32xf32>, vector<9x32xf32> -> vector<9x32xf32>
    %51 = arith.addf %47, %50 : vector<9x32xf32>
    %52 = math.tanh %51 : vector<9x32xf32>
    %53 = arith.addf %52, %9 : vector<9x32xf32>
    %cst_30 = arith.constant dense<0.000000e+00> : vector<9xf32>
    %54 = vector.multi_reduction <add>, %53, %cst_30 [1] : vector<9x32xf32> to vector<9xf32>
    %55 = vector.shape_cast %54 : vector<9xf32> to vector<9x1xf32>
    %cst_31 = arith.constant 3.200000e+01 : f32
    %56 = vector.broadcast %cst_31 : f32 to vector<9x1xf32>
    %57 = arith.divf %55, %56 : vector<9x1xf32>
    %58 = vector.broadcast %57 : vector<9x1xf32> to vector<9x32xf32>
    %59 = arith.subf %53, %58 : vector<9x32xf32>
    %60 = arith.mulf %59, %59 : vector<9x32xf32>
    %cst_32 = arith.constant dense<0.000000e+00> : vector<9xf32>
    %61 = vector.multi_reduction <add>, %60, %cst_32 [1] : vector<9x32xf32> to vector<9xf32>
    %62 = vector.shape_cast %61 : vector<9xf32> to vector<9x1xf32>
    %cst_33 = arith.constant 3.200000e+01 : f32
    %63 = vector.broadcast %cst_33 : f32 to vector<9x1xf32>
    %64 = arith.divf %62, %63 : vector<9x1xf32>
    %cst_34 = arith.constant 9.99999974E-6 : f32
    %65 = vector.broadcast %cst_34 : f32 to vector<9x1xf32>
    %66 = arith.addf %64, %65 : vector<9x1xf32>
    %67 = math.rsqrt %66 : vector<9x1xf32>
    %68 = vector.broadcast %67 : vector<9x1xf32> to vector<9x32xf32>
    %69 = arith.mulf %59, %68 : vector<9x32xf32>
    %70 = vector.broadcast %0 : vector<1x32xf32> to vector<9x32xf32>
    %71 = arith.mulf %69, %70 : vector<9x32xf32>
    %72 = vector.broadcast %1 : vector<1x32xf32> to vector<9x32xf32>
    %73 = arith.addf %71, %72 : vector<9x32xf32>
    %c0_35 = arith.constant 0 : index
    %c0_36 = arith.constant 0 : index
    %74 = vector.load %arg5[%c0_35, %c0_36] : memref<32x64xf32, #tpu.memory_space<vmem>>, vector<32x64xf32>
    %cst_37 = arith.constant dense<0.000000e+00> : vector<9x64xf32>
    %75 = tpu.matmul %73, %74, %cst_37 {dimension_numbers = #tpu.dot_dimension_numbers<[1], [0], [0], [1], [0, 0, 1, 1], [], []>} : vector<9x32xf32>, vector<32x64xf32>, vector<9x64xf32> -> vector<9x64xf32>
    %c0_38 = arith.constant 0 : index
    %c0_39 = arith.constant 0 : index
    %76 = vector.load %arg7[%c0_38, %c0_39] : memref<1x64xf32, #tpu.memory_space<vmem>>, vector<1x64xf32>
    %77 = vector.broadcast %76 : vector<1x64xf32> to vector<9x64xf32>
    %78 = arith.addf %75, %77 : vector<9x64xf32>
    %79 = math.tanh %78 : vector<9x64xf32>
    %c0_40 = arith.constant 0 : index
    %c0_41 = arith.constant 0 : index
    %c0_42 = arith.constant 0 : index
    %80 = vector.load %arg2[%c0_40, %c0_41, %c0_42] : memref<1x9x64xf32, #tpu.memory_space<vmem>>, vector<1x9x64xf32>
    %81 = vector.shape_cast %80 : vector<1x9x64xf32> to vector<9x64xf32>
    %82 = arith.addf %79, %81 : vector<9x64xf32>
    %83 = vector.extract_strided_slice %82 {offsets = [0, 0], sizes = [9, 32], strides = [1, 1]} : vector<9x64xf32> to vector<9x32xf32>
    %cst_43 = arith.constant dense<0.000000e+00> : vector<9xf32>
    %84 = vector.multi_reduction <add>, %83, %cst_43 [1] : vector<9x32xf32> to vector<9xf32>
    %85 = vector.shape_cast %84 : vector<9xf32> to vector<9x1xf32>
    %cst_44 = arith.constant 3.200000e+01 : f32
    %86 = vector.broadcast %cst_44 : f32 to vector<9x1xf32>
    %87 = arith.divf %85, %86 : vector<9x1xf32>
    %88 = vector.broadcast %87 : vector<9x1xf32> to vector<9x32xf32>
    %89 = arith.subf %83, %88 : vector<9x32xf32>
    %90 = arith.mulf %89, %89 : vector<9x32xf32>
    %cst_45 = arith.constant dense<0.000000e+00> : vector<9xf32>
    %91 = vector.multi_reduction <add>, %90, %cst_45 [1] : vector<9x32xf32> to vector<9xf32>
    %92 = vector.shape_cast %91 : vector<9xf32> to vector<9x1xf32>
    %cst_46 = arith.constant 3.200000e+01 : f32
    %93 = vector.broadcast %cst_46 : f32 to vector<9x1xf32>
    %94 = arith.divf %92, %93 : vector<9x1xf32>
    %cst_47 = arith.constant 9.99999974E-6 : f32
    %95 = vector.broadcast %cst_47 : f32 to vector<9x1xf32>
    %96 = arith.addf %94, %95 : vector<9x1xf32>
    %97 = math.rsqrt %96 : vector<9x1xf32>
    %98 = vector.broadcast %97 : vector<9x1xf32> to vector<9x32xf32>
    %99 = arith.mulf %89, %98 : vector<9x32xf32>
    %100 = vector.broadcast %0 : vector<1x32xf32> to vector<9x32xf32>
    %101 = arith.mulf %99, %100 : vector<9x32xf32>
    %102 = vector.broadcast %1 : vector<1x32xf32> to vector<9x32xf32>
    %103 = arith.addf %101, %102 : vector<9x32xf32>
    %104 = vector.extract_strided_slice %82 {offsets = [0, 32], sizes = [9, 32], strides = [1, 1]} : vector<9x64xf32> to vector<9x32xf32>
    %cst_48 = arith.constant dense<0.000000e+00> : vector<9xf32>
    %105 = vector.multi_reduction <add>, %104, %cst_48 [1] : vector<9x32xf32> to vector<9xf32>
    %106 = vector.shape_cast %105 : vector<9xf32> to vector<9x1xf32>
    %cst_49 = arith.constant 3.200000e+01 : f32
    %107 = vector.broadcast %cst_49 : f32 to vector<9x1xf32>
    %108 = arith.divf %106, %107 : vector<9x1xf32>
    %109 = vector.broadcast %108 : vector<9x1xf32> to vector<9x32xf32>
    %110 = arith.subf %104, %109 : vector<9x32xf32>
    %111 = arith.mulf %110, %110 : vector<9x32xf32>
    %cst_50 = arith.constant dense<0.000000e+00> : vector<9xf32>
    %112 = vector.multi_reduction <add>, %111, %cst_50 [1] : vector<9x32xf32> to vector<9xf32>
    %113 = vector.shape_cast %112 : vector<9xf32> to vector<9x1xf32>
    %cst_51 = arith.constant 3.200000e+01 : f32
    %114 = vector.broadcast %cst_51 : f32 to vector<9x1xf32>
    %115 = arith.divf %113, %114 : vector<9x1xf32>
    %cst_52 = arith.constant 9.99999974E-6 : f32
    %116 = vector.broadcast %cst_52 : f32 to vector<9x1xf32>
    %117 = arith.addf %115, %116 : vector<9x1xf32>
    %118 = math.rsqrt %117 : vector<9x1xf32>
    %119 = vector.broadcast %118 : vector<9x1xf32> to vector<9x32xf32>
    %120 = arith.mulf %110, %119 : vector<9x32xf32>
    %121 = vector.broadcast %0 : vector<1x32xf32> to vector<9x32xf32>
    %122 = arith.mulf %120, %121 : vector<9x32xf32>
    %123 = vector.broadcast %1 : vector<1x32xf32> to vector<9x32xf32>
    %124 = arith.addf %122, %123 : vector<9x32xf32>
    %125 = tpu.concatenate %103, %124 in 1 : vector<9x32xf32>, vector<9x32xf32> -> vector<9x64xf32>
    %c0_53 = arith.constant 0 : index
    %c0_54 = arith.constant 0 : index
    %c0_55 = arith.constant 0 : index
    %126 = vector.load %arg8[%c0_53, %c0_54, %c0_55] : memref<1x9x64xf32, #tpu.memory_space<vmem>>, vector<1x9x64xf32>
    %127 = vector.shape_cast %126 : vector<1x9x64xf32> to vector<9x64xf32>
    %128 = vector.shape_cast %125 : vector<9x64xf32> to vector<1x9x64xf32>
    tpu.vector_store %arg8[%c0_53, %c0_54, %c0_55], %128 {strides = array<i32>} : memref<1x9x64xf32, #tpu.memory_space<vmem>>, vector<1x9x64xf32>,
    return
  }
  func.func @transform_0(%arg0: i32) -> (i32, i32, i32) {
    %c0_i32 = arith.constant 0 : i32
    %c0_i32_0 = arith.constant 0 : i32
    %c0_i32_1 = arith.constant 0 : i32
    return %arg0, %c0_i32, %c0_i32_0 : i32, i32, i32
  }
  func.func @transform_1(%arg0: i32) -> (i32, i32, i32) {
    %c0_i32 = arith.constant 0 : i32
    %c0_i32_0 = arith.constant 0 : i32
    %c0_i32_1 = arith.constant 0 : i32
    return %arg0, %c0_i32, %c0_i32_0 : i32, i32, i32
  }
  func.func @transform_2(%arg0: i32) -> (i32, i32) {
    %c0_i32 = arith.constant 0 : i32
    %c0_i32_0 = arith.constant 0 : i32
    %c0_i32_1 = arith.constant 0 : i32
    return %c0_i32, %c0_i32_0 : i32, i32
  }
  func.func @transform_3(%arg0: i32) -> (i32, i32) {
    %c0_i32 = arith.constant 0 : i32
    %c0_i32_0 = arith.constant 0 : i32
    %c0_i32_1 = arith.constant 0 : i32
    return %c0_i32, %c0_i32_0 : i32, i32
  }
  func.func @transform_4(%arg0: i32) -> (i32, i32) {
    %c0_i32 = arith.constant 0 : i32
    %c0_i32_0 = arith.constant 0 : i32
    %c0_i32_1 = arith.constant 0 : i32
    return %c0_i32, %c0_i32_0 : i32, i32
  }
  func.func @transform_5(%arg0: i32) -> (i32, i32) {
    %c0_i32 = arith.constant 0 : i32
    %c0_i32_0 = arith.constant 0 : i32
    %c0_i32_1 = arith.constant 0 : i32
    return %c0_i32, %c0_i32_0 : i32, i32
  }
  func.func @transform_6(%arg0: i32) -> (i32, i32) {
    %c0_i32 = arith.constant 0 : i32
    %c0_i32_0 = arith.constant 0 : i32
    %c0_i32_1 = arith.constant 0 : i32
    return %c0_i32, %c0_i32_0 : i32, i32
  }
  func.func @transform_7(%arg0: i32) -> (i32, i32, i32) {
    %c0_i32 = arith.constant 0 : i32
    %c0_i32_0 = arith.constant 0 : i32
    %c0_i32_1 = arith.constant 0 : i32
    return %arg0, %c0_i32, %c0_i32_0 : i32, i32, i32
  }
}

module attributes {stable_mosaic.version = 11 : i64} {
  func.func @kernel(%arg0: i32, %arg1: memref<1x5x128xf32, #tpu.memory_space<vmem>>, %arg2: memref<1x5x128xf32, #tpu.memory_space<vmem>>, %arg3: memref<128x32xf32, #tpu.memory_space<vmem>>, %arg4: memref<160x32xf32, #tpu.memory_space<vmem>>, %arg5: memref<32x128xf32, #tpu.memory_space<vmem>>, %arg6: memref<4x32xf32, #tpu.memory_space<vmem>>, %arg7: memref<1x128xf32, #tpu.memory_space<vmem>>, %arg8: memref<1x5x128xf32, #tpu.memory_space<vmem>>) attributes {dimension_semantics = [#tpu.dimension_semantics<parallel>], iteration_bounds = array<i64: 2>, scalar_prefetch = 0 : i64, scratch_operands = 0 : i64, tpu.core_type = #tpu.core_type<tc>, window_params = [{transform_indices = @transform_0, window_bounds = array<i64: 1, 5, 128>}, {transform_indices = @transform_1, window_bounds = array<i64: 1, 5, 128>}, {pipeline_mode = #tpu.pipeline_mode<synchronous>, transform_indices = @transform_2, window_bounds = array<i64: 128, 32>}, {pipeline_mode = #tpu.pipeline_mode<synchronous>, transform_indices = @transform_3, window_bounds = array<i64: 160, 32>}, {pipeline_mode = #tpu.pipeline_mode<synchronous>, transform_indices = @transform_4, window_bounds = array<i64: 32, 128>}, {pipeline_mode = #tpu.pipeline_mode<synchronous>, transform_indices = @transform_5, window_bounds = array<i64: 4, 32>}, {pipeline_mode = #tpu.pipeline_mode<synchronous>, transform_indices = @transform_6, window_bounds = array<i64: 1, 128>}, {transform_indices = @transform_7, window_bounds = array<i64: 1, 5, 128>}]} {
    %c2 = arith.constant 2 : index
    %c0 = arith.constant 0 : index
    %0 = vector.load %arg6[%c2, %c0] : memref<4x32xf32, #tpu.memory_space<vmem>>, vector<1x32xf32>
    %c3 = arith.constant 3 : index
    %c0_0 = arith.constant 0 : index
    %1 = vector.load %arg6[%c3, %c0_0] : memref<4x32xf32, #tpu.memory_space<vmem>>, vector<1x32xf32>
    %c0_1 = arith.constant 0 : index
    %c0_2 = arith.constant 0 : index
    %c0_3 = arith.constant 0 : index
    %2 = vector.load %arg1[%c0_1, %c0_2, %c0_3] : memref<1x5x128xf32, #tpu.memory_space<vmem>>, vector<1x5x128xf32>
    %3 = vector.shape_cast %2 : vector<1x5x128xf32> to vector<5x128xf32>
    %c0_4 = arith.constant 0 : index
    %c0_5 = arith.constant 0 : index
    %4 = vector.load %arg3[%c0_4, %c0_5] : memref<128x32xf32, #tpu.memory_space<vmem>>, vector<128x32xf32>
    %cst = arith.constant dense<0.000000e+00> : vector<5x32xf32>
    %5 = tpu.matmul %3, %4, %cst {dimension_numbers = #tpu.dot_dimension_numbers<[1], [0], [0], [1], [0, 0, 1, 1], [], []>} : vector<5x128xf32>, vector<128x32xf32>, vector<5x32xf32> -> vector<5x32xf32>
    %c0_6 = arith.constant 0 : index
    %c0_7 = arith.constant 0 : index
    %6 = vector.load %arg6[%c0_6, %c0_7] : memref<4x32xf32, #tpu.memory_space<vmem>>, vector<1x32xf32>
    %7 = vector.broadcast %6 : vector<1x32xf32> to vector<5x32xf32>
    %8 = arith.addf %5, %7 : vector<5x32xf32>
    %9 = math.tanh %8 : vector<5x32xf32>
    %cst_8 = arith.constant 0.000000e+00 : f32
    %10 = vector.broadcast %cst_8 : f32 to vector<4x32xf32>
    %11 = tpu.concatenate %10, %9 in 0 : vector<4x32xf32>, vector<5x32xf32> -> vector<9x32xf32>
    %cst_9 = arith.constant 0.000000e+00 : f32
    %12 = vector.broadcast %cst_9 : f32 to vector<5x32xf32>
    %c1 = arith.constant 1 : index
    %c0_10 = arith.constant 0 : index
    %13 = vector.load %arg6[%c1, %c0_10] : memref<4x32xf32, #tpu.memory_space<vmem>>, vector<1x32xf32>
    %14 = vector.broadcast %13 : vector<1x32xf32> to vector<5x32xf32>
    %15 = arith.addf %12, %14 : vector<5x32xf32>
    %16 = vector.extract_strided_slice %11 {offsets = [0, 0], sizes = [5, 32], strides = [1, 1]} : vector<9x32xf32> to vector<5x32xf32>
    %c0_11 = arith.constant 0 : index
    %c0_12 = arith.constant 0 : index
    %17 = vector.load %arg4[%c0_11, %c0_12] : memref<160x32xf32, #tpu.memory_space<vmem>>, vector<32x32xf32>
    %cst_13 = arith.constant dense<0.000000e+00> : vector<5x32xf32>
    %18 = tpu.matmul %16, %17, %cst_13 {dimension_numbers = #tpu.dot_dimension_numbers<[1], [0], [0], [1], [0, 0, 1, 1], [], []>} : vector<5x32xf32>, vector<32x32xf32>, vector<5x32xf32> -> vector<5x32xf32>
    %19 = arith.addf %15, %18 : vector<5x32xf32>
    %20 = vector.extract_strided_slice %11 {offsets = [1, 0], sizes = [5, 32], strides = [1, 1]} : vector<9x32xf32> to vector<5x32xf32>
    %c32 = arith.constant 32 : index
    %c0_14 = arith.constant 0 : index
    %21 = vector.load %arg4[%c32, %c0_14] : memref<160x32xf32, #tpu.memory_space<vmem>>, vector<32x32xf32>
    %cst_15 = arith.constant dense<0.000000e+00> : vector<5x32xf32>
    %22 = tpu.matmul %20, %21, %cst_15 {dimension_numbers = #tpu.dot_dimension_numbers<[1], [0], [0], [1], [0, 0, 1, 1], [], []>} : vector<5x32xf32>, vector<32x32xf32>, vector<5x32xf32> -> vector<5x32xf32>
    %23 = arith.addf %19, %22 : vector<5x32xf32>
    %24 = vector.extract_strided_slice %11 {offsets = [2, 0], sizes = [5, 32], strides = [1, 1]} : vector<9x32xf32> to vector<5x32xf32>
    %c64 = arith.constant 64 : index
    %c0_16 = arith.constant 0 : index
    %25 = vector.load %arg4[%c64, %c0_16] : memref<160x32xf32, #tpu.memory_space<vmem>>, vector<32x32xf32>
    %cst_17 = arith.constant dense<0.000000e+00> : vector<5x32xf32>
    %26 = tpu.matmul %24, %25, %cst_17 {dimension_numbers = #tpu.dot_dimension_numbers<[1], [0], [0], [1], [0, 0, 1, 1], [], []>} : vector<5x32xf32>, vector<32x32xf32>, vector<5x32xf32> -> vector<5x32xf32>
    %27 = arith.addf %23, %26 : vector<5x32xf32>
    %28 = vector.extract_strided_slice %11 {offsets = [3, 0], sizes = [5, 32], strides = [1, 1]} : vector<9x32xf32> to vector<5x32xf32>
    %c96 = arith.constant 96 : index
    %c0_18 = arith.constant 0 : index
    %29 = vector.load %arg4[%c96, %c0_18] : memref<160x32xf32, #tpu.memory_space<vmem>>, vector<32x32xf32>
    %cst_19 = arith.constant dense<0.000000e+00> : vector<5x32xf32>
    %30 = tpu.matmul %28, %29, %cst_19 {dimension_numbers = #tpu.dot_dimension_numbers<[1], [0], [0], [1], [0, 0, 1, 1], [], []>} : vector<5x32xf32>, vector<32x32xf32>, vector<5x32xf32> -> vector<5x32xf32>
    %31 = arith.addf %27, %30 : vector<5x32xf32>
    %32 = vector.extract_strided_slice %11 {offsets = [4, 0], sizes = [5, 32], strides = [1, 1]} : vector<9x32xf32> to vector<5x32xf32>
    %c128 = arith.constant 128 : index
    %c0_20 = arith.constant 0 : index
    %33 = vector.load %arg4[%c128, %c0_20] : memref<160x32xf32, #tpu.memory_space<vmem>>, vector<32x32xf32>
    %cst_21 = arith.constant dense<0.000000e+00> : vector<5x32xf32>
    %34 = tpu.matmul %32, %33, %cst_21 {dimension_numbers = #tpu.dot_dimension_numbers<[1], [0], [0], [1], [0, 0, 1, 1], [], []>} : vector<5x32xf32>, vector<32x32xf32>, vector<5x32xf32> -> vector<5x32xf32>
    %35 = arith.addf %31, %34 : vector<5x32xf32>
    %36 = math.tanh %35 : vector<5x32xf32>
    %37 = arith.addf %36, %9 : vector<5x32xf32>
    %cst_22 = arith.constant dense<0.000000e+00> : vector<5xf32>
    %38 = vector.multi_reduction <add>, %37, %cst_22 [1] : vector<5x32xf32> to vector<5xf32>
    %39 = vector.shape_cast %38 : vector<5xf32> to vector<5x1xf32>
    %cst_23 = arith.constant 3.200000e+01 : f32
    %40 = vector.broadcast %cst_23 : f32 to vector<5x1xf32>
    %41 = arith.divf %39, %40 : vector<5x1xf32>
    %42 = vector.broadcast %41 : vector<5x1xf32> to vector<5x32xf32>
    %43 = arith.subf %37, %42 : vector<5x32xf32>
    %44 = arith.mulf %43, %43 : vector<5x32xf32>
    %cst_24 = arith.constant dense<0.000000e+00> : vector<5xf32>
    %45 = vector.multi_reduction <add>, %44, %cst_24 [1] : vector<5x32xf32> to vector<5xf32>
    %46 = vector.shape_cast %45 : vector<5xf32> to vector<5x1xf32>
    %cst_25 = arith.constant 3.200000e+01 : f32
    %47 = vector.broadcast %cst_25 : f32 to vector<5x1xf32>
    %48 = arith.divf %46, %47 : vector<5x1xf32>
    %cst_26 = arith.constant 9.99999974E-6 : f32
    %49 = vector.broadcast %cst_26 : f32 to vector<5x1xf32>
    %50 = arith.addf %48, %49 : vector<5x1xf32>
    %51 = math.rsqrt %50 : vector<5x1xf32>
    %52 = vector.broadcast %51 : vector<5x1xf32> to vector<5x32xf32>
    %53 = arith.mulf %43, %52 : vector<5x32xf32>
    %54 = vector.broadcast %0 : vector<1x32xf32> to vector<5x32xf32>
    %55 = arith.mulf %53, %54 : vector<5x32xf32>
    %56 = vector.broadcast %1 : vector<1x32xf32> to vector<5x32xf32>
    %57 = arith.addf %55, %56 : vector<5x32xf32>
    %c0_27 = arith.constant 0 : index
    %c0_28 = arith.constant 0 : index
    %58 = vector.load %arg5[%c0_27, %c0_28] : memref<32x128xf32, #tpu.memory_space<vmem>>, vector<32x128xf32>
    %cst_29 = arith.constant dense<0.000000e+00> : vector<5x128xf32>
    %59 = tpu.matmul %57, %58, %cst_29 {dimension_numbers = #tpu.dot_dimension_numbers<[1], [0], [0], [1], [0, 0, 1, 1], [], []>} : vector<5x32xf32>, vector<32x128xf32>, vector<5x128xf32> -> vector<5x128xf32>
    %c0_30 = arith.constant 0 : index
    %c0_31 = arith.constant 0 : index
    %60 = vector.load %arg7[%c0_30, %c0_31] : memref<1x128xf32, #tpu.memory_space<vmem>>, vector<1x128xf32>
    %61 = vector.broadcast %60 : vector<1x128xf32> to vector<5x128xf32>
    %62 = arith.addf %59, %61 : vector<5x128xf32>
    %63 = math.tanh %62 : vector<5x128xf32>
    %c0_32 = arith.constant 0 : index
    %c0_33 = arith.constant 0 : index
    %c0_34 = arith.constant 0 : index
    %64 = vector.load %arg2[%c0_32, %c0_33, %c0_34] : memref<1x5x128xf32, #tpu.memory_space<vmem>>, vector<1x5x128xf32>
    %65 = vector.shape_cast %64 : vector<1x5x128xf32> to vector<5x128xf32>
    %66 = arith.addf %63, %65 : vector<5x128xf32>
    %67 = vector.extract_strided_slice %66 {offsets = [0, 0], sizes = [5, 32], strides = [1, 1]} : vector<5x128xf32> to vector<5x32xf32>
    %cst_35 = arith.constant dense<0.000000e+00> : vector<5xf32>
    %68 = vector.multi_reduction <add>, %67, %cst_35 [1] : vector<5x32xf32> to vector<5xf32>
    %69 = vector.shape_cast %68 : vector<5xf32> to vector<5x1xf32>
    %cst_36 = arith.constant 3.200000e+01 : f32
    %70 = vector.broadcast %cst_36 : f32 to vector<5x1xf32>
    %71 = arith.divf %69, %70 : vector<5x1xf32>
    %72 = vector.broadcast %71 : vector<5x1xf32> to vector<5x32xf32>
    %73 = arith.subf %67, %72 : vector<5x32xf32>
    %74 = arith.mulf %73, %73 : vector<5x32xf32>
    %cst_37 = arith.constant dense<0.000000e+00> : vector<5xf32>
    %75 = vector.multi_reduction <add>, %74, %cst_37 [1] : vector<5x32xf32> to vector<5xf32>
    %76 = vector.shape_cast %75 : vector<5xf32> to vector<5x1xf32>
    %cst_38 = arith.constant 3.200000e+01 : f32
    %77 = vector.broadcast %cst_38 : f32 to vector<5x1xf32>
    %78 = arith.divf %76, %77 : vector<5x1xf32>
    %cst_39 = arith.constant 9.99999974E-6 : f32
    %79 = vector.broadcast %cst_39 : f32 to vector<5x1xf32>
    %80 = arith.addf %78, %79 : vector<5x1xf32>
    %81 = math.rsqrt %80 : vector<5x1xf32>
    %82 = vector.broadcast %81 : vector<5x1xf32> to vector<5x32xf32>
    %83 = arith.mulf %73, %82 : vector<5x32xf32>
    %84 = vector.broadcast %0 : vector<1x32xf32> to vector<5x32xf32>
    %85 = arith.mulf %83, %84 : vector<5x32xf32>
    %86 = vector.broadcast %1 : vector<1x32xf32> to vector<5x32xf32>
    %87 = arith.addf %85, %86 : vector<5x32xf32>
    %88 = vector.extract_strided_slice %66 {offsets = [0, 32], sizes = [5, 32], strides = [1, 1]} : vector<5x128xf32> to vector<5x32xf32>
    %cst_40 = arith.constant dense<0.000000e+00> : vector<5xf32>
    %89 = vector.multi_reduction <add>, %88, %cst_40 [1] : vector<5x32xf32> to vector<5xf32>
    %90 = vector.shape_cast %89 : vector<5xf32> to vector<5x1xf32>
    %cst_41 = arith.constant 3.200000e+01 : f32
    %91 = vector.broadcast %cst_41 : f32 to vector<5x1xf32>
    %92 = arith.divf %90, %91 : vector<5x1xf32>
    %93 = vector.broadcast %92 : vector<5x1xf32> to vector<5x32xf32>
    %94 = arith.subf %88, %93 : vector<5x32xf32>
    %95 = arith.mulf %94, %94 : vector<5x32xf32>
    %cst_42 = arith.constant dense<0.000000e+00> : vector<5xf32>
    %96 = vector.multi_reduction <add>, %95, %cst_42 [1] : vector<5x32xf32> to vector<5xf32>
    %97 = vector.shape_cast %96 : vector<5xf32> to vector<5x1xf32>
    %cst_43 = arith.constant 3.200000e+01 : f32
    %98 = vector.broadcast %cst_43 : f32 to vector<5x1xf32>
    %99 = arith.divf %97, %98 : vector<5x1xf32>
    %cst_44 = arith.constant 9.99999974E-6 : f32
    %100 = vector.broadcast %cst_44 : f32 to vector<5x1xf32>
    %101 = arith.addf %99, %100 : vector<5x1xf32>
    %102 = math.rsqrt %101 : vector<5x1xf32>
    %103 = vector.broadcast %102 : vector<5x1xf32> to vector<5x32xf32>
    %104 = arith.mulf %94, %103 : vector<5x32xf32>
    %105 = vector.broadcast %0 : vector<1x32xf32> to vector<5x32xf32>
    %106 = arith.mulf %104, %105 : vector<5x32xf32>
    %107 = vector.broadcast %1 : vector<1x32xf32> to vector<5x32xf32>
    %108 = arith.addf %106, %107 : vector<5x32xf32>
    %109 = vector.extract_strided_slice %66 {offsets = [0, 64], sizes = [5, 32], strides = [1, 1]} : vector<5x128xf32> to vector<5x32xf32>
    %cst_45 = arith.constant dense<0.000000e+00> : vector<5xf32>
    %110 = vector.multi_reduction <add>, %109, %cst_45 [1] : vector<5x32xf32> to vector<5xf32>
    %111 = vector.shape_cast %110 : vector<5xf32> to vector<5x1xf32>
    %cst_46 = arith.constant 3.200000e+01 : f32
    %112 = vector.broadcast %cst_46 : f32 to vector<5x1xf32>
    %113 = arith.divf %111, %112 : vector<5x1xf32>
    %114 = vector.broadcast %113 : vector<5x1xf32> to vector<5x32xf32>
    %115 = arith.subf %109, %114 : vector<5x32xf32>
    %116 = arith.mulf %115, %115 : vector<5x32xf32>
    %cst_47 = arith.constant dense<0.000000e+00> : vector<5xf32>
    %117 = vector.multi_reduction <add>, %116, %cst_47 [1] : vector<5x32xf32> to vector<5xf32>
    %118 = vector.shape_cast %117 : vector<5xf32> to vector<5x1xf32>
    %cst_48 = arith.constant 3.200000e+01 : f32
    %119 = vector.broadcast %cst_48 : f32 to vector<5x1xf32>
    %120 = arith.divf %118, %119 : vector<5x1xf32>
    %cst_49 = arith.constant 9.99999974E-6 : f32
    %121 = vector.broadcast %cst_49 : f32 to vector<5x1xf32>
    %122 = arith.addf %120, %121 : vector<5x1xf32>
    %123 = math.rsqrt %122 : vector<5x1xf32>
    %124 = vector.broadcast %123 : vector<5x1xf32> to vector<5x32xf32>
    %125 = arith.mulf %115, %124 : vector<5x32xf32>
    %126 = vector.broadcast %0 : vector<1x32xf32> to vector<5x32xf32>
    %127 = arith.mulf %125, %126 : vector<5x32xf32>
    %128 = vector.broadcast %1 : vector<1x32xf32> to vector<5x32xf32>
    %129 = arith.addf %127, %128 : vector<5x32xf32>
    %130 = vector.extract_strided_slice %66 {offsets = [0, 96], sizes = [5, 32], strides = [1, 1]} : vector<5x128xf32> to vector<5x32xf32>
    %cst_50 = arith.constant dense<0.000000e+00> : vector<5xf32>
    %131 = vector.multi_reduction <add>, %130, %cst_50 [1] : vector<5x32xf32> to vector<5xf32>
    %132 = vector.shape_cast %131 : vector<5xf32> to vector<5x1xf32>
    %cst_51 = arith.constant 3.200000e+01 : f32
    %133 = vector.broadcast %cst_51 : f32 to vector<5x1xf32>
    %134 = arith.divf %132, %133 : vector<5x1xf32>
    %135 = vector.broadcast %134 : vector<5x1xf32> to vector<5x32xf32>
    %136 = arith.subf %130, %135 : vector<5x32xf32>
    %137 = arith.mulf %136, %136 : vector<5x32xf32>
    %cst_52 = arith.constant dense<0.000000e+00> : vector<5xf32>
    %138 = vector.multi_reduction <add>, %137, %cst_52 [1] : vector<5x32xf32> to vector<5xf32>
    %139 = vector.shape_cast %138 : vector<5xf32> to vector<5x1xf32>
    %cst_53 = arith.constant 3.200000e+01 : f32
    %140 = vector.broadcast %cst_53 : f32 to vector<5x1xf32>
    %141 = arith.divf %139, %140 : vector<5x1xf32>
    %cst_54 = arith.constant 9.99999974E-6 : f32
    %142 = vector.broadcast %cst_54 : f32 to vector<5x1xf32>
    %143 = arith.addf %141, %142 : vector<5x1xf32>
    %144 = math.rsqrt %143 : vector<5x1xf32>
    %145 = vector.broadcast %144 : vector<5x1xf32> to vector<5x32xf32>
    %146 = arith.mulf %136, %145 : vector<5x32xf32>
    %147 = vector.broadcast %0 : vector<1x32xf32> to vector<5x32xf32>
    %148 = arith.mulf %146, %147 : vector<5x32xf32>
    %149 = vector.broadcast %1 : vector<1x32xf32> to vector<5x32xf32>
    %150 = arith.addf %148, %149 : vector<5x32xf32>
    %151 = tpu.concatenate %87, %108, %129, %150 in 1 : vector<5x32xf32>, vector<5x32xf32>, vector<5x32xf32>, vector<5x32xf32> -> vector<5x128xf32>
    %c0_55 = arith.constant 0 : index
    %c0_56 = arith.constant 0 : index
    %c0_57 = arith.constant 0 : index
    %152 = vector.load %arg8[%c0_55, %c0_56, %c0_57] : memref<1x5x128xf32, #tpu.memory_space<vmem>>, vector<1x5x128xf32>
    %153 = vector.shape_cast %152 : vector<1x5x128xf32> to vector<5x128xf32>
    %154 = vector.shape_cast %151 : vector<5x128xf32> to vector<1x5x128xf32>
    tpu.vector_store %arg8[%c0_55, %c0_56, %c0_57], %154 {strides = array<i32>} : memref<1x5x128xf32, #tpu.memory_space<vmem>>, vector<1x5x128xf32>,
    return
  }
  func.func @transform_0(%arg0: i32) -> (i32, i32, i32) {
    %c0_i32 = arith.constant 0 : i32
    %c0_i32_0 = arith.constant 0 : i32
    %c0_i32_1 = arith.constant 0 : i32
    return %arg0, %c0_i32, %c0_i32_0 : i32, i32, i32
  }
  func.func @transform_1(%arg0: i32) -> (i32, i32, i32) {
    %c0_i32 = arith.constant 0 : i32
    %c0_i32_0 = arith.constant 0 : i32
    %c0_i32_1 = arith.constant 0 : i32
    return %arg0, %c0_i32, %c0_i32_0 : i32, i32, i32
  }
  func.func @transform_2(%arg0: i32) -> (i32, i32) {
    %c0_i32 = arith.constant 0 : i32
    %c0_i32_0 = arith.constant 0 : i32
    %c0_i32_1 = arith.constant 0 : i32
    return %c0_i32, %c0_i32_0 : i32, i32
  }
  func.func @transform_3(%arg0: i32) -> (i32, i32) {
    %c0_i32 = arith.constant 0 : i32
    %c0_i32_0 = arith.constant 0 : i32
    %c0_i32_1 = arith.constant 0 : i32
    return %c0_i32, %c0_i32_0 : i32, i32
  }
  func.func @transform_4(%arg0: i32) -> (i32, i32) {
    %c0_i32 = arith.constant 0 : i32
    %c0_i32_0 = arith.constant 0 : i32
    %c0_i32_1 = arith.constant 0 : i32
    return %c0_i32, %c0_i32_0 : i32, i32
  }
  func.func @transform_5(%arg0: i32) -> (i32, i32) {
    %c0_i32 = arith.constant 0 : i32
    %c0_i32_0 = arith.constant 0 : i32
    %c0_i32_1 = arith.constant 0 : i32
    return %c0_i32, %c0_i32_0 : i32, i32
  }
  func.func @transform_6(%arg0: i32) -> (i32, i32) {
    %c0_i32 = arith.constant 0 : i32
    %c0_i32_0 = arith.constant 0 : i32
    %c0_i32_1 = arith.constant 0 : i32
    return %c0_i32, %c0_i32_0 : i32, i32
  }
  func.func @transform_7(%arg0: i32) -> (i32, i32, i32) {
    %c0_i32 = arith.constant 0 : i32
    %c0_i32_0 = arith.constant 0 : i32
    %c0_i32_1 = arith.constant 0 : i32
    return %arg0, %c0_i32, %c0_i32_0 : i32, i32, i32
  }
}

module attributes {stable_mosaic.version = 11 : i64} {
  func.func @kernel(%arg0: i32, %arg1: memref<16x64xf32, #tpu.memory_space<vmem>>, %arg2: memref<64x32xf32, #tpu.memory_space<vmem>>, %arg3: memref<32x128xf32, #tpu.memory_space<vmem>>, %arg4: memref<128x32xf32, #tpu.memory_space<vmem>>, %arg5: memref<6x32xf32, #tpu.memory_space<vmem>>, %arg6: memref<1x128xf32, #tpu.memory_space<vmem>>, %arg7: memref<16x32xf32, #tpu.memory_space<vmem>>) attributes {dimension_semantics = [#tpu.dimension_semantics<parallel>], iteration_bounds = array<i64: 2>, scalar_prefetch = 0 : i64, scratch_operands = 0 : i64, tpu.core_type = #tpu.core_type<tc>, window_params = [{transform_indices = @transform_0, window_bounds = array<i64: 16, 64>}, {pipeline_mode = #tpu.pipeline_mode<synchronous>, transform_indices = @transform_1, window_bounds = array<i64: 64, 32>}, {pipeline_mode = #tpu.pipeline_mode<synchronous>, transform_indices = @transform_2, window_bounds = array<i64: 32, 128>}, {pipeline_mode = #tpu.pipeline_mode<synchronous>, transform_indices = @transform_3, window_bounds = array<i64: 128, 32>}, {pipeline_mode = #tpu.pipeline_mode<synchronous>, transform_indices = @transform_4, window_bounds = array<i64: 6, 32>}, {pipeline_mode = #tpu.pipeline_mode<synchronous>, transform_indices = @transform_5, window_bounds = array<i64: 1, 128>}, {transform_indices = @transform_6, window_bounds = array<i64: 16, 32>}]} {
    %c0 = arith.constant 0 : index
    %c0_0 = arith.constant 0 : index
    %0 = vector.load %arg1[%c0, %c0_0] : memref<16x64xf32, #tpu.memory_space<vmem>>, vector<16x64xf32>
    %c0_1 = arith.constant 0 : index
    %c0_2 = arith.constant 0 : index
    %1 = vector.load %arg2[%c0_1, %c0_2] : memref<64x32xf32, #tpu.memory_space<vmem>>, vector<64x32xf32>
    %cst = arith.constant dense<0.000000e+00> : vector<16x32xf32>
    %2 = tpu.matmul %0, %1, %cst {dimension_numbers = #tpu.dot_dimension_numbers<[1], [0], [0], [1], [0, 0, 1, 1], [], []>} : vector<16x64xf32>, vector<64x32xf32>, vector<16x32xf32> -> vector<16x32xf32>
    %c0_3 = arith.constant 0 : index
    %c0_4 = arith.constant 0 : index
    %3 = vector.load %arg5[%c0_3, %c0_4] : memref<6x32xf32, #tpu.memory_space<vmem>>, vector<1x32xf32>
    %4 = vector.broadcast %3 : vector<1x32xf32> to vector<16x32xf32>
    %5 = arith.addf %2, %4 : vector<16x32xf32>
    %cst_5 = arith.constant dense<0.000000e+00> : vector<16xf32>
    %6 = vector.multi_reduction <add>, %5, %cst_5 [1] : vector<16x32xf32> to vector<16xf32>
    %7 = vector.shape_cast %6 : vector<16xf32> to vector<16x1xf32>
    %cst_6 = arith.constant 3.200000e+01 : f32
    %8 = vector.broadcast %cst_6 : f32 to vector<16x1xf32>
    %9 = arith.divf %7, %8 : vector<16x1xf32>
    %10 = vector.broadcast %9 : vector<16x1xf32> to vector<16x32xf32>
    %11 = arith.subf %5, %10 : vector<16x32xf32>
    %12 = arith.mulf %11, %11 : vector<16x32xf32>
    %cst_7 = arith.constant dense<0.000000e+00> : vector<16xf32>
    %13 = vector.multi_reduction <add>, %12, %cst_7 [1] : vector<16x32xf32> to vector<16xf32>
    %14 = vector.shape_cast %13 : vector<16xf32> to vector<16x1xf32>
    %cst_8 = arith.constant 3.200000e+01 : f32
    %15 = vector.broadcast %cst_8 : f32 to vector<16x1xf32>
    %16 = arith.divf %14, %15 : vector<16x1xf32>
    %cst_9 = arith.constant 9.99999974E-6 : f32
    %17 = vector.broadcast %cst_9 : f32 to vector<16x1xf32>
    %18 = arith.addf %16, %17 : vector<16x1xf32>
    %19 = math.rsqrt %18 : vector<16x1xf32>
    %20 = vector.broadcast %19 : vector<16x1xf32> to vector<16x32xf32>
    %21 = arith.mulf %11, %20 : vector<16x32xf32>
    %c1 = arith.constant 1 : index
    %c0_10 = arith.constant 0 : index
    %22 = vector.load %arg5[%c1, %c0_10] : memref<6x32xf32, #tpu.memory_space<vmem>>, vector<1x32xf32>
    %23 = vector.broadcast %22 : vector<1x32xf32> to vector<16x32xf32>
    %24 = arith.mulf %21, %23 : vector<16x32xf32>
    %c2 = arith.constant 2 : index
    %c0_11 = arith.constant 0 : index
    %25 = vector.load %arg5[%c2, %c0_11] : memref<6x32xf32, #tpu.memory_space<vmem>>, vector<1x32xf32>
    %26 = vector.broadcast %25 : vector<1x32xf32> to vector<16x32xf32>
    %27 = arith.addf %24, %26 : vector<16x32xf32>
    %c0_12 = arith.constant 0 : index
    %c0_13 = arith.constant 0 : index
    %28 = vector.load %arg3[%c0_12, %c0_13] : memref<32x128xf32, #tpu.memory_space<vmem>>, vector<32x128xf32>
    %cst_14 = arith.constant dense<0.000000e+00> : vector<16x128xf32>
    %29 = tpu.matmul %27, %28, %cst_14 {dimension_numbers = #tpu.dot_dimension_numbers<[1], [0], [0], [1], [0, 0, 1, 1], [], []>} : vector<16x32xf32>, vector<32x128xf32>, vector<16x128xf32> -> vector<16x128xf32>
    %c0_15 = arith.constant 0 : index
    %c0_16 = arith.constant 0 : index
    %30 = vector.load %arg6[%c0_15, %c0_16] : memref<1x128xf32, #tpu.memory_space<vmem>>, vector<1x128xf32>
    %31 = vector.broadcast %30 : vector<1x128xf32> to vector<16x128xf32>
    %32 = arith.addf %29, %31 : vector<16x128xf32>
    %c0_17 = arith.constant 0 : index
    %c0_18 = arith.constant 0 : index
    %33 = vector.load %arg4[%c0_17, %c0_18] : memref<128x32xf32, #tpu.memory_space<vmem>>, vector<128x32xf32>
    %cst_19 = arith.constant dense<0.000000e+00> : vector<16x32xf32>
    %34 = tpu.matmul %32, %33, %cst_19 {dimension_numbers = #tpu.dot_dimension_numbers<[1], [0], [0], [1], [0, 0, 1, 1], [], []>} : vector<16x128xf32>, vector<128x32xf32>, vector<16x32xf32> -> vector<16x32xf32>
    %c5 = arith.constant 5 : index
    %c0_20 = arith.constant 0 : index
    %35 = vector.load %arg5[%c5, %c0_20] : memref<6x32xf32, #tpu.memory_space<vmem>>, vector<1x32xf32>
    %36 = vector.broadcast %35 : vector<1x32xf32> to vector<16x32xf32>
    %37 = arith.addf %34, %36 : vector<16x32xf32>
    %38 = arith.addf %5, %37 : vector<16x32xf32>
    %cst_21 = arith.constant dense<0.000000e+00> : vector<16xf32>
    %39 = vector.multi_reduction <add>, %38, %cst_21 [1] : vector<16x32xf32> to vector<16xf32>
    %40 = vector.shape_cast %39 : vector<16xf32> to vector<16x1xf32>
    %cst_22 = arith.constant 3.200000e+01 : f32
    %41 = vector.broadcast %cst_22 : f32 to vector<16x1xf32>
    %42 = arith.divf %40, %41 : vector<16x1xf32>
    %43 = vector.broadcast %42 : vector<16x1xf32> to vector<16x32xf32>
    %44 = arith.subf %38, %43 : vector<16x32xf32>
    %45 = arith.mulf %44, %44 : vector<16x32xf32>
    %cst_23 = arith.constant dense<0.000000e+00> : vector<16xf32>
    %46 = vector.multi_reduction <add>, %45, %cst_23 [1] : vector<16x32xf32> to vector<16xf32>
    %47 = vector.shape_cast %46 : vector<16xf32> to vector<16x1xf32>
    %cst_24 = arith.constant 3.200000e+01 : f32
    %48 = vector.broadcast %cst_24 : f32 to vector<16x1xf32>
    %49 = arith.divf %47, %48 : vector<16x1xf32>
    %cst_25 = arith.constant 9.99999974E-6 : f32
    %50 = vector.broadcast %cst_25 : f32 to vector<16x1xf32>
    %51 = arith.addf %49, %50 : vector<16x1xf32>
    %52 = math.rsqrt %51 : vector<16x1xf32>
    %53 = vector.broadcast %52 : vector<16x1xf32> to vector<16x32xf32>
    %54 = arith.mulf %44, %53 : vector<16x32xf32>
    %c3 = arith.constant 3 : index
    %c0_26 = arith.constant 0 : index
    %55 = vector.load %arg5[%c3, %c0_26] : memref<6x32xf32, #tpu.memory_space<vmem>>, vector<1x32xf32>
    %56 = vector.broadcast %55 : vector<1x32xf32> to vector<16x32xf32>
    %57 = arith.mulf %54, %56 : vector<16x32xf32>
    %c4 = arith.constant 4 : index
    %c0_27 = arith.constant 0 : index
    %58 = vector.load %arg5[%c4, %c0_27] : memref<6x32xf32, #tpu.memory_space<vmem>>, vector<1x32xf32>
    %59 = vector.broadcast %58 : vector<1x32xf32> to vector<16x32xf32>
    %60 = arith.addf %57, %59 : vector<16x32xf32>
    %c0_28 = arith.constant 0 : index
    %c0_29 = arith.constant 0 : index
    %61 = vector.load %arg7[%c0_28, %c0_29] : memref<16x32xf32, #tpu.memory_space<vmem>>, vector<16x32xf32>
    tpu.vector_store %arg7[%c0_28, %c0_29], %60 {strides = array<i32>} : memref<16x32xf32, #tpu.memory_space<vmem>>, vector<16x32xf32>,
    return
  }
  func.func @transform_0(%arg0: i32) -> (i32, i32) {
    %c0_i32 = arith.constant 0 : i32
    %c0_i32_0 = arith.constant 0 : i32
    return %arg0, %c0_i32 : i32, i32
  }
  func.func @transform_1(%arg0: i32) -> (i32, i32) {
    %c0_i32 = arith.constant 0 : i32
    %c0_i32_0 = arith.constant 0 : i32
    %c0_i32_1 = arith.constant 0 : i32
    return %c0_i32, %c0_i32_0 : i32, i32
  }
  func.func @transform_2(%arg0: i32) -> (i32, i32) {
    %c0_i32 = arith.constant 0 : i32
    %c0_i32_0 = arith.constant 0 : i32
    %c0_i32_1 = arith.constant 0 : i32
    return %c0_i32, %c0_i32_0 : i32, i32
  }
  func.func @transform_3(%arg0: i32) -> (i32, i32) {
    %c0_i32 = arith.constant 0 : i32
    %c0_i32_0 = arith.constant 0 : i32
    %c0_i32_1 = arith.constant 0 : i32
    return %c0_i32, %c0_i32_0 : i32, i32
  }
  func.func @transform_4(%arg0: i32) -> (i32, i32) {
    %c0_i32 = arith.constant 0 : i32
    %c0_i32_0 = arith.constant 0 : i32
    %c0_i32_1 = arith.constant 0 : i32
    return %c0_i32, %c0_i32_0 : i32, i32
  }
  func.func @transform_5(%arg0: i32) -> (i32, i32) {
    %c0_i32 = arith.constant 0 : i32
    %c0_i32_0 = arith.constant 0 : i32
    %c0_i32_1 = arith.constant 0 : i32
    return %c0_i32, %c0_i32_0 : i32, i32
  }
  func.func @transform_6(%arg0: i32) -> (i32, i32) {
    %c0_i32 = arith.constant 0 : i32
    %c0_i32_0 = arith.constant 0 : i32
    return %arg0, %c0_i32 : i32, i32
  }
}

module attributes {stable_mosaic.version = 11 : i64} {
  func.func @kernel(%arg0: i32, %arg1: memref<16x64xf32, #tpu.memory_space<vmem>>, %arg2: memref<64x32xf32, #tpu.memory_space<vmem>>, %arg3: memref<32x128xf32, #tpu.memory_space<vmem>>, %arg4: memref<128x32xf32, #tpu.memory_space<vmem>>, %arg5: memref<6x32xf32, #tpu.memory_space<vmem>>, %arg6: memref<1x128xf32, #tpu.memory_space<vmem>>, %arg7: memref<32x4xf32, #tpu.memory_space<vmem>>, %arg8: memref<1x4xf32, #tpu.memory_space<vmem>>, %arg9: memref<16x4xf32, #tpu.memory_space<vmem>>) attributes {dimension_semantics = [#tpu.dimension_semantics<parallel>], iteration_bounds = array<i64: 2>, scalar_prefetch = 0 : i64, scratch_operands = 0 : i64, tpu.core_type = #tpu.core_type<tc>, window_params = [{transform_indices = @transform_0, window_bounds = array<i64: 16, 64>}, {pipeline_mode = #tpu.pipeline_mode<synchronous>, transform_indices = @transform_1, window_bounds = array<i64: 64, 32>}, {pipeline_mode = #tpu.pipeline_mode<synchronous>, transform_indices = @transform_2, window_bounds = array<i64: 32, 128>}, {pipeline_mode = #tpu.pipeline_mode<synchronous>, transform_indices = @transform_3, window_bounds = array<i64: 128, 32>}, {pipeline_mode = #tpu.pipeline_mode<synchronous>, transform_indices = @transform_4, window_bounds = array<i64: 6, 32>}, {pipeline_mode = #tpu.pipeline_mode<synchronous>, transform_indices = @transform_5, window_bounds = array<i64: 1, 128>}, {pipeline_mode = #tpu.pipeline_mode<synchronous>, transform_indices = @transform_6, window_bounds = array<i64: 32, 4>}, {pipeline_mode = #tpu.pipeline_mode<synchronous>, transform_indices = @transform_7, window_bounds = array<i64: 1, 4>}, {transform_indices = @transform_8, window_bounds = array<i64: 16, 4>}]} {
    %c0 = arith.constant 0 : index
    %c0_0 = arith.constant 0 : index
    %0 = vector.load %arg1[%c0, %c0_0] : memref<16x64xf32, #tpu.memory_space<vmem>>, vector<16x64xf32>
    %c0_1 = arith.constant 0 : index
    %c0_2 = arith.constant 0 : index
    %1 = vector.load %arg2[%c0_1, %c0_2] : memref<64x32xf32, #tpu.memory_space<vmem>>, vector<64x32xf32>
    %cst = arith.constant dense<0.000000e+00> : vector<16x32xf32>
    %2 = tpu.matmul %0, %1, %cst {dimension_numbers = #tpu.dot_dimension_numbers<[1], [0], [0], [1], [0, 0, 1, 1], [], []>} : vector<16x64xf32>, vector<64x32xf32>, vector<16x32xf32> -> vector<16x32xf32>
    %c0_3 = arith.constant 0 : index
    %c0_4 = arith.constant 0 : index
    %3 = vector.load %arg5[%c0_3, %c0_4] : memref<6x32xf32, #tpu.memory_space<vmem>>, vector<1x32xf32>
    %4 = vector.broadcast %3 : vector<1x32xf32> to vector<16x32xf32>
    %5 = arith.addf %2, %4 : vector<16x32xf32>
    %cst_5 = arith.constant dense<0.000000e+00> : vector<16xf32>
    %6 = vector.multi_reduction <add>, %5, %cst_5 [1] : vector<16x32xf32> to vector<16xf32>
    %7 = vector.shape_cast %6 : vector<16xf32> to vector<16x1xf32>
    %cst_6 = arith.constant 3.200000e+01 : f32
    %8 = vector.broadcast %cst_6 : f32 to vector<16x1xf32>
    %9 = arith.divf %7, %8 : vector<16x1xf32>
    %10 = vector.broadcast %9 : vector<16x1xf32> to vector<16x32xf32>
    %11 = arith.subf %5, %10 : vector<16x32xf32>
    %12 = arith.mulf %11, %11 : vector<16x32xf32>
    %cst_7 = arith.constant dense<0.000000e+00> : vector<16xf32>
    %13 = vector.multi_reduction <add>, %12, %cst_7 [1] : vector<16x32xf32> to vector<16xf32>
    %14 = vector.shape_cast %13 : vector<16xf32> to vector<16x1xf32>
    %cst_8 = arith.constant 3.200000e+01 : f32
    %15 = vector.broadcast %cst_8 : f32 to vector<16x1xf32>
    %16 = arith.divf %14, %15 : vector<16x1xf32>
    %cst_9 = arith.constant 9.99999974E-6 : f32
    %17 = vector.broadcast %cst_9 : f32 to vector<16x1xf32>
    %18 = arith.addf %16, %17 : vector<16x1xf32>
    %19 = math.rsqrt %18 : vector<16x1xf32>
    %20 = vector.broadcast %19 : vector<16x1xf32> to vector<16x32xf32>
    %21 = arith.mulf %11, %20 : vector<16x32xf32>
    %c1 = arith.constant 1 : index
    %c0_10 = arith.constant 0 : index
    %22 = vector.load %arg5[%c1, %c0_10] : memref<6x32xf32, #tpu.memory_space<vmem>>, vector<1x32xf32>
    %23 = vector.broadcast %22 : vector<1x32xf32> to vector<16x32xf32>
    %24 = arith.mulf %21, %23 : vector<16x32xf32>
    %c2 = arith.constant 2 : index
    %c0_11 = arith.constant 0 : index
    %25 = vector.load %arg5[%c2, %c0_11] : memref<6x32xf32, #tpu.memory_space<vmem>>, vector<1x32xf32>
    %26 = vector.broadcast %25 : vector<1x32xf32> to vector<16x32xf32>
    %27 = arith.addf %24, %26 : vector<16x32xf32>
    %c0_12 = arith.constant 0 : index
    %c0_13 = arith.constant 0 : index
    %28 = vector.load %arg3[%c0_12, %c0_13] : memref<32x128xf32, #tpu.memory_space<vmem>>, vector<32x128xf32>
    %cst_14 = arith.constant dense<0.000000e+00> : vector<16x128xf32>
    %29 = tpu.matmul %27, %28, %cst_14 {dimension_numbers = #tpu.dot_dimension_numbers<[1], [0], [0], [1], [0, 0, 1, 1], [], []>} : vector<16x32xf32>, vector<32x128xf32>, vector<16x128xf32> -> vector<16x128xf32>
    %c0_15 = arith.constant 0 : index
    %c0_16 = arith.constant 0 : index
    %30 = vector.load %arg6[%c0_15, %c0_16] : memref<1x128xf32, #tpu.memory_space<vmem>>, vector<1x128xf32>
    %31 = vector.broadcast %30 : vector<1x128xf32> to vector<16x128xf32>
    %32 = arith.addf %29, %31 : vector<16x128xf32>
    %c0_17 = arith.constant 0 : index
    %c0_18 = arith.constant 0 : index
    %33 = vector.load %arg4[%c0_17, %c0_18] : memref<128x32xf32, #tpu.memory_space<vmem>>, vector<128x32xf32>
    %cst_19 = arith.constant dense<0.000000e+00> : vector<16x32xf32>
    %34 = tpu.matmul %32, %33, %cst_19 {dimension_numbers = #tpu.dot_dimension_numbers<[1], [0], [0], [1], [0, 0, 1, 1], [], []>} : vector<16x128xf32>, vector<128x32xf32>, vector<16x32xf32> -> vector<16x32xf32>
    %c5 = arith.constant 5 : index
    %c0_20 = arith.constant 0 : index
    %35 = vector.load %arg5[%c5, %c0_20] : memref<6x32xf32, #tpu.memory_space<vmem>>, vector<1x32xf32>
    %36 = vector.broadcast %35 : vector<1x32xf32> to vector<16x32xf32>
    %37 = arith.addf %34, %36 : vector<16x32xf32>
    %38 = arith.addf %5, %37 : vector<16x32xf32>
    %cst_21 = arith.constant dense<0.000000e+00> : vector<16xf32>
    %39 = vector.multi_reduction <add>, %38, %cst_21 [1] : vector<16x32xf32> to vector<16xf32>
    %40 = vector.shape_cast %39 : vector<16xf32> to vector<16x1xf32>
    %cst_22 = arith.constant 3.200000e+01 : f32
    %41 = vector.broadcast %cst_22 : f32 to vector<16x1xf32>
    %42 = arith.divf %40, %41 : vector<16x1xf32>
    %43 = vector.broadcast %42 : vector<16x1xf32> to vector<16x32xf32>
    %44 = arith.subf %38, %43 : vector<16x32xf32>
    %45 = arith.mulf %44, %44 : vector<16x32xf32>
    %cst_23 = arith.constant dense<0.000000e+00> : vector<16xf32>
    %46 = vector.multi_reduction <add>, %45, %cst_23 [1] : vector<16x32xf32> to vector<16xf32>
    %47 = vector.shape_cast %46 : vector<16xf32> to vector<16x1xf32>
    %cst_24 = arith.constant 3.200000e+01 : f32
    %48 = vector.broadcast %cst_24 : f32 to vector<16x1xf32>
    %49 = arith.divf %47, %48 : vector<16x1xf32>
    %cst_25 = arith.constant 9.99999974E-6 : f32
    %50 = vector.broadcast %cst_25 : f32 to vector<16x1xf32>
    %51 = arith.addf %49, %50 : vector<16x1xf32>
    %52 = math.rsqrt %51 : vector<16x1xf32>
    %53 = vector.broadcast %52 : vector<16x1xf32> to vector<16x32xf32>
    %54 = arith.mulf %44, %53 : vector<16x32xf32>
    %c3 = arith.constant 3 : index
    %c0_26 = arith.constant 0 : index
    %55 = vector.load %arg5[%c3, %c0_26] : memref<6x32xf32, #tpu.memory_space<vmem>>, vector<1x32xf32>
    %56 = vector.broadcast %55 : vector<1x32xf32> to vector<16x32xf32>
    %57 = arith.mulf %54, %56 : vector<16x32xf32>
    %c4 = arith.constant 4 : index
    %c0_27 = arith.constant 0 : index
    %58 = vector.load %arg5[%c4, %c0_27] : memref<6x32xf32, #tpu.memory_space<vmem>>, vector<1x32xf32>
    %59 = vector.broadcast %58 : vector<1x32xf32> to vector<16x32xf32>
    %60 = arith.addf %57, %59 : vector<16x32xf32>
    %c0_28 = arith.constant 0 : index
    %c0_29 = arith.constant 0 : index
    %61 = vector.load %arg7[%c0_28, %c0_29] : memref<32x4xf32, #tpu.memory_space<vmem>>, vector<32x4xf32>
    %cst_30 = arith.constant dense<0.000000e+00> : vector<16x4xf32>
    %62 = tpu.matmul %60, %61, %cst_30 {dimension_numbers = #tpu.dot_dimension_numbers<[1], [0], [0], [1], [0, 0, 1, 1], [], []>} : vector<16x32xf32>, vector<32x4xf32>, vector<16x4xf32> -> vector<16x4xf32>
    %c0_31 = arith.constant 0 : index
    %c0_32 = arith.constant 0 : index
    %63 = vector.load %arg8[%c0_31, %c0_32] : memref<1x4xf32, #tpu.memory_space<vmem>>, vector<1x4xf32>
    %64 = vector.broadcast %63 : vector<1x4xf32> to vector<16x4xf32>
    %65 = arith.addf %62, %64 : vector<16x4xf32>
    %c0_33 = arith.constant 0 : index
    %c0_34 = arith.constant 0 : index
    %66 = vector.load %arg9[%c0_33, %c0_34] : memref<16x4xf32, #tpu.memory_space<vmem>>, vector<16x4xf32>
    tpu.vector_store %arg9[%c0_33, %c0_34], %65 {strides = array<i32>} : memref<16x4xf32, #tpu.memory_space<vmem>>, vector<16x4xf32>,
    return
  }
  func.func @transform_0(%arg0: i32) -> (i32, i32) {
    %c0_i32 = arith.constant 0 : i32
    %c0_i32_0 = arith.constant 0 : i32
    return %arg0, %c0_i32 : i32, i32
  }
  func.func @transform_1(%arg0: i32) -> (i32, i32) {
    %c0_i32 = arith.constant 0 : i32
    %c0_i32_0 = arith.constant 0 : i32
    %c0_i32_1 = arith.constant 0 : i32
    return %c0_i32, %c0_i32_0 : i32, i32
  }
  func.func @transform_2(%arg0: i32) -> (i32, i32) {
    %c0_i32 = arith.constant 0 : i32
    %c0_i32_0 = arith.constant 0 : i32
    %c0_i32_1 = arith.constant 0 : i32
    return %c0_i32, %c0_i32_0 : i32, i32
  }
  func.func @transform_3(%arg0: i32) -> (i32, i32) {
    %c0_i32 = arith.constant 0 : i32
    %c0_i32_0 = arith.constant 0 : i32
    %c0_i32_1 = arith.constant 0 : i32
    return %c0_i32, %c0_i32_0 : i32, i32
  }
  func.func @transform_4(%arg0: i32) -> (i32, i32) {
    %c0_i32 = arith.constant 0 : i32
    %c0_i32_0 = arith.constant 0 : i32
    %c0_i32_1 = arith.constant 0 : i32
    return %c0_i32, %c0_i32_0 : i32, i32
  }
  func.func @transform_5(%arg0: i32) -> (i32, i32) {
    %c0_i32 = arith.constant 0 : i32
    %c0_i32_0 = arith.constant 0 : i32
    %c0_i32_1 = arith.constant 0 : i32
    return %c0_i32, %c0_i32_0 : i32, i32
  }
  func.func @transform_6(%arg0: i32) -> (i32, i32) {
    %c0_i32 = arith.constant 0 : i32
    %c0_i32_0 = arith.constant 0 : i32
    %c0_i32_1 = arith.constant 0 : i32
    return %c0_i32, %c0_i32_0 : i32, i32
  }
  func.func @transform_7(%arg0: i32) -> (i32, i32) {
    %c0_i32 = arith.constant 0 : i32
    %c0_i32_0 = arith.constant 0 : i32
    %c0_i32_1 = arith.constant 0 : i32
    return %c0_i32, %c0_i32_0 : i32, i32
  }
  func.func @transform_8(%arg0: i32) -> (i32, i32) {
    %c0_i32 = arith.constant 0 : i32
    %c0_i32_0 = arith.constant 0 : i32
    return %arg0, %c0_i32 : i32, i32
  }
}

</mosaic_0001>

<bundles_post_ra>
// kernel: backbone_micn_forward.8
= control target key start
LH: loop header
LB: loop body
LE: loop exit
PB: predicated region body
PF: predicated region fallthrough
CT: control target
= control target key end

     0   :  { %s361_s9 = smov 0   ;;  %s398_s0 = inlined_call_operand.vmem [shape: f32[2,16,32], index: 0, kind: input, shape index: {}]   ;;  %s399_s1 = inlined_call_operand.vmem [shape: f32[2,16,32], index: 1, kind: output, shape index: {0}]   ;;  %s400_s2 = inlined_call_operand.vmem [shape: f32[2,16,32], index: 2, kind: output, shape index: {1}]  }
   0x1 LB: > { %s314_s10 = sadd.s32 4294967295, %s344_s9   ;;  %p318_p0 = scmp.ge.s32.totalorder %s344_s9, 1  ;;  %s344_s9 = sphi %s361_s9, %s13_s9  }
   0x2   : > { %p115_p1 = scmp.lt.s32.totalorder %s344_s9, 3 }
   0x4   : > { %p116_p2 = pnand %p318_p0, %p115_p1 }
   0x5   : > { %p142_p3 = scmp.lt.s32.totalorder (!%p116_p2), %s314_s10, 1  ;;  %v188_v0 = vlaneseq (!%p116_p2)  ;;  %vm161_vm0 = vcmask (!%p116_p2), 1040384   ;;  %vm172_vm1 = vcmask (!%p116_p2), 1046528   ;;  %vm192_vm2 = vcmask (!%p116_p2), 1041408  }
   0x6   : > { %119 = sbr.rel (%p116_p2) target bundleno = 34 (0x22), region = 24  ;;  %vm211_vm3 = vcmask (!%p116_p2), 1045504   ;;  %vm185_vm4 = vcmask (!%p116_p2), 261120  }
   0x7   : > { %v189_v1 = vshrl.u32 (!%p116_p2), %v188_v0, 7 }
   0x9   : > { %v190_v2 = vsub.s32 (!%p116_p2), 0, %v189_v1  ;;  %v209_v12 = vsub.s32 (!%p116_p2), 7, %v189_v1 }
   0xd   : > { %s402_s10 = smov (!%p142_p3, %s314_s10), 1 }
   0xe   : > { %s369_s11 = sshll.u32 %s402_s10, 4 }
   0xf   : > { %s146_s14 = scalar_lea.vmem %s398_s0, %s369_s11  ;;  %s151_s17 = scalar_lea.vmem %s399_s1, %s369_s11 }
  0x10   : > { %v157_v3 = vld [vmem:[%s146_s14] sm:$0xff]  ;;  %v158_v4 = vld [vmem:[%s146_s14 + $0x8] sm:$0xff]  ;;  %s156_s20 = scalar_lea.vmem %s400_s2, %s369_s11 }
  0x11   : > { %v162_v5 = vrot.slane %v157_v3, 7  ;;  %v173_v6 = vrot.slane %v157_v3, 1  ;;  %v174_v7 = vrot.slane %v158_v4, 1  ;;  %v191_v8 = vrot.slane %v157_v3, %v190_v2 }
  0x12   : > { %v193_v9 = vrot.slane %v157_v3, 6  ;;  %v163_v10 = vrot.slane %v158_v4, 7  ;;  %v194_v11 = vrot.slane %v158_v4, 6  ;;  %v212_v14 = vrot.slane %v157_v3, 2 }
  0x13   : > { %v167_v13 = vsel %vm161_vm0, %v157_v3, %v162_v5  ;;  %v213_v15 = vrot.slane %v158_v4, 2  ;;  %v175_v20 = vsel %vm172_vm1, %v173_v6, %v174_v7  ;;  %v178_v25 = vsel %vm172_vm1, %v174_v7, %v158_v4 }
  0x14   : > { %v170_v16 = vadd.f32 %v167_v13, %v157_v3  ;;  %v198_v17 = vsel %vm192_vm2, %v191_v8, %v193_v9  ;;  %v164_v18 = vsel %vm161_vm0, %v162_v5, %v163_v10  ;;  %v195_v19 = vsel %vm192_vm2, %v193_v9, %v194_v11 }
  0x15   : > { %v201_v21 = vadd.f32 %v198_v17, %v167_v13  ;;  %v171_v22 = vadd.f32 %v164_v18, %v158_v4  ;;  %v202_v23 = vadd.f32 %v195_v19, %v164_v18  ;;  %v210_v26 = vrot.slane %v158_v4, %v209_v12 }
  0x16   : > { %v179_v24 = vadd.f32 %v175_v20, %v170_v16  ;;  %v214_v31 = vsel %vm211_vm3, %v212_v14, %v213_v15 }
  0x17   : > { %v180_v27 = vadd.f32 %v178_v25, %v171_v22  ;;  %v203_v28 = vadd.f32 %v201_v21, %v157_v3  ;;  %v204_v29 = vadd.f32 %v202_v23, %v158_v4  ;;  %v217_v32 = vsel %vm211_vm3, %v213_v15, %v210_v26 }
  0x18   : > { %v181_v30 = vmul.f32 0.33333334, %v179_v24 }
  0x19   : > { %v182_v33 = vmul.f32 0.33333334, %v180_v27  ;;  %v205_v34 = vadd.f32 %v203_v28, %v175_v20  ;;  %v206_v35 = vadd.f32 %v204_v29, %v178_v25 }
  0x1a   : > { %v183_v36 = vsub.f32 %v157_v3, %v181_v30 }
  0x1b   : > { %v184_v37 = vsub.f32 %v158_v4, %v182_v33  ;;  %v218_v38 = vadd.f32 %v214_v31, %v205_v34  ;;  %v219_v39 = vadd.f32 %v217_v32, %v206_v35 }
  0x1c   : > { %186 = vst.msk [vmem:[%s151_s17] sm:$0xff] %vm185_vm4, %v183_v36 }
  0x1d   : > { %187 = vst.msk [vmem:[%s151_s17 + $0x8] sm:$0xff] %vm185_vm4, %v184_v37  ;;  %v220_v40 = vmul.f32 0.2, %v218_v38  ;;  %v221_v41 = vmul.f32 0.2, %v219_v39 }
  0x1f   : > { %v222_v42 = vsub.f32 %v157_v3, %v220_v40  ;;  %v223_v43 = vsub.f32 %v158_v4, %v221_v41 }
  0x21   : > { %224 = vst.msk [vmem:[%s156_s20] sm:$0xff] %vm185_vm4, %v222_v42  ;;  %225 = vst.msk [vmem:[%s156_s20 + $0x8] sm:$0xff] %vm185_vm4, %v223_v43 }
  0x22 PF: > { %s13_s9 = sadd.s32 1, %s344_s9  }
  0x23   : > { %p10_p4 = scmp.ge.s32.totalorder %s13_s9, 4  }
  0x25   :  { %12 = sbr.rel (!%p10_p4) target bundleno = 1 (0x1), region = 66 }

// kernel: backbone_micn_forward.11
= control target key start
LH: loop header
LB: loop body
LE: loop exit
PB: predicated region body
PF: predicated region fallthrough
CT: control target
= control target key end

     0   :  { %s918_s21 = smov 0   ;;  %s1079_s0 = inlined_call_operand.vmem [shape: f32[32,64], index: 0, kind: input, shape index: {}]   ;;  %s1080_s1 = inlined_call_operand.vmem [shape: f32[64,32], index: 1, kind: input, shape index: {}]   ;;  %s1081_s2 = inlined_call_operand.vmem [shape: f32[32,128], index: 2, kind: input, shape index: {}]   ;;  %s1082_s3 = inlined_call_operand.vmem [shape: f32[128,32], index: 3, kind: input, shape index: {}]   ;;  %s1083_s4 = inlined_call_operand.vmem [shape: f32[6,32], index: 4, kind: input, shape index: {}]   ;;  %s1084_s5 = inlined_call_operand.vmem [shape: f32[1,128], index: 5, kind: input, shape index: {}]   ;;  %s1085_s6 = inlined_call_operand.vmem [shape: f32[32,32], index: 6, kind: output, shape index: {}]  }
   0x1 LB: > { %s682_s22 = sadd.s32 4294967295, %s881_s21   ;;  %p686_p0 = scmp.ge.s32.totalorder %s881_s21, 1  ;;  %s881_s21 = sphi %s918_s21, %s16_s21  }
   0x2   : > { %p213_p1 = scmp.lt.s32.totalorder %s881_s21, 3 }
   0x4   : > { %p214_p2 = pnand %p686_p0, %p213_p1 }
   0x5   : > { %v257_v0 = vld [vmem:[%s1080_s1] sm:$0xff] (!%p214_p2)  ;;  %v258_v1 = vld [vmem:[%s1080_s1 + $0x8] sm:$0xff] (!%p214_p2)  ;;  %v259_v2 = vld [vmem:[%s1080_s1 + $0x10] sm:$0xff] (!%p214_p2)  ;;  %s687_s29 = sshll.u32 (!%p214_p2), %s682_s22, 1  ;;  %vm270_vm0 = vcmask (!%p214_p2), 523264   ;;  %vm352_vm1 = vcmask (!%p214_p2), 261120  }
   0x6   : > { %217 = sbr.rel (%p214_p2) target bundleno = 1303 (0x517), region = 44  ;;  %v803_v3 = vpack.c.bf16 (!%p214_p2), %v258_v1, %v257_v0  ;;  %v260_v4 = vld [vmem:[%s1080_s1 + $0x18] sm:$0xff] (!%p214_p2)  ;;  %p244_p3 = scmp.lt.s32.totalorder (!%p214_p2), %s687_s29, 3  ;;  %v261_v6 = vld [vmem:[%s1080_s1 + $0x20] sm:$0xff] (!%p214_p2)  ;;  %v262_v7 = vld [vmem:[%s1080_s1 + $0x28] sm:$0xff] (!%p214_p2) }
   0x7   : > { %v807_v5 = vpack.c.bf16 (!%p214_p2), %v260_v4, %v259_v2  ;;  %v811_v8 = vpack.c.bf16 (!%p214_p2), %v262_v7, %v261_v6  ;;  %v263_v9 = vld [vmem:[%s1080_s1 + $0x30] sm:$0xff] (!%p214_p2)  ;;  %v264_v10 = vld [vmem:[%s1080_s1 + $0x38] sm:$0xff] (!%p214_p2)  ;;  %v691_v14 = vld [vmem:[%s1083_s4] ss:$0 sm:$0xff] (!%p214_p2) }
   0x8   : > { %804 = vmatprep.subr.bf16.mxu0 (!%p214_p2), %v803_v3  ;;  %v815_v12 = vpack.c.bf16 (!%p214_p2), %v264_v10, %v263_v9  ;;  %v394_v31 = vld [vmem:[%s1081_s2] sm:$0xff] (!%p214_p2)  ;;  %v395_v32 = vld [vmem:[%s1081_s2 + $0x8] sm:$0xff] (!%p214_p2)  ;;  %v396_v34 = vld [vmem:[%s1081_s2 + $0x10] sm:$0xff] (!%p214_p2) }
   0x9   : > { %806 = vmatpush3.bf16.msra.mxu0 (!%p214_p2), %v803_v3  ;;  %v819_v33 = vpack.c.bf16 (!%p214_p2), %v395_v32, %v394_v31  ;;  %v397_v35 = vld [vmem:[%s1081_s2 + $0x18] sm:$0xff] (!%p214_p2)  ;;  %v486_v37 = vld [vmem:[%s1082_s3] sm:$0xff] (!%p214_p2)  ;;  %v487_v38 = vld [vmem:[%s1082_s3 + $0x8] sm:$0xff] (!%p214_p2) }
   0xa   : > { %808 = vmatprep.subr.bf16.mxu0 (!%p214_p2), %v807_v5  ;;  %v823_v36 = vpack.c.bf16 (!%p214_p2), %v397_v35, %v396_v34  ;;  %v488_v39 = vld [vmem:[%s1082_s3 + $0x10] sm:$0xff] (!%p214_p2)  ;;  %v827_v40 = vpack.c.bf16 (!%p214_p2), %v487_v38, %v486_v37  ;;  %v489_v41 = vld [vmem:[%s1082_s3 + $0x18] sm:$0xff] (!%p214_p2)  ;;  %v490_v43 = vld [vmem:[%s1082_s3 + $0x20] sm:$0xff] (!%p214_p2) }
   0xb   : > { %v831_v42 = vpack.c.bf16 (!%p214_p2), %v489_v41, %v488_v39  ;;  %v491_v44 = vld [vmem:[%s1082_s3 + $0x28] sm:$0xff] (!%p214_p2)  ;;  %v492_v46 = vld [vmem:[%s1082_s3 + $0x30] sm:$0xff] (!%p214_p2)  ;;  %v493_v47 = vld [vmem:[%s1082_s3 + $0x38] sm:$0xff] (!%p214_p2) }
   0xc   : > { %828 = vmatprep.subr.bf16.mxu1 (!%p214_p2), %v827_v40  ;;  %v835_v45 = vpack.c.bf16 (!%p214_p2), %v491_v44, %v490_v43  ;;  %v839_v48 = vpack.c.bf16 (!%p214_p2), %v493_v47, %v492_v46  ;;  %v494_v49 = vld [vmem:[%s1082_s3 + $0x40] sm:$0xff] (!%p214_p2)  ;;  %v495_v50 = vld [vmem:[%s1082_s3 + $0x48] sm:$0xff] (!%p214_p2)  ;;  %v496_v52 = vld [vmem:[%s1082_s3 + $0x50] sm:$0xff] (!%p214_p2) }
   0xd   : > { %s1087_s29 = smov (!%p244_p3, %s687_s29), 3  ;;  %810 = vmatpush3.bf16.msra.mxu0 %v807_v5  ;;  %830 = vmatpush3.bf16.msra.mxu1 %v827_v40  ;;  %v843_v51 = vpack.c.bf16 %v495_v50, %v494_v49  ;;  %v497_v53 = vld [vmem:[%s1082_s3 + $0x58] sm:$0xff]  ;;  %v498_v55 = vld [vmem:[%s1082_s3 + $0x60] sm:$0xff]  ;;  %v499_v56 = vld [vmem:[%s1082_s3 + $0x68] sm:$0xff] }
   0xe   : > { %s688_s12 = sshll.u32 %s1087_s29, 3  ;;  %812 = vmatprep.subr.bf16.mxu0 %v811_v8  ;;  %832 = vmatprep.subr.bf16.mxu1 %v831_v42  ;;  %v847_v54 = vpack.c.bf16 %v497_v53, %v496_v52  ;;  %v851_v57 = vpack.c.bf16 %v499_v56, %v498_v55  ;;  %v694_v1 = vld [vmem:[%s1083_s4 + $0x1] ss:$0 sm:$0xff]  ;;  %v695_v3 = vld [vmem:[%s1083_s4 + $0x2] ss:$0 sm:$0xff]  ;;  %v500_v10 = vld [vmem:[%s1082_s3 + $0x70] sm:$0xff] }
   0xf   : > { %s247_s19 = scalar_lea.vmem %s1079_s0, %s688_s12  ;;  %v700_v44 = vld [vmem:[%s1083_s4 + $0x3] ss:$0 sm:$0xff]  ;;  %s253_s13 = scalar_lea.vmem %s1085_s6, %s688_s12 }
  0x10   : > { %v255_v11 = vld [vmem:[%s247_s19] sm:$0xff]  ;;  %v256_v13 = vld [vmem:[%s247_s19 + $0x8] sm:$0xff] }
  0x11   : > { %754 = vmatprep.mubr.msk.f32.mxu0 %vm270_vm0, %v255_v11  ;;  %814 = vmatpush3.bf16.msra.mxu0 %v811_v8  ;;  %v501_v11 = vld [vmem:[%s1082_s3 + $0x78] sm:$0xff] }
  0x12   : > { %816 = vmatprep.subr.bf16.mxu0 %v815_v12  ;;  %834 = vmatpush3.bf16.msra.mxu1 %v831_v42 }
  0x13   : > { %836 = vmatprep.subr.bf16.mxu1 %v835_v45 }
  0x15   : > { %818 = vmatpush3.bf16.msra.mxu0 %v815_v12  ;;  %v855_v12 = vpack.c.bf16 %v501_v11, %v500_v10 }
  0x16   : > { %820 = vmatprep.subr.bf16.mxu0 %v819_v33  ;;  %838 = vmatpush3.bf16.msra.mxu1 %v835_v45 }
  0x17   : > { %840 = vmatprep.subr.bf16.mxu1 %v839_v48 }
  0x18   : > { %755 = vmatmul.mubr.msk.f32.vlgmr.msra.gmra.mrb[0].mxu0 %vm270_vm0, %v256_v13  ;;  %v696_v13 = vld [vmem:[%s1084_s5] ss:$0 sm:$0xff] }
  0x19   : > { %822 = vmatpush3.bf16.msra.mxu0 %v819_v33 }
  0x1a   : > { %824 = vmatprep.subr.bf16.mxu0 %v823_v36  ;;  %842 = vmatpush3.bf16.msra.mxu1 %v839_v48  ;;  %v701_v48 = vld [vmem:[%s1083_s4 + $0x4] ss:$0 sm:$0xff] }
  0x1b   : > { %844 = vmatprep.subr.bf16.mxu1 %v843_v51 }
  0x1d   : > { %826 = vmatpush3.bf16.msra.mxu0 %v823_v36 }
  0x1e   : > { %846 = vmatpush3.bf16.msra.mxu1 %v843_v51 }
  0x1f   : > { %848 = vmatprep.subr.bf16.mxu1 %v847_v54 }
  0x22   : > { %850 = vmatpush3.bf16.msra.mxu1 %v847_v54 }
  0x23   : > { %852 = vmatprep.subr.bf16.mxu1 %v851_v57 }
  0x26   : > { %854 = vmatpush3.bf16.msra.mxu1 %v851_v57 }
  0x27   : > { %856 = vmatprep.subr.bf16.mxu1 %v855_v12 }
  0x2a   : > { %858 = vmatpush3.bf16.msra.mxu1 %v855_v12 }
  0xeb   : > { %v756_v15 = vpop.f32.mrb[0].mxu0 }
  0xec   : > { %v343_v16 = vpop.f32.mrb[1].mxu0  ;;  %v963_v18 = vadd.f32 %v756_v15, %v691_v14 }
  0xed   : > { %v961_v17 = vadd.f32 %v691_v14, %v343_v16 }
  0xee   : > { %v356_v20 = vsel %vm352_vm1, %v963_v18, 0.0 }
  0xef   : > { %v353_v19 = vsel %vm352_vm1, %v961_v17, 0.0 }
  0xf0   : > { %354 = vadd.xlane.f32.xlu0 %v353_v19 }
  0xf4   : > { %357 = vadd.xlane.f32.xlu0 %v356_v20  ;;  %v699_v20 = vld [vmem:[%s1083_s4 + $0x5] ss:$0 sm:$0xff] }
 0x17d   : > { %v355_v21 = vpop.xlane.xlu0 %354 }
 0x17e   : > { %v360_v22 = vmul.f32 0.03125, %v355_v21 }
 0x180   : > { %v970_v23 = vsub.f32 %v961_v17, %v360_v22 }
 0x181   : > { %v358_v24 = vpop.xlane.xlu0 %357 }
 0x182   : > { %v361_v25 = vmul.f32 0.03125, %v358_v24  ;;  %v364_v26 = vmul.f32 %v970_v23, %v970_v23 }
 0x184   : > { %v975_v27 = vsub.f32 %v963_v18, %v361_v25  ;;  %v366_v28 = vsel %vm352_vm1, %v364_v26, 0.0 }
 0x185   : > { %367 = vadd.xlane.f32.xlu1 %v366_v28 }
 0x186   : > { %v365_v29 = vmul.f32 %v975_v27, %v975_v27 }
 0x188   : > { %v369_v30 = vsel %vm352_vm1, %v365_v29, 0.0 }
 0x189   : > { %370 = vadd.xlane.f32.xlu1 %v369_v30 }
 0x212   : > { %v368_v58 = vpop.xlane.xlu1 %367 }
 0x213   : > { %v372_v59 = vmul.f32 0.03125, %v368_v58 }
 0x215   : > { %v374_v60 = vadd.f32 1e-05, %v372_v59 }
 0x216   : > { %v371_v61 = vpop.xlane.xlu1 %370 }
 0x217   : > { %867 = vrsqrt.f32 %v374_v60  ;;  %v373_v62 = vmul.f32 0.03125, %v371_v61 }
 0x219   : > { %v375_v63 = vadd.f32 1e-05, %v373_v62 }
 0x21b   : > { %869 = vrsqrt.f32 %v375_v63 }
 0x221   : > { %v868_v0 = vpop.eup %867 }
 0x222   : > { %v378_v2 = vmul.f32 %v868_v0, %v970_v23 }
 0x224   : > { %v385_v4 = vmul.f32 %v694_v1, %v378_v2 }
 0x225   : > { %v870_v5 = vpop.eup %869 }
 0x226   : > { %v379_v6 = vmul.f32 %v870_v5, %v975_v27  ;;  %v392_v7 = vadd.f32 %v695_v3, %v385_v4 }
 0x228   : > { %v386_v8 = vmul.f32 %v694_v1, %v379_v6  ;;  %765 = vmatprep.mubr.msk.f32.mxu0 %vm352_vm1, %v392_v7 }
 0x22a   : > { %v393_v9 = vadd.f32 %v695_v3, %v386_v8 }
 0x22c   : > { %766 = vmatmul.mubr.msk.f32.vlgmr.msra.gmra.mrb[2].mxu0 %vm352_vm1, %v393_v9 }
 0x2ff   : > { %v767_v14 = vpop.f32.mrb[2].mxu0 }
 0x300   : > { %v477_v15 = vpop.f32.mrb[3].mxu0  ;;  %v483_v19 = vadd.f32 %v767_v14, %v696_v13 }
 0x301   : > { %v478_v16 = vadd.f32 %v696_v13, %v477_v15 }
 0x303   : > { %800 = vmatprep.mubr.f32.mxu1 %v478_v16 }
 0x304   : > { %801 = vmatmul.mubr.f32.vlgmr.msra.gmra.mrb[0].mxu1 %v483_v19 }
 0x3d7   : > { %v802_v21 = vpop.f32.mrb[0].mxu1 }
 0x3d8   : > { %v579_v22 = vadd.f32 %v802_v21, %v699_v20  ;;  %v573_v23 = vpop.f32.mrb[1].mxu1 }
 0x3d9   : > { %v574_v24 = vadd.f32 %v699_v20, %v573_v23 }
 0x3da   : > { %v583_v25 = vadd.f32 %v579_v22, %v963_v18 }
 0x3db   : > { %v582_v26 = vadd.f32 %v574_v24, %v961_v17 }
 0x3dc   : > { %v587_v27 = vsel %vm352_vm1, %v583_v25, 0.0 }
 0x3dd   : > { %588 = vadd.xlane.f32.xlu1 %v587_v27  ;;  %v584_v28 = vsel %vm352_vm1, %v582_v26, 0.0 }
 0x3de   : > { %585 = vadd.xlane.f32.xlu0 %v584_v28 }
 0x46a   : > { %v589_v29 = vpop.xlane.xlu1 %588 }
 0x46b   : > { %v591_v30 = vmul.f32 0.03125, %v589_v29  ;;  %v586_v31 = vpop.xlane.xlu0 %585 }
 0x46c   : > { %v590_v32 = vmul.f32 0.03125, %v586_v31 }
 0x46d   : > { %v593_v33 = vsub.f32 %v583_v25, %v591_v30 }
 0x46e   : > { %v592_v34 = vsub.f32 %v582_v26, %v590_v32 }
 0x46f   : > { %v595_v35 = vmul.f32 %v593_v33, %v593_v33 }
 0x470   : > { %v594_v36 = vmul.f32 %v592_v34, %v592_v34 }
 0x471   : > { %v599_v37 = vsel %vm352_vm1, %v595_v35, 0.0 }
 0x472   : > { %600 = vadd.xlane.f32.xlu1 %v599_v37  ;;  %v596_v18 = vsel %vm352_vm1, %v594_v36, 0.0 }
 0x473   : > { %597 = vadd.xlane.f32.xlu0 %v596_v18 }
 0x4ff   : > { %v601_v17 = vpop.xlane.xlu1 %600 }
 0x500   : > { %v603_v38 = vmul.f32 0.03125, %v601_v17  ;;  %v598_v39 = vpop.xlane.xlu0 %597 }
 0x501   : > { %v602_v40 = vmul.f32 0.03125, %v598_v39 }
 0x502   : > { %v605_v41 = vadd.f32 1e-05, %v603_v38 }
 0x503   : > { %v604_v42 = vadd.f32 1e-05, %v602_v40 }
 0x504   : > { %871 = vrsqrt.f32 %v605_v41 }
 0x505   : > { %873 = vrsqrt.f32 %v604_v42 }
 0x50e   : > { %v872_v43 = vpop.eup %871 }
 0x50f   : > { %v874_v45 = vpop.eup %873  ;;  %v609_v46 = vmul.f32 %v872_v43, %v593_v33 }
 0x510   : > { %v608_v47 = vmul.f32 %v874_v45, %v592_v34 }
 0x511   : > { %v616_v49 = vmul.f32 %v700_v44, %v609_v46 }
 0x512   : > { %v615_v50 = vmul.f32 %v700_v44, %v608_v47 }
 0x513   : > { %v623_v52 = vadd.f32 %v701_v48, %v616_v49 }
 0x514   : > { %v622_v51 = vadd.f32 %v701_v48, %v615_v50 }
 0x515   : > { %625 = vst.msk [vmem:[%s253_s13 + $0x8] sm:$0xff] %vm352_vm1, %v623_v52 }
 0x516   : > { %624 = vst.msk [vmem:[%s253_s13] sm:$0xff] %vm352_vm1, %v622_v51 }
 0x517 PF: > { %s16_s21 = sadd.s32 1, %s881_s21  }
 0x518   : > { %p13_p4 = scmp.ge.s32.totalorder %s16_s21, 4  }
 0x51a   :  { %15 = sbr.rel (!%p13_p4) target bundleno = 1 (0x1), region = 74 }

// kernel: backbone_micn_forward.10
= control target key start
LH: loop header
LB: loop body
LE: loop exit
PB: predicated region body
PF: predicated region fallthrough
CT: control target
= control target key end

     0   :  { %s1399_s24 = smov 0   ;;  %s1646_s0 = inlined_call_operand.vmem [shape: f32[2,5,128], index: 0, kind: input, shape index: {}]   ;;  %s1647_s1 = inlined_call_operand.vmem [shape: f32[2,5,128], index: 1, kind: input, shape index: {}]   ;;  %s1648_s2 = inlined_call_operand.vmem [shape: f32[128,32], index: 2, kind: input, shape index: {}]   ;;  %s1649_s3 = inlined_call_operand.vmem [shape: f32[160,32], index: 3, kind: input, shape index: {}]   ;;  %s1650_s4 = inlined_call_operand.vmem [shape: f32[32,128], index: 4, kind: input, shape index: {}]   ;;  %s1651_s5 = inlined_call_operand.vmem [shape: f32[4,32], index: 5, kind: input, shape index: {}]   ;;  %s1652_s6 = inlined_call_operand.vmem [shape: f32[1,128], index: 6, kind: input, shape index: {}]   ;;  %s1653_s7 = inlined_call_operand.vmem [shape: f32[2,5,128], index: 7, kind: output, shape index: {}]  }
   0x1 LB: > { %s1077_s25 = sadd.s32 4294967295, %s1351_s24   ;;  %p1081_p0 = scmp.ge.s32.totalorder %s1351_s24, 1  ;;  %s1351_s24 = sphi %s1399_s24, %s17_s24  }
   0x2   : > { %p245_p1 = scmp.lt.s32.totalorder %s1351_s24, 3 }
   0x4   : > { %p246_p2 = pnand %p1081_p0, %p245_p1 }
   0x5   : > { %v294_v0 = vld [vmem:[%s1648_s2] sm:$0xff] (!%p246_p2)  ;;  %v295_v1 = vld [vmem:[%s1648_s2 + $0x8] sm:$0xff] (!%p246_p2)  ;;  %v296_v2 = vld [vmem:[%s1648_s2 + $0x10] sm:$0xff] (!%p246_p2)  ;;  %v1353_v3 = vmov (!%p246_p2), 0.0|0.0   ;;  %vm1354_vm0 = vmmov (!%p246_p2), 0   ;;  %v1355_v6 = vmov (!%p246_p2), 0.0  }
   0x6   : > { %249 = sbr.rel (%p246_p2) target bundleno = 1617 (0x651), region = 48  ;;  %1246 = vmatprep.subr.bf16.mxu0 (!%p246_p2), %v1353_v3  ;;  %v1247_v4 = vpack.c.bf16 (!%p246_p2), %v295_v1, %v294_v0  ;;  %v297_v5 = vld [vmem:[%s1648_s2 + $0x18] sm:$0xff] (!%p246_p2)  ;;  %1177 = vmatprep.mubr.msk.f32.mxu0 (!%p246_p2), %vm1354_vm0, %v1355_v6  ;;  %v298_v8 = vld [vmem:[%s1648_s2 + $0x20] sm:$0xff] (!%p246_p2)  ;;  %v299_v9 = vld [vmem:[%s1648_s2 + $0x28] sm:$0xff] (!%p246_p2)  ;;  %p279_p3 = scmp.lt.s32.totalorder (!%p246_p2), %s1077_s25, 1  ;;  %vm389_vm1 = vcmask (!%p246_p2), 1043456  }
   0x7   : > { %1270 = vmatprep.subr.bf16.mxu1 (!%p246_p2), %v1353_v3  ;;  %1188 = vmatprep.mubr.msk.f32.mxu1 (!%p246_p2), %vm1354_vm0, %v1355_v6  ;;  %v1250_v7 = vpack.c.bf16 (!%p246_p2), %v297_v5, %v296_v2  ;;  %v1253_v10 = vpack.c.bf16 (!%p246_p2), %v299_v9, %v298_v8  ;;  %v300_v11 = vld [vmem:[%s1648_s2 + $0x30] sm:$0xff] (!%p246_p2)  ;;  %v301_v12 = vld [vmem:[%s1648_s2 + $0x38] sm:$0xff] (!%p246_p2)  ;;  %v302_v14 = vld [vmem:[%s1648_s2 + $0x40] sm:$0xff] (!%p246_p2)  ;;  %vm401_vm2 = vcmask (!%p246_p2), 261120   ;;  %vm792_vm3 = vcmask (!%p246_p2), 258048   ;;  %s1356_s16 = smov (!%p246_p2), 32  }
   0x8   : > { %1248 = vmatpush3.bf16.msra.mxu0 (!%p246_p2), %v1247_v4  ;;  %v1256_v13 = vpack.c.bf16 (!%p246_p2), %v301_v12, %v300_v11  ;;  %v303_v15 = vld [vmem:[%s1648_s2 + $0x48] sm:$0xff] (!%p246_p2)  ;;  %v304_v17 = vld [vmem:[%s1648_s2 + $0x50] sm:$0xff] (!%p246_p2)  ;;  %v305_v18 = vld [vmem:[%s1648_s2 + $0x58] sm:$0xff] (!%p246_p2)  ;;  %s1358_s18 = smov (!%p246_p2), 64   ;;  %vm1007_vm4 = vcmask (!%p246_p2), 523264   ;;  %vm1009_vm5 = vcmask (!%p246_p2), 785408  }
   0x9   : > { %1249 = vmatprep.subr.bf16.mxu0 (!%p246_p2), %v1353_v3  ;;  %v1259_v16 = vpack.c.bf16 (!%p246_p2), %v303_v15, %v302_v14  ;;  %v1262_v19 = vpack.c.bf16 (!%p246_p2), %v305_v18, %v304_v17  ;;  %v306_v20 = vld [vmem:[%s1648_s2 + $0x60] sm:$0xff] (!%p246_p2)  ;;  %v307_v21 = vld [vmem:[%s1648_s2 + $0x68] sm:$0xff] (!%p246_p2)  ;;  %v308_v23 = vld [vmem:[%s1648_s2 + $0x70] sm:$0xff] (!%p246_p2) }
   0xa   : > { %v1265_v22 = vpack.c.bf16 (!%p246_p2), %v307_v21, %v306_v20  ;;  %v309_v24 = vld [vmem:[%s1648_s2 + $0x78] sm:$0xff] (!%p246_p2)  ;;  %v397_v27 = vld [vmem:[%s1649_s3] sm:$0xff] (!%p246_p2)  ;;  %v398_v28 = vld [vmem:[%s1649_s3 + $0x8] sm:$0xff] (!%p246_p2) }
   0xb   : > { %v1268_v25 = vpack.c.bf16 (!%p246_p2), %v309_v24, %v308_v23  ;;  %v399_v29 = vld [vmem:[%s1649_s3 + $0x10] sm:$0xff] (!%p246_p2)  ;;  %v1271_v30 = vpack.c.bf16 (!%p246_p2), %v398_v28, %v397_v27  ;;  %v400_v31 = vld [vmem:[%s1649_s3 + $0x18] sm:$0xff] (!%p246_p2)  ;;  %v1085_v33 = vld [vmem:[%s1651_s5] ss:$0 sm:$0xff] (!%p246_p2) }
   0xc   : > { %1251 = vmatpush3.bf16.msra.mxu0 (!%p246_p2), %v1250_v7  ;;  %v1274_v32 = vpack.c.bf16 (!%p246_p2), %v400_v31, %v399_v29  ;;  %v476_v37 = vld [vmem:[%s1649_s3 + $0x20] sm:$0xff] (!%p246_p2)  ;;  %v477_v38 = vld [vmem:[%s1649_s3 + $0x28] sm:$0xff] (!%p246_p2)  ;;  %v478_v42 = vld [vmem:[%s1649_s3 + $0x30] sm:$0xff] (!%p246_p2) }
   0xd   : > { %1252 = vmatprep.subr.bf16.mxu0 %v1353_v3  ;;  %s1655_s25 = smov (!%p279_p3, %s1077_s25), 1  ;;  %1272 = vmatpush3.bf16.msra.mxu1 %v1271_v30  ;;  %v1277_v41 = vpack.c.bf16 %v477_v38, %v476_v37  ;;  %v479_v43 = vld [vmem:[%s1649_s3 + $0x38] sm:$0xff]  ;;  %v554_v46 = vld [vmem:[%s1649_s3 + $0x40] sm:$0xff]  ;;  %v555_v47 = vld [vmem:[%s1649_s3 + $0x48] sm:$0xff] }
   0xe   : > { %s1471_s14 = sshll.u32 %s1655_s25, 3  ;;  %1273 = vmatprep.subr.bf16.mxu1 %v1353_v3  ;;  %v1280_v45 = vpack.c.bf16 %v479_v43, %v478_v42  ;;  %v1283_v48 = vpack.c.bf16 %v555_v47, %v554_v46  ;;  %v556_v50 = vld [vmem:[%s1649_s3 + $0x50] sm:$0xff]  ;;  %v557_v51 = vld [vmem:[%s1649_s3 + $0x58] sm:$0xff]  ;;  %v632_v53 = vld [vmem:[%s1649_s3 + $0x60] sm:$0xff] }
   0xf   : > { %s282_s17 = scalar_lea.vmem %s1646_s0, %s1471_s14  ;;  %v1286_v52 = vpack.c.bf16 %v557_v51, %v556_v50  ;;  %v633_v54 = vld [vmem:[%s1649_s3 + $0x68] sm:$0xff]  ;;  %v634_v57 = vld [vmem:[%s1649_s3 + $0x70] sm:$0xff]  ;;  %v635_v58 = vld [vmem:[%s1649_s3 + $0x78] sm:$0xff]  ;;  %s286_s15 = scalar_lea.vmem %s1647_s1, %s1471_s14 }
  0x10   : > { %1254 = vmatpush3.bf16.msra.mxu0 %v1253_v10  ;;  %v293_v26 = vld [vmem:[%s282_s17] sm:$0x1f]  ;;  %v1289_v55 = vpack.c.bf16 %v633_v54, %v632_v53  ;;  %v1292_v59 = vpack.c.bf16 %v635_v58, %v634_v57  ;;  %v711_v61 = vld [vmem:[%s1649_s3 + $0x88] sm:$0xff]  ;;  %v712_v0 = vld [vmem:[%s1649_s3 + $0x90] sm:$0xff]  ;;  %s1357_s17 = smov 96   ;;  %s290_s20 = scalar_lea.vmem %s1653_s7, %s1471_s14 }
  0x11   : > { %1255 = vmatprep.subr.bf16.mxu0 %v1353_v3  ;;  %1275 = vmatpush3.bf16.msra.mxu1 %v1274_v32  ;;  %v710_v60 = vld [vmem:[%s1649_s3 + $0x80] sm:$0xff]  ;;  %v713_v1 = vld [vmem:[%s1649_s3 + $0x98] sm:$0xff]  ;;  %v818_v20 = vld [vmem:[%s1650_s4 + $0x8] sm:$0xff] }
  0x12   : > { %1276 = vmatprep.subr.bf16.mxu1 %v1353_v3  ;;  %v1295_v62 = vpack.c.bf16 %v711_v61, %v710_v60  ;;  %v1298_v2 = vpack.c.bf16 %v713_v1, %v712_v0  ;;  %v1086_v8 = vld [vmem:[%s1651_s5 + $0x1] ss:$0 sm:$0xff]  ;;  %v820_v23 = vld [vmem:[%s1650_s4 + $0x18] sm:$0xff]  ;;  %v1598_v30 = vld [vmem:[%s1651_s5 + $0x3] ss:$0 sm:$0xff] }
  0x13   : > { %v902_v37 = vld [vmem:[%s286_s15] sm:$0x1f] }
  0x14   : > { %1257 = vmatpush3.bf16.msra.mxu0 %v1256_v13 }
  0x15   : > { %1258 = vmatprep.subr.bf16.mxu0 %v1353_v3 }
  0x18   : > { %1260 = vmatpush3.bf16.msra.mxu0 %v1259_v16 }
  0x19   : > { %1261 = vmatprep.subr.bf16.mxu0 %v1353_v3 }
  0x1c   : > { %1263 = vmatpush3.bf16.msra.mxu0 %v1262_v19  ;;  %v817_v19 = vld [vmem:[%s1650_s4] sm:$0xff] }
  0x1d   : > { %1264 = vmatprep.subr.bf16.mxu0 %v1353_v3  ;;  %v1301_v21 = vpack.c.bf16 %v818_v20, %v817_v19 }
  0x20   : > { %1266 = vmatpush3.bf16.msra.mxu0 %v1265_v22  ;;  %v819_v22 = vld [vmem:[%s1650_s4 + $0x10] sm:$0xff] }
  0x21   : > { %1267 = vmatprep.subr.bf16.mxu0 %v1353_v3  ;;  %v1304_v24 = vpack.c.bf16 %v820_v23, %v819_v22 }
  0x24   : > { %1269 = vmatpush3.bf16.msra.mxu0 %v1268_v25 }
  0x25   : > { %1300 = vmatprep.subr.bf16.mxu0 %v1353_v3 }
  0x27   : > { %1178 = vmatmul.mubr.f32.vlgmr.msra.gmra.mrb[0].mxu0 %v293_v26 }
  0x28   : > { %1243 = vmatprep.mubr.msk.f32.mxu0 %vm1354_vm0, %v1355_v6  ;;  %1302 = vmatpush3.bf16.msra.mxu0 %v1301_v21 }
  0x29   : > { %1303 = vmatprep.subr.bf16.mxu0 %v1353_v3 }
  0x2c   : > { %1305 = vmatpush3.bf16.msra.mxu0 %v1304_v24 }
  0xfa   : > { %v381_v34 = vpop.f32.mrb[0].mxu0 }
  0xfb   : > { %v382_v35 = vadd.f32 %v1085_v33, %v381_v34  ;;  %v1179_v36 = vpop.f32.mrb[1].mxu0  ;;  %v1094_v33 = vld [vmem:[%s1652_s6] ss:$0 sm:$0xff] }
  0xfd   : > { %1329 = vtanh.f32 %v382_v35 }
 0x107   : > { %v1504_v39 = vpop.eup %1329 }
 0x108   : > { %v387_v40 = vrot.slane %v1504_v39, 4 }
 0x10a   : > { %v390_v44 = vsel %vm389_vm1, 0.0, %v387_v40  ;;  %v715_v4 = vrot.slane %v387_v40, 4 }
 0x10b   : > { %1189 = vmatmul.mubr.msk.f32.vlgmr.msra.gmra.mrb[0].mxu1 %vm401_vm2, %v390_v44  ;;  %v480_v49 = vrot.slane %v390_v44, 1  ;;  %v558_v56 = vrot.slane %v390_v44, 2  ;;  %v636_v63 = vrot.slane %v390_v44, 3  ;;  %v714_v5 = vrot.slane %v390_v44, 4 }
 0x10c   : > { %1278 = vmatpush3.bf16.msra.mxu1 %v1277_v41  ;;  %1199 = vmatprep.mubr.msk.f32.mxu1 %vm1354_vm0, %v1355_v6 }
 0x10d   : > { %1279 = vmatprep.subr.bf16.mxu1 %v1353_v3  ;;  %v716_v7 = vsel %vm389_vm1, %v714_v5, %v715_v4 }
 0x110   : > { %1281 = vmatpush3.bf16.msra.mxu1 %v1280_v45 }
 0x111   : > { %1282 = vmatprep.subr.bf16.mxu1 %v1353_v3 }
 0x113   : > { %1200 = vmatmul.mubr.msk.f32.vlgmr.msra.gmra.mrb[0].mxu1 %vm401_vm2, %v480_v49 }
 0x114   : > { %1284 = vmatpush3.bf16.msra.mxu1 %v1283_v48  ;;  %1210 = vmatprep.mubr.msk.f32.mxu1 %vm1354_vm0, %v1355_v6 }
 0x115   : > { %1285 = vmatprep.subr.bf16.mxu1 %v1353_v3 }
 0x118   : > { %1287 = vmatpush3.bf16.msra.mxu1 %v1286_v52 }
 0x119   : > { %1288 = vmatprep.subr.bf16.mxu1 %v1353_v3 }
 0x11b   : > { %1211 = vmatmul.mubr.msk.f32.vlgmr.msra.gmra.mrb[0].mxu1 %vm401_vm2, %v558_v56 }
 0x11c   : > { %1290 = vmatpush3.bf16.msra.mxu1 %v1289_v55  ;;  %1221 = vmatprep.mubr.msk.f32.mxu1 %vm1354_vm0, %v1355_v6 }
 0x11d   : > { %1291 = vmatprep.subr.bf16.mxu1 %v1353_v3 }
 0x120   : > { %1293 = vmatpush3.bf16.msra.mxu1 %v1292_v59 }
 0x121   : > { %1294 = vmatprep.subr.bf16.mxu1 %v1353_v3 }
 0x123   : > { %1222 = vmatmul.mubr.msk.f32.vlgmr.msra.gmra.mrb[0].mxu1 %vm401_vm2, %v636_v63 }
 0x124   : > { %1296 = vmatpush3.bf16.msra.mxu1 %v1295_v62  ;;  %1232 = vmatprep.mubr.msk.f32.mxu1 %vm1354_vm0, %v1355_v6 }
 0x125   : > { %1297 = vmatprep.subr.bf16.mxu1 %v1353_v3  ;;  %v1593_v3 = vld [vmem:[%s1651_s5 + $0x2] ss:$0 sm:$0xff] }
 0x128   : > { %1299 = vmatpush3.bf16.msra.mxu1 %v1298_v2 }
 0x12b   : > { %1233 = vmatmul.mubr.msk.f32.vlgmr.msra.gmra.mrb[0].mxu1 %vm401_vm2, %v716_v7 }
 0x1fe   : > { %v785_v9 = vpop.f32.mrb[0].mxu1 }
 0x1ff   : > { %v1306_v10 = vadd.f32 %v1086_v8, %v785_v9  ;;  %v1234_v11 = vpop.f32.mrb[1].mxu1 }
 0x201   : > { %1331 = vtanh.f32 %v1306_v10 }
 0x20b   : > { %v1332_v12 = vpop.eup %1331 }
 0x20c   : > { %v791_v6 = vadd.f32 %v1332_v12, %v1504_v39 }
 0x20e   : > { %v793_v13 = vsel %vm792_vm3, %v791_v6, 0.0 }
 0x20f   : > { %794 = vadd.xlane.f32.xlu0 %v793_v13 }
 0x29c   : > { %v795_v14 = vpop.xlane.xlu0 %794 }
 0x29d   : > { %v797_v15 = vmul.f32 0.03125, %v795_v14 }
 0x29f   : > { %v798_v16 = vsub.f32 %v791_v6, %v797_v15 }
 0x2a1   : > { %v799_v17 = vmul.f32 %v798_v16, %v798_v16 }
 0x2a3   : > { %v800_v18 = vsel %vm792_vm3, %v799_v17, 0.0 }
 0x2a4   : > { %801 = vadd.xlane.f32.xlu0 %v800_v18 }
 0x331   : > { %v802_v25 = vpop.xlane.xlu0 %801 }
 0x332   : > { %v803_v26 = vmul.f32 0.03125, %v802_v25 }
 0x334   : > { %v804_v27 = vadd.f32 1e-05, %v803_v26 }
 0x336   : > { %1333 = vrsqrt.f32 %v804_v27 }
 0x340   : > { %v1334_v28 = vpop.eup %1333 }
 0x341   : > { %v806_v29 = vmul.f32 %v1334_v28, %v798_v16 }
 0x343   : > { %v811_v31 = vmul.f32 %v1593_v3, %v806_v29 }
 0x345   : > { %v816_v32 = vadd.f32 %v1598_v30, %v811_v31 }
 0x347   : > { %1244 = vmatmul.mubr.msk.f32.vlgmr.msra.gmra.mrb[2].mxu0 %vm401_vm2, %v816_v32 }
 0x41a   : > { %v897_v34 = vpop.f32.mrb[2].mxu0 }
 0x41b   : > { %v898_v35 = vadd.f32 %v1094_v33, %v897_v34  ;;  %v1245_v36 = vpop.f32.mrb[3].mxu0 }
 0x41d   : > { %1335 = vtanh.f32 %v898_v35 }
 0x427   : > { %v1336_v38 = vpop.eup %1335 }
 0x428   : > { %v903_v39 = vadd.f32 %v1336_v38, %v902_v37 }
 0x42a   : > { %978 = vrot.lane.b32.xlu0 %v903_v39, %s1356_s16  ;;  %920 = vrot.lane.b32.xlu1 %v903_v39, %s1357_s17  ;;  %v904_v46 = vsel %vm792_vm3, %v903_v39, 0.0 }
 0x42e   : > { %950 = vrot.lane.b32.xlu1 %v903_v39, %s1358_s18 }
 0x49c   : > { %v921_v40 = vpop.permute.xlu1 %920  ;;  %v979_v42 = vpop.permute.xlu0 %978 }
 0x49d   : > { %v923_v41 = vsel %vm792_vm3, %v921_v40, 0.0  ;;  %v981_v44 = vsel %vm792_vm3, %v979_v42, 0.0 }
 0x49e   : > { %924 = vadd.xlane.f32.xlu1 %v923_v41 }
 0x4a0   : > { %v951_v43 = vpop.permute.xlu1 %950 }
 0x4a1   : > { %v953_v45 = vsel %vm792_vm3, %v951_v43, 0.0 }
 0x4a2   : > { %982 = vadd.xlane.f32.xlu1 %v981_v44  ;;  %954 = vadd.xlane.f32.xlu0 %v953_v45 }
 0x4a6   : > { %905 = vadd.xlane.f32.xlu1 %v904_v46 }
 0x52b   : > { %v925_v47 = vpop.xlane.xlu1 %924 }
 0x52c   : > { %v926_v48 = vmul.f32 0.03125, %v925_v47 }
 0x52e   : > { %v927_v49 = vsub.f32 %v903_v39, %v926_v48 }
 0x52f   : > { %v955_v50 = vpop.xlane.xlu0 %954  ;;  %v983_v51 = vpop.xlane.xlu1 %982 }
 0x530   : > { %v956_v52 = vmul.f32 0.03125, %v955_v50  ;;  %v984_v53 = vmul.f32 0.03125, %v983_v51  ;;  %v928_v54 = vmul.f32 %v927_v49, %v927_v49 }
 0x532   : > { %v957_v55 = vsub.f32 %v903_v39, %v956_v52  ;;  %v985_v56 = vsub.f32 %v903_v39, %v984_v53  ;;  %930 = vrot.lane.b32.xlu1 %v928_v54, %s1357_s17 }
 0x533   : > { %v906_v59 = vpop.xlane.xlu1 %905 }
 0x534   : > { %v958_v57 = vmul.f32 %v957_v55, %v957_v55  ;;  %v986_v58 = vmul.f32 %v985_v56, %v985_v56  ;;  %v907_v60 = vmul.f32 0.03125, %v906_v59 }
 0x536   : > { %960 = vrot.lane.b32.xlu0 %v958_v57, %s1358_s18  ;;  %988 = vrot.lane.b32.xlu1 %v986_v58, %s1356_s16  ;;  %v908_v61 = vsub.f32 %v903_v39, %v907_v60 }
 0x538   : > { %v909_v62 = vmul.f32 %v908_v61, %v908_v61 }
 0x53a   : > { %946 = vrot.lane.b32.xlu0 %v1598_v30, %s1356_s16  ;;  %v910_v63 = vsel %vm792_vm3, %v909_v62, 0.0 }
 0x55a   : > { %911 = vadd.xlane.f32.xlu1 %v910_v63 }
 0x56b   : > { %941 = vrot.lane.b32.xlu1 %v1593_v3, %s1356_s16 }
 0x5a4   : > { %v931_v0 = vpop.permute.xlu1 %930 }
 0x5a5   : > { %v933_v1 = vsel %vm792_vm3, %v931_v0, 0.0 }
 0x5a6   : > { %934 = vadd.xlane.f32.xlu0 %v933_v1 }
 0x5a8   : > { %v961_v2 = vpop.permute.xlu0 %960  ;;  %v989_v4 = vpop.permute.xlu1 %988 }
 0x5a9   : > { %v963_v5 = vsel %vm792_vm3, %v961_v2, 0.0  ;;  %v991_v7 = vsel %vm792_vm3, %v989_v4, 0.0 }
 0x5aa   : > { %964 = vadd.xlane.f32.xlu1 %v963_v5  ;;  %992 = vadd.xlane.f32.xlu0 %v991_v7 }
 0x5ac   : > { %v947_v10 = vpop.permute.xlu0 %946 }
 0x5bb   : > { %970 = vrot.lane.b32.xlu1 %v1593_v3, %s1358_s18 }
 0x5bf   : > { %998 = vrot.lane.b32.xlu1 %v1593_v3, %s1357_s17 }
 0x5c0   : > { %974 = vrot.lane.b32.xlu0 %v1598_v30, %s1358_s18 }
 0x5c3   : > { %1002 = vrot.lane.b32.xlu1 %v1598_v30, %s1357_s17 }
 0x5e7   : > { %v912_v8 = vpop.xlane.xlu1 %911 }
 0x5e8   : > { %v913_v9 = vmul.f32 0.03125, %v912_v8 }
 0x5ea   : > { %v914_v11 = vadd.f32 1e-05, %v913_v9 }
 0x5eb   : > { %v942_v12 = vpop.permute.xlu1 %941 }
 0x5ec   : > { %1337 = vrsqrt.f32 %v914_v11 }
 0x5f6   : > { %v1338_v22 = vpop.eup %1337 }
 0x5f7   : > { %v916_v25 = vmul.f32 %v1338_v22, %v908_v61 }
 0x5f9   : > { %v917_v32 = vmul.f32 %v1593_v3, %v916_v25 }
 0x5fb   : > { %v918_v39 = vadd.f32 %v1598_v30, %v917_v32 }
 0x633   : > { %v935_v6 = vpop.xlane.xlu0 %934 }
 0x634   : > { %v936_v13 = vmul.f32 0.03125, %v935_v6 }
 0x636   : > { %v937_v14 = vadd.f32 1e-05, %v936_v13 }
 0x637   : > { %v993_v15 = vpop.xlane.xlu0 %992  ;;  %v965_v16 = vpop.xlane.xlu1 %964 }
 0x638   : > { %1339 = vrsqrt.f32 %v937_v14  ;;  %v994_v17 = vmul.f32 0.03125, %v993_v15  ;;  %v966_v18 = vmul.f32 0.03125, %v965_v16 }
 0x63a   : > { %v995_v19 = vadd.f32 1e-05, %v994_v17  ;;  %v967_v20 = vadd.f32 1e-05, %v966_v18 }
 0x63b   : > { %v971_v21 = vpop.permute.xlu1 %970  ;;  %v975_v36 = vpop.permute.xlu0 %974 }
 0x63c   : > { %1341 = vrsqrt.f32 %v995_v19 }
 0x63d   : > { %1343 = vrsqrt.f32 %v967_v20 }
 0x63f   : > { %v999_v24 = vpop.permute.xlu1 %998 }
 0x642   : > { %v1340_v23 = vpop.eup %1339 }
 0x643   : > { %v939_v26 = vmul.f32 %v1340_v23, %v927_v49  ;;  %v1003_v34 = vpop.permute.xlu1 %1002 }
 0x645   : > { %v944_v27 = vmul.f32 %v942_v12, %v939_v26 }
 0x646   : > { %v1342_v28 = vpop.eup %1341 }
 0x647   : > { %v1344_v29 = vpop.eup %1343  ;;  %v997_v31 = vmul.f32 %v1342_v28, %v985_v56  ;;  %v949_v37 = vadd.f32 %v947_v10, %v944_v27 }
 0x648   : > { %v969_v33 = vmul.f32 %v1344_v29, %v957_v55 }
 0x649   : > { %v1001_v35 = vmul.f32 %v999_v24, %v997_v31  ;;  %v1006_v42 = vsel %vm401_vm2, %v918_v39, %v949_v37 }
 0x64a   : > { %v973_v38 = vmul.f32 %v971_v21, %v969_v33 }
 0x64b   : > { %v1005_v40 = vadd.f32 %v1003_v34, %v1001_v35 }
 0x64c   : > { %v977_v41 = vadd.f32 %v975_v36, %v973_v38 }
 0x64e   : > { %v1008_v43 = vsel %vm1007_vm4, %v1006_v42, %v977_v41 }
 0x64f   : > { %v1010_v3 = vsel %vm1009_vm5, %v1008_v43, %v1005_v40 }
 0x650   : > { %1011 = vst [vmem:[%s290_s20] sm:$0x1f] %v1010_v3 }
 0x651 PF: > { %s17_s24 = sadd.s32 1, %s1351_s24  }
 0x652   : > { %p14_p4 = scmp.ge.s32.totalorder %s17_s24, 4  }
 0x654   :  { %16 = sbr.rel (!%p14_p4) target bundleno = 1 (0x1), region = 81 }

// kernel: backbone_micn_forward.9
= control target key start
LH: loop header
LB: loop body
LE: loop exit
PB: predicated region body
PF: predicated region fallthrough
CT: control target
= control target key end

     0   :  { %s1940_s24 = smov 0   ;;  %s2201_s0 = inlined_call_operand.vmem [shape: f32[2,9,64], index: 0, kind: input, shape index: {}]   ;;  %s2202_s1 = inlined_call_operand.vmem [shape: f32[2,9,64], index: 1, kind: input, shape index: {}]   ;;  %s2203_s2 = inlined_call_operand.vmem [shape: f32[64,32], index: 2, kind: input, shape index: {}]   ;;  %s2204_s3 = inlined_call_operand.vmem [shape: f32[288,32], index: 3, kind: input, shape index: {}]   ;;  %s2205_s4 = inlined_call_operand.vmem [shape: f32[32,64], index: 4, kind: input, shape index: {}]   ;;  %s2206_s5 = inlined_call_operand.vmem [shape: f32[4,32], index: 5, kind: input, shape index: {}]   ;;  %s2207_s6 = inlined_call_operand.vmem [shape: f32[1,64], index: 6, kind: input, shape index: {}]   ;;  %s2208_s7 = inlined_call_operand.vmem [shape: f32[2,9,64], index: 7, kind: output, shape index: {}]  }
   0x1 LB: > { %s1499_s25 = sadd.s32 4294967295, %s1895_s24   ;;  %p1503_p0 = scmp.ge.s32.totalorder %s1895_s24, 1  ;;  %s1895_s24 = sphi %s1940_s24, %s17_s24  }
   0x2   : > { %p247_p1 = scmp.lt.s32.totalorder %s1895_s24, 3 }
   0x4   : > { %p248_p2 = pnand %p1503_p0, %p247_p1 }
   0x5   : > { %v303_v0 = vld [vmem:[%s2203_s2] sm:$0xff] (!%p248_p2)  ;;  %v304_v1 = vld [vmem:[%s2203_s2 + $0x8] sm:$0xff] (!%p248_p2)  ;;  %v305_v2 = vld [vmem:[%s2203_s2 + $0x10] sm:$0xff] (!%p248_p2)  ;;  %p284_p3 = scmp.lt.s32.totalorder (!%p248_p2), %s1499_s25, 1  ;;  %vm316_vm0 = vcmask (!%p248_p2), 523264   ;;  %v1897_v21 = vmov (!%p248_p2), 0.0  }
   0x6   : > { %251 = sbr.rel (%p248_p2) target bundleno = 1612 (0x64c), region = 48  ;;  %v1740_v3 = vpack.c.bf16 (!%p248_p2), %v304_v1, %v303_v0  ;;  %v306_v4 = vld [vmem:[%s2203_s2 + $0x18] sm:$0xff] (!%p248_p2)  ;;  %v307_v6 = vld [vmem:[%s2203_s2 + $0x20] sm:$0xff] (!%p248_p2)  ;;  %v308_v7 = vld [vmem:[%s2203_s2 + $0x28] sm:$0xff] (!%p248_p2)  ;;  %vm410_vm1 = vcmask (!%p248_p2), 261120   ;;  %v499_v39 = vrot.slane (!%p248_p2), %v1897_v21, 1 }
   0x7   : > { %v1744_v5 = vpack.c.bf16 (!%p248_p2), %v306_v4, %v305_v2  ;;  %v1748_v8 = vpack.c.bf16 (!%p248_p2), %v308_v7, %v307_v6  ;;  %v309_v9 = vld [vmem:[%s2203_s2 + $0x30] sm:$0xff] (!%p248_p2)  ;;  %v310_v10 = vld [vmem:[%s2203_s2 + $0x38] sm:$0xff] (!%p248_p2)  ;;  %v406_v14 = vld [vmem:[%s2204_s3] sm:$0xff] (!%p248_p2)  ;;  %v677_v40 = vrot.slane (!%p248_p2), %v1897_v21, 3  ;;  %vm498_vm2 = vcmask (!%p248_p2), 1046528   ;;  %s1898_s10 = smov (!%p248_p2), 96  }
   0x8   : > { %1741 = vmatprep.subr.bf16.mxu0 (!%p248_p2), %v1740_v3  ;;  %v1752_v12 = vpack.c.bf16 (!%p248_p2), %v310_v10, %v309_v9  ;;  %v407_v15 = vld [vmem:[%s2204_s3 + $0x8] sm:$0xff] (!%p248_p2)  ;;  %v672_v16 = vld [vmem:[%s2204_s3 + $0x60] sm:$0xff] (!%p248_p2)  ;;  %v408_v19 = vld [vmem:[%s2204_s3 + $0x10] sm:$0xff] (!%p248_p2)  ;;  %vm676_vm3 = vcmask (!%p248_p2), 1044480   ;;  %v766_v49 = vrot.slane (!%p248_p2), %v1897_v21, 4  ;;  %vm765_vm4 = vcmask (!%p248_p2), 1043456  }
   0x9   : > { %1743 = vmatpush3.bf16.msra.mxu0 (!%p248_p2), %v1740_v3  ;;  %v1756_v17 = vpack.c.bf16 (!%p248_p2), %v407_v15, %v406_v14  ;;  %v673_v18 = vld [vmem:[%s2204_s3 + $0x68] sm:$0xff] (!%p248_p2)  ;;  %v409_v20 = vld [vmem:[%s2204_s3 + $0x18] sm:$0xff] (!%p248_p2)  ;;  %v674_v24 = vld [vmem:[%s2204_s3 + $0x70] sm:$0xff] (!%p248_p2)  ;;  %v588_v60 = vrot.slane (!%p248_p2), %v1897_v21, 2  ;;  %vm587_vm5 = vcmask (!%p248_p2), 1045504   ;;  %v855_v3 = vrot.slane (!%p248_p2), %v1897_v21, 5 }
   0xa   : > { %1745 = vmatprep.subr.bf16.mxu0 (!%p248_p2), %v1744_v5  ;;  %v1780_v22 = vpack.c.bf16 (!%p248_p2), %v673_v18, %v672_v16  ;;  %v1760_v23 = vpack.c.bf16 (!%p248_p2), %v409_v20, %v408_v19  ;;  %v675_v25 = vld [vmem:[%s2204_s3 + $0x78] sm:$0xff] (!%p248_p2)  ;;  %v494_v27 = vld [vmem:[%s2204_s3 + $0x20] sm:$0xff] (!%p248_p2)  ;;  %v495_v28 = vld [vmem:[%s2204_s3 + $0x28] sm:$0xff] (!%p248_p2)  ;;  %vm854_vm6 = vcmask (!%p248_p2), 1042432   ;;  %vm943_vm7 = vcmask (!%p248_p2), 1041408   ;;  %s1899_s11 = smov (!%p248_p2), 32  }
   0xb   : > { %v1784_v26 = vpack.c.bf16 (!%p248_p2), %v675_v25, %v674_v24  ;;  %v1764_v29 = vpack.c.bf16 (!%p248_p2), %v495_v28, %v494_v27  ;;  %v761_v30 = vld [vmem:[%s2204_s3 + $0x80] sm:$0xff] (!%p248_p2)  ;;  %v762_v31 = vld [vmem:[%s2204_s3 + $0x88] sm:$0xff] (!%p248_p2)  ;;  %v496_v37 = vld [vmem:[%s2204_s3 + $0x30] sm:$0xff] (!%p248_p2)  ;;  %vm1032_vm8 = vcmask (!%p248_p2), 1040384   ;;  %vm1208_vm9 = vcmask (!%p248_p2), 253952  }
   0xc   : > { %1781 = vmatprep.subr.bf16.mxu1 (!%p248_p2), %v1780_v22  ;;  %v1788_v32 = vpack.c.bf16 (!%p248_p2), %v762_v31, %v761_v30  ;;  %v2020_v33 = vld [vmem:[%s2206_s5] ss:$0 sm:$0xff] (!%p248_p2)  ;;  %v497_v38 = vld [vmem:[%s2204_s3 + $0x38] sm:$0xff] (!%p248_p2)  ;;  %v763_v43 = vld [vmem:[%s2204_s3 + $0x90] sm:$0xff] (!%p248_p2)  ;;  %vm1430_vm10 = vcmask (!%p248_p2), 516096  }
   0xd   : > { %s2210_s25 = smov (!%p284_p3, %s1499_s25), 1  ;;  %1747 = vmatpush3.bf16.msra.mxu0 %v1744_v5  ;;  %1783 = vmatpush3.bf16.msra.mxu1 %v1780_v22  ;;  %v1768_v41 = vpack.c.bf16 %v497_v38, %v496_v37  ;;  %v764_v44 = vld [vmem:[%s2204_s3 + $0x98] sm:$0xff]  ;;  %v583_v47 = vld [vmem:[%s2204_s3 + $0x40] sm:$0xff]  ;;  %v584_v48 = vld [vmem:[%s2204_s3 + $0x48] sm:$0xff]  ;;  %v1033_v22 = vrot.slane %v1897_v21, 7 }
   0xe   : > { %s1966_s15 = sshll.u32 %s2210_s25, 4  ;;  %1749 = vmatprep.subr.bf16.mxu0 %v1748_v8  ;;  %1785 = vmatprep.subr.bf16.mxu1 %v1784_v26  ;;  %v1792_v53 = vpack.c.bf16 %v764_v44, %v763_v43  ;;  %v1772_v54 = vpack.c.bf16 %v584_v48, %v583_v47  ;;  %v850_v55 = vld [vmem:[%s2204_s3 + $0xa0] sm:$0xff]  ;;  %v851_v56 = vld [vmem:[%s2204_s3 + $0xa8] sm:$0xff]  ;;  %v585_v57 = vld [vmem:[%s2204_s3 + $0x50] sm:$0xff] }
   0xf   : > { %s288_s18 = scalar_lea.vmem %s2201_s0, %s1966_s15  ;;  %v586_v58 = vld [vmem:[%s2204_s3 + $0x58] sm:$0xff]  ;;  %v1796_v62 = vpack.c.bf16 %v851_v56, %v850_v55  ;;  %v852_v0 = vld [vmem:[%s2204_s3 + $0xb0] sm:$0xff]  ;;  %v939_v6 = vld [vmem:[%s2204_s3 + $0xc0] sm:$0xff]  ;;  %s293_s9 = scalar_lea.vmem %s2202_s1, %s1966_s15 }
  0x10   : > { %v301_v11 = vld [vmem:[%s288_s18] sm:$0xff]  ;;  %v302_v13 = vld [vmem:[%s288_s18 + $0x8] sm:$0x1]  ;;  %v1776_v63 = vpack.c.bf16 %v586_v58, %v585_v57  ;;  %v853_v1 = vld [vmem:[%s2204_s3 + $0xb8] sm:$0xff]  ;;  %s298_s14 = scalar_lea.vmem %s2208_s7, %s1966_s15 }
  0x11   : > { %1627 = vmatprep.mubr.msk.f32.mxu0 %vm316_vm0, %v301_v11  ;;  %1751 = vmatpush3.bf16.msra.mxu0 %v1748_v8  ;;  %v1800_v5 = vpack.c.bf16 %v853_v1, %v852_v0  ;;  %v940_v7 = vld [vmem:[%s2204_s3 + $0xc8] sm:$0xff]  ;;  %v941_v10 = vld [vmem:[%s2204_s3 + $0xd0] sm:$0xff]  ;;  %v942_v11 = vld [vmem:[%s2204_s3 + $0xd8] sm:$0xff] }
  0x12   : > { %1753 = vmatprep.subr.bf16.mxu0 %v1752_v12  ;;  %1787 = vmatpush3.bf16.msra.mxu1 %v1784_v26  ;;  %v1804_v9 = vpack.c.bf16 %v940_v7, %v939_v6  ;;  %v1808_v14 = vpack.c.bf16 %v942_v11, %v941_v10  ;;  %v1028_v15 = vld [vmem:[%s2204_s3 + $0xe0] sm:$0xff]  ;;  %v1029_v16 = vld [vmem:[%s2204_s3 + $0xe8] sm:$0xff]  ;;  %v1030_v19 = vld [vmem:[%s2204_s3 + $0xf0] sm:$0xff] }
  0x13   : > { %1789 = vmatprep.subr.bf16.mxu1 %v1788_v32  ;;  %v1812_v18 = vpack.c.bf16 %v1029_v16, %v1028_v15  ;;  %v1031_v20 = vld [vmem:[%s2204_s3 + $0xf8] sm:$0xff]  ;;  %v1117_v25 = vld [vmem:[%s2204_s3 + $0x100] sm:$0xff]  ;;  %v1118_v26 = vld [vmem:[%s2204_s3 + $0x108] sm:$0xff] }
  0x14   : > { %v1816_v24 = vpack.c.bf16 %v1031_v20, %v1030_v19  ;;  %v1820_v28 = vpack.c.bf16 %v1118_v26, %v1117_v25  ;;  %v1120_v30 = vld [vmem:[%s2204_s3 + $0x118] sm:$0xff]  ;;  %v1245_v58 = vld [vmem:[%s2205_s4] sm:$0xff] }
  0x15   : > { %1755 = vmatpush3.bf16.msra.mxu0 %v1752_v12  ;;  %v944_v12 = vrot.slane %v1897_v21, 6  ;;  %v2157_v7 = vld [vmem:[%s2206_s5 + $0x2] ss:$0 sm:$0xff]  ;;  %v1533_v16 = vld [vmem:[%s2207_s6] ss:$0 sm:$0xff] }
  0x16   : > { %1757 = vmatprep.subr.bf16.mxu0 %v1756_v17 }
  0x18   : > { %1628 = vmatmul.mubr.msk.f32.vlgmr.msra.gmra.mrb[0].mxu0 %vm316_vm0, %v302_v13 }
  0x19   : > { %1638 = vmatprep.mubr.f32.mxu0 %v1897_v21  ;;  %1759 = vmatpush3.bf16.msra.mxu0 %v1756_v17 }
  0x1a   : > { %1761 = vmatprep.subr.bf16.mxu0 %v1760_v23 }
  0x1d   : > { %1763 = vmatpush3.bf16.msra.mxu0 %v1760_v23 }
  0x1e   : > { %1765 = vmatprep.subr.bf16.mxu0 %v1764_v29 }
  0xeb   : > { %v2022_v34 = vpop.f32.mrb[0].mxu0 }
  0xec   : > { %v389_v35 = vpop.f32.mrb[1].mxu0  ;;  %v395_v21 = vadd.f32 %v2022_v34, %v2020_v33 }
  0xed   : > { %v390_v36 = vadd.f32 %v2020_v33, %v389_v35  ;;  %v1513_v35 = vld [vmem:[%s2206_s5 + $0x1] ss:$0 sm:$0xff] }
  0xef   : > { %1865 = vtanh.f32 %v390_v36 }
  0xf0   : > { %1867 = vtanh.f32 %v395_v21 }
  0xf9   : > { %v2033_v42 = vpop.eup %1865 }
  0xfa   : > { %1639 = vmatmul.mubr.msk.f32.vlgmr.msra.gmra.mrb[2].mxu0 %vm410_vm1, %v2033_v42  ;;  %v500_v45 = vrot.slane %v2033_v42, 1  ;;  %v678_v46 = vrot.slane %v2033_v42, 3  ;;  %v767_v50 = vrot.slane %v2033_v42, 4  ;;  %v589_v61 = vrot.slane %v2033_v42, 2 }
  0xfb   : > { %1767 = vmatpush3.bf16.msra.mxu0 %v1764_v29  ;;  %v856_v4 = vrot.slane %v2033_v42, 5  ;;  %v945_v13 = vrot.slane %v2033_v42, 6  ;;  %v1034_v23 = vrot.slane %v2033_v42, 7  ;;  %v1119_v29 = vld [vmem:[%s2204_s3 + $0x110] sm:$0xff] }
  0xfc   : > { %v501_v51 = vsel %vm498_vm2, %v499_v39, %v500_v45  ;;  %v679_v52 = vsel %vm676_vm3, %v677_v40, %v678_v46  ;;  %1769 = vmatprep.subr.bf16.mxu0 %v1768_v41  ;;  %v768_v59 = vsel %vm765_vm4, %v766_v49, %v767_v50  ;;  %v590_v2 = vsel %vm587_vm5, %v588_v60, %v589_v61 }
  0xfd   : > { %1649 = vmatprep.mubr.msk.f32.mxu0 %vm410_vm1, %v501_v51  ;;  %1671 = vmatprep.mubr.msk.f32.mxu1 %vm410_vm1, %v679_v52  ;;  %v857_v8 = vsel %vm854_vm6, %v855_v3, %v856_v4  ;;  %v946_v17 = vsel %vm943_vm7, %v944_v12, %v945_v13  ;;  %v1035_v27 = vsel %vm1032_vm8, %v1033_v22, %v1034_v23  ;;  %v1340_v22 = vld [vmem:[%s293_s9 + $0x8] sm:$0x1] }
  0xfe   : > { %1672 = vmatmul.mubr.msk.f32.vlgmr.msra.gmra.mrb[0].mxu1 %vm410_vm1, %v678_v46  ;;  %v1824_v31 = vpack.c.bf16 %v1120_v30, %v1119_v29 }
  0xff   : > { %1791 = vmatpush3.bf16.msra.mxu1 %v1788_v32  ;;  %1771 = vmatpush3.bf16.msra.mxu0 %v1768_v41  ;;  %v1868_v32 = vpop.eup %1867 }
 0x100   : > { %1682 = vmatprep.mubr.msk.f32.mxu1 %vm410_vm1, %v768_v59  ;;  %1793 = vmatprep.subr.bf16.mxu1 %v1792_v53  ;;  %v1246_v59 = vld [vmem:[%s2205_s4 + $0x8] sm:$0xff] }
 0x101   : > { %1773 = vmatprep.subr.bf16.mxu0 %v1772_v54  ;;  %v1828_v60 = vpack.c.bf16 %v1246_v59, %v1245_v58 }
 0x102   : > { %1650 = vmatmul.mubr.msk.f32.vlgmr.msra.gmra.mrb[2].mxu0 %vm410_vm1, %v500_v45 }
 0x103   : > { %1795 = vmatpush3.bf16.msra.mxu1 %v1792_v53  ;;  %1775 = vmatpush3.bf16.msra.mxu0 %v1772_v54 }
 0x104   : > { %1660 = vmatprep.mubr.msk.f32.mxu0 %vm410_vm1, %v590_v2  ;;  %1797 = vmatprep.subr.bf16.mxu1 %v1796_v62 }
 0x105   : > { %1777 = vmatprep.subr.bf16.mxu0 %v1776_v63 }
 0x106   : > { %1683 = vmatmul.mubr.msk.f32.vlgmr.msra.gmra.mrb[0].mxu1 %vm410_vm1, %v767_v50 }
 0x107   : > { %1799 = vmatpush3.bf16.msra.mxu1 %v1796_v62  ;;  %1779 = vmatpush3.bf16.msra.mxu0 %v1776_v63  ;;  %v1248_v62 = vld [vmem:[%s2205_s4 + $0x18] sm:$0xff] }
 0x108   : > { %1693 = vmatprep.mubr.msk.f32.mxu1 %vm410_vm1, %v857_v8  ;;  %1801 = vmatprep.subr.bf16.mxu1 %v1800_v5 }
 0x109   : > { %1829 = vmatprep.subr.bf16.mxu0 %v1828_v60 }
 0x10a   : > { %1661 = vmatmul.mubr.msk.f32.vlgmr.msra.gmra.mrb[2].mxu0 %vm410_vm1, %v589_v61  ;;  %v1247_v61 = vld [vmem:[%s2205_s4 + $0x10] sm:$0xff] }
 0x10b   : > { %1803 = vmatpush3.bf16.msra.mxu1 %v1800_v5  ;;  %1831 = vmatpush3.bf16.msra.mxu0 %v1828_v60  ;;  %v1832_v63 = vpack.c.bf16 %v1248_v62, %v1247_v61 }
 0x10c   : > { %1805 = vmatprep.subr.bf16.mxu1 %v1804_v9 }
 0x10d   : > { %1833 = vmatprep.subr.bf16.mxu0 %v1832_v63 }
 0x10e   : > { %1694 = vmatmul.mubr.msk.f32.vlgmr.msra.gmra.mrb[0].mxu1 %vm410_vm1, %v856_v4 }
 0x10f   : > { %1807 = vmatpush3.bf16.msra.mxu1 %v1804_v9  ;;  %1704 = vmatprep.mubr.msk.f32.mxu1 %vm410_vm1, %v946_v17  ;;  %v2162_v9 = vld [vmem:[%s2206_s5 + $0x3] ss:$0 sm:$0xff] }
 0x110   : > { %1809 = vmatprep.subr.bf16.mxu1 %v1808_v14  ;;  %1835 = vmatpush3.bf16.msra.mxu0 %v1832_v63 }
 0x113   : > { %1811 = vmatpush3.bf16.msra.mxu1 %v1808_v14 }
 0x114   : > { %1813 = vmatprep.subr.bf16.mxu1 %v1812_v18 }
 0x116   : > { %1705 = vmatmul.mubr.msk.f32.vlgmr.msra.gmra.mrb[0].mxu1 %vm410_vm1, %v945_v13 }
 0x117   : > { %1815 = vmatpush3.bf16.msra.mxu1 %v1812_v18  ;;  %1715 = vmatprep.mubr.msk.f32.mxu1 %vm410_vm1, %v1035_v27 }
 0x118   : > { %1817 = vmatprep.subr.bf16.mxu1 %v1816_v24 }
 0x11b   : > { %1819 = vmatpush3.bf16.msra.mxu1 %v1816_v24 }
 0x11c   : > { %1821 = vmatprep.subr.bf16.mxu1 %v1820_v28 }
 0x11e   : > { %1716 = vmatmul.mubr.msk.f32.vlgmr.msra.gmra.mrb[0].mxu1 %vm410_vm1, %v1034_v23  ;;  %v1339_v23 = vld [vmem:[%s293_s9] sm:$0xff] }
 0x11f   : > { %1823 = vmatpush3.bf16.msra.mxu1 %v1820_v28  ;;  %1726 = vmatprep.mubr.msk.f32.mxu1 %vm410_vm1, %v2033_v42 }
 0x120   : > { %1825 = vmatprep.subr.bf16.mxu1 %v1824_v31 }
 0x123   : > { %1827 = vmatpush3.bf16.msra.mxu1 %v1824_v31 }
 0x126   : > { %1727 = vmatmul.mubr.msk.f32.vlgmr.msra.gmra.mrb[0].mxu1 %vm410_vm1, %v1868_v32 }
 0x1dd   : > { %v1662_v33 = vpop.f32.mrb[2].mxu0 }
 0x1de   : > { %v661_v34 = vpop.f32.mrb[3].mxu0  ;;  %v1836_v36 = vadd.f32 %v1662_v33, %v1513_v35 }
 0x1df   : > { %v1838_v37 = vadd.f32 %v1513_v35, %v661_v34 }
 0x1f9   : > { %v1728_v38 = vpop.f32.mrb[0].mxu1 }
 0x1fa   : > { %v1837_v39 = vadd.f32 %v1836_v36, %v1728_v38  ;;  %v1190_v40 = vpop.f32.mrb[1].mxu1 }
 0x1fb   : > { %v1839_v41 = vadd.f32 %v1838_v37, %v1190_v40 }
 0x1fc   : > { %1869 = vtanh.f32 %v1837_v39 }
 0x1fd   : > { %1871 = vtanh.f32 %v1839_v41 }
 0x206   : > { %v1870_v43 = vpop.eup %1869 }
 0x207   : > { %v1872_v44 = vpop.eup %1871  ;;  %v1204_v47 = vadd.f32 %v1870_v43, %v1868_v32 }
 0x208   : > { %v1203_v45 = vadd.f32 %v1872_v44, %v2033_v42 }
 0x209   : > { %v1209_v48 = vsel %vm1208_vm9, %v1204_v47, 0.0 }
 0x20a   : > { %v1205_v46 = vsel %vm410_vm1, %v1203_v45, 0.0 }
 0x20b   : > { %1206 = vadd.xlane.f32.xlu0 %v1205_v46 }
 0x20f   : > { %1210 = vadd.xlane.f32.xlu0 %v1209_v48 }
 0x298   : > { %v1207_v49 = vpop.xlane.xlu0 %1206 }
 0x299   : > { %v1213_v50 = vmul.f32 0.03125, %v1207_v49 }
 0x29b   : > { %v1215_v51 = vsub.f32 %v1203_v45, %v1213_v50 }
 0x29c   : > { %v1211_v52 = vpop.xlane.xlu0 %1210 }
 0x29d   : > { %v1214_v53 = vmul.f32 0.03125, %v1211_v52  ;;  %v1217_v54 = vmul.f32 %v1215_v51, %v1215_v51 }
 0x29f   : > { %v1216_v55 = vsub.f32 %v1204_v47, %v1214_v53  ;;  %v1219_v56 = vsel %vm410_vm1, %v1217_v54, 0.0 }
 0x2a0   : > { %1220 = vadd.xlane.f32.xlu1 %v1219_v56 }
 0x2a1   : > { %v1218_v57 = vmul.f32 %v1216_v55, %v1216_v55 }
 0x2a3   : > { %v1222_v42 = vsel %vm1208_vm9, %v1218_v57, 0.0 }
 0x2a4   : > { %1223 = vadd.xlane.f32.xlu1 %v1222_v42 }
 0x32d   : > { %v1221_v0 = vpop.xlane.xlu1 %1220 }
 0x32e   : > { %v1225_v1 = vmul.f32 0.03125, %v1221_v0 }
 0x330   : > { %v1227_v2 = vadd.f32 1e-05, %v1225_v1 }
 0x331   : > { %v1224_v3 = vpop.xlane.xlu1 %1223 }
 0x332   : > { %1873 = vrsqrt.f32 %v1227_v2  ;;  %v1226_v4 = vmul.f32 0.03125, %v1224_v3 }
 0x334   : > { %v1228_v5 = vadd.f32 1e-05, %v1226_v4 }
 0x336   : > { %1875 = vrsqrt.f32 %v1228_v5 }
 0x33c   : > { %v1874_v6 = vpop.eup %1873 }
 0x33d   : > { %v1231_v8 = vmul.f32 %v1874_v6, %v1215_v51 }
 0x33f   : > { %v1237_v10 = vmul.f32 %v2157_v7, %v1231_v8 }
 0x340   : > { %v1876_v11 = vpop.eup %1875 }
 0x341   : > { %v1232_v12 = vmul.f32 %v1876_v11, %v1216_v55  ;;  %v1243_v13 = vadd.f32 %v2162_v9, %v1237_v10 }
 0x343   : > { %1737 = vmatprep.mubr.msk.f32.mxu0 %vm410_vm1, %v1243_v13  ;;  %v1238_v14 = vmul.f32 %v2157_v7, %v1232_v12 }
 0x345   : > { %v1244_v15 = vadd.f32 %v2162_v9, %v1238_v14 }
 0x347   : > { %1738 = vmatmul.mubr.msk.f32.vlgmr.msra.gmra.mrb[4].mxu0 %vm410_vm1, %v1244_v15 }
 0x41a   : > { %v1739_v17 = vpop.f32.mrb[4].mxu0 }
 0x41b   : > { %v1334_v18 = vadd.f32 %v1739_v17, %v1533_v16  ;;  %v1328_v19 = vpop.f32.mrb[5].mxu0 }
 0x41c   : > { %v1329_v20 = vadd.f32 %v1533_v16, %v1328_v19 }
 0x41d   : > { %1877 = vtanh.f32 %v1334_v18 }
 0x41e   : > { %1879 = vtanh.f32 %v1329_v20 }
 0x427   : > { %v1878_v24 = vpop.eup %1877 }
 0x428   : > { %v1880_v25 = vpop.eup %1879  ;;  %v1342_v26 = vadd.f32 %v1878_v24, %v1340_v22 }
 0x429   : > { %v1341_v27 = vadd.f32 %v1880_v25, %v1339_v23 }
 0x42a   : > { %1377 = vrot.lane.b32.xlu1 %v1342_v26, %s1898_s10  ;;  %v1346_v32 = vsel %vm1208_vm9, %v1342_v26, 0.0 }
 0x42b   : > { %1375 = vrot.lane.b32.xlu0 %v1341_v27, %s1898_s10  ;;  %v1343_v31 = vsel %vm410_vm1, %v1341_v27, 0.0 }
 0x49c   : > { %v1378_v21 = vpop.permute.xlu1 %1377 }
 0x49d   : > { %v1376_v28 = vpop.permute.xlu0 %1375  ;;  %v1384_v29 = vsel %vm1208_vm9, %v1378_v21, 0.0 }
 0x49e   : > { %1385 = vadd.xlane.f32.xlu0 %v1384_v29  ;;  %v1381_v30 = vsel %vm410_vm1, %v1376_v28, 0.0 }
 0x49f   : > { %1382 = vadd.xlane.f32.xlu1 %v1381_v30 }
 0x4a2   : > { %1344 = vadd.xlane.f32.xlu0 %v1343_v31 }
 0x4a3   : > { %1347 = vadd.xlane.f32.xlu1 %v1346_v32 }
 0x52b   : > { %v1386_v33 = vpop.xlane.xlu0 %1385 }
 0x52c   : > { %v1388_v34 = vmul.f32 0.03125, %v1386_v33  ;;  %v1383_v35 = vpop.xlane.xlu1 %1382 }
 0x52d   : > { %v1387_v36 = vmul.f32 0.03125, %v1383_v35 }
 0x52e   : > { %v1390_v37 = vsub.f32 %v1342_v26, %v1388_v34 }
 0x52f   : > { %v1389_v38 = vsub.f32 %v1341_v27, %v1387_v36  ;;  %v1345_v44 = vpop.xlane.xlu0 %1344 }
 0x530   : > { %v1392_v39 = vmul.f32 %v1390_v37, %v1390_v37  ;;  %v1348_v41 = vpop.xlane.xlu1 %1347  ;;  %v1349_v45 = vmul.f32 0.03125, %v1345_v44 }
 0x531   : > { %v1391_v40 = vmul.f32 %v1389_v38, %v1389_v38  ;;  %v1350_v43 = vmul.f32 0.03125, %v1348_v41 }
 0x532   : > { %1397 = vrot.lane.b32.xlu1 %v1392_v39, %s1898_s10  ;;  %v1351_v47 = vsub.f32 %v1341_v27, %v1349_v45 }
 0x533   : > { %1395 = vrot.lane.b32.xlu0 %v1391_v40, %s1898_s10  ;;  %v1352_v46 = vsub.f32 %v1342_v26, %v1350_v43 }
 0x534   : > { %v1353_v50 = vmul.f32 %v1351_v47, %v1351_v47 }
 0x535   : > { %v1354_v48 = vmul.f32 %v1352_v46, %v1352_v46 }
 0x536   : > { %v1355_v51 = vsel %vm410_vm1, %v1353_v50, 0.0 }
 0x537   : > { %v1358_v49 = vsel %vm1208_vm9, %v1354_v48, 0.0 }
 0x552   : > { %1359 = vadd.xlane.f32.xlu0 %v1358_v49 }
 0x556   : > { %1356 = vadd.xlane.f32.xlu1 %v1355_v51 }
 0x5a4   : > { %v1398_v52 = vpop.permute.xlu1 %1397 }
 0x5a5   : > { %v1396_v53 = vpop.permute.xlu0 %1395  ;;  %v1404_v54 = vsel %vm1208_vm9, %v1398_v52, 0.0 }
 0x5a6   : > { %1405 = vadd.xlane.f32.xlu1 %v1404_v54  ;;  %v1401_v55 = vsel %vm410_vm1, %v1396_v53, 0.0 }
 0x5a7   : > { %1402 = vadd.xlane.f32.xlu0 %v1401_v55 }
 0x5b7   : > { %1422 = vrot.lane.b32.xlu1 %v2162_v9, %s1899_s11 }
 0x5bd   : > { %1416 = vrot.lane.b32.xlu0 %v2157_v7, %s1899_s11 }
 0x5df   : > { %v1360_v56 = vpop.xlane.xlu0 %1359 }
 0x5e0   : > { %v1362_v42 = vmul.f32 0.03125, %v1360_v56 }
 0x5e2   : > { %v1364_v59 = vadd.f32 1e-05, %v1362_v42 }
 0x5e3   : > { %v1357_v57 = vpop.xlane.xlu1 %1356 }
 0x5e4   : > { %v1361_v58 = vmul.f32 0.03125, %v1357_v57  ;;  %1881 = vrsqrt.f32 %v1364_v59 }
 0x5e6   : > { %v1363_v60 = vadd.f32 1e-05, %v1361_v58 }
 0x5e8   : > { %1883 = vrsqrt.f32 %v1363_v60 }
 0x5ee   : > { %v1882_v3 = vpop.eup %1881 }
 0x5ef   : > { %v1368_v5 = vmul.f32 %v1882_v3, %v1352_v46 }
 0x5f1   : > { %v1370_v13 = vmul.f32 %v2157_v7, %v1368_v5 }
 0x5f2   : > { %v1884_v4 = vpop.eup %1883 }
 0x5f3   : > { %v1367_v6 = vmul.f32 %v1884_v4, %v1351_v47  ;;  %v1372_v19 = vadd.f32 %v2162_v9, %v1370_v13 }
 0x5f5   : > { %v1369_v15 = vmul.f32 %v2157_v7, %v1367_v6 }
 0x5f7   : > { %v1371_v22 = vadd.f32 %v2162_v9, %v1369_v15 }
 0x633   : > { %v1406_v61 = vpop.xlane.xlu1 %1405 }
 0x634   : > { %v1408_v62 = vmul.f32 0.03125, %v1406_v61  ;;  %v1403_v63 = vpop.xlane.xlu0 %1402 }
 0x635   : > { %v1407_v0 = vmul.f32 0.03125, %v1403_v63 }
 0x636   : > { %v1410_v1 = vadd.f32 1e-05, %v1408_v62 }
 0x637   : > { %v1409_v2 = vadd.f32 1e-05, %v1407_v0  ;;  %v1423_v16 = vpop.permute.xlu1 %1422 }
 0x638   : > { %1885 = vrsqrt.f32 %v1410_v1  ;;  %v1417_v10 = vpop.permute.xlu0 %1416 }
 0x639   : > { %1887 = vrsqrt.f32 %v1409_v2 }
 0x642   : > { %v1886_v8 = vpop.eup %1885 }
 0x643   : > { %v1888_v11 = vpop.eup %1887  ;;  %v1414_v12 = vmul.f32 %v1886_v8, %v1390_v37 }
 0x644   : > { %v1413_v14 = vmul.f32 %v1888_v11, %v1389_v38 }
 0x645   : > { %v1420_v17 = vmul.f32 %v1417_v10, %v1414_v12 }
 0x646   : > { %v1419_v18 = vmul.f32 %v1417_v10, %v1413_v14 }
 0x647   : > { %v1426_v20 = vadd.f32 %v1423_v16, %v1420_v17 }
 0x648   : > { %v1425_v23 = vadd.f32 %v1423_v16, %v1419_v18 }
 0x649   : > { %v1428_v24 = vsel %vm410_vm1, %v1372_v19, %v1426_v20 }
 0x64a   : > { %v1427_v25 = vsel %vm410_vm1, %v1371_v22, %v1425_v23  ;;  %1431 = vst.msk [vmem:[%s298_s14 + $0x8] sm:$0x1] %vm1430_vm10, %v1428_v24 }
 0x64b   : > { %1429 = vst.msk [vmem:[%s298_s14] sm:$0xff] %vm316_vm0, %v1427_v25 }
 0x64c PF: > { %s17_s24 = sadd.s32 1, %s1895_s24  }
 0x64d   : > { %p14_p4 = scmp.ge.s32.totalorder %s17_s24, 4  }
 0x64f   :  { %16 = sbr.rel (!%p14_p4) target bundleno = 1 (0x1), region = 81 }

// kernel: backbone_micn_forward.15
= control target key start
LH: loop header
LB: loop body
LE: loop exit
PB: predicated region body
PF: predicated region fallthrough
CT: control target
= control target key end

     0   :  { %s1103_s27 = smov 0   ;;  %s1279_s0 = inlined_call_operand.vmem [shape: f32[32,64], index: 0, kind: input, shape index: {}]   ;;  %s1280_s1 = inlined_call_operand.vmem [shape: f32[64,32], index: 1, kind: input, shape index: {}]   ;;  %s1281_s2 = inlined_call_operand.vmem [shape: f32[32,128], index: 2, kind: input, shape index: {}]   ;;  %s1282_s3 = inlined_call_operand.vmem [shape: f32[128,32], index: 3, kind: input, shape index: {}]   ;;  %s1283_s4 = inlined_call_operand.vmem [shape: f32[6,32], index: 4, kind: input, shape index: {}]   ;;  %s1284_s5 = inlined_call_operand.vmem [shape: f32[1,128], index: 5, kind: input, shape index: {}]   ;;  %s1285_s6 = inlined_call_operand.vmem [shape: f32[32,4], index: 6, kind: input, shape index: {}]   ;;  %s1286_s7 = inlined_call_operand.vmem [shape: f32[1,4], index: 7, kind: input, shape index: {}]   ;;  %s1287_s8 = inlined_call_operand.vmem [shape: f32[32,4], index: 8, kind: output, shape index: {}]  }
   0x1 LB: > { %s829_s28 = sadd.s32 4294967295, %s1056_s27   ;;  %p833_p0 = scmp.ge.s32.totalorder %s1056_s27, 1  ;;  %s1056_s27 = sphi %s1103_s27, %s18_s27  }
   0x2   : > { %p263_p1 = scmp.lt.s32.totalorder %s1056_s27, 3 }
   0x4   : > { %p264_p2 = pnand %p833_p0, %p263_p1 }
   0x5   : > { %v311_v0 = vld [vmem:[%s1280_s1] sm:$0xff] (!%p264_p2)  ;;  %v312_v1 = vld [vmem:[%s1280_s1 + $0x8] sm:$0xff] (!%p264_p2)  ;;  %v313_v2 = vld [vmem:[%s1280_s1 + $0x10] sm:$0xff] (!%p264_p2)  ;;  %s834_s13 = sshll.u32 (!%p264_p2), %s829_s28, 1  ;;  %vm324_vm0 = vcmask (!%p264_p2), 523264   ;;  %vm406_vm1 = vcmask (!%p264_p2), 261120  }
   0x6   : > { %267 = sbr.rel (%p264_p2) target bundleno = 1519 (0x5ef), region = 52  ;;  %v970_v3 = vpack.c.bf16 (!%p264_p2), %v312_v1, %v311_v0  ;;  %v314_v4 = vld [vmem:[%s1280_s1 + $0x18] sm:$0xff] (!%p264_p2)  ;;  %p298_p3 = scmp.lt.s32.totalorder (!%p264_p2), %s834_s13, 3  ;;  %v315_v6 = vld [vmem:[%s1280_s1 + $0x20] sm:$0xff] (!%p264_p2)  ;;  %v316_v7 = vld [vmem:[%s1280_s1 + $0x28] sm:$0xff] (!%p264_p2)  ;;  %vm770_vm2 = vcmask (!%p264_p2), 31744  }
   0x7   : > { %v974_v5 = vpack.c.bf16 (!%p264_p2), %v314_v4, %v313_v2  ;;  %v978_v8 = vpack.c.bf16 (!%p264_p2), %v316_v7, %v315_v6  ;;  %v317_v9 = vld [vmem:[%s1280_s1 + $0x30] sm:$0xff] (!%p264_p2)  ;;  %v318_v10 = vld [vmem:[%s1280_s1 + $0x38] sm:$0xff] (!%p264_p2)  ;;  %v838_v14 = vld [vmem:[%s1283_s4] ss:$0 sm:$0xff] (!%p264_p2) }
   0x8   : > { %971 = vmatprep.subr.bf16.mxu0 (!%p264_p2), %v970_v3  ;;  %v982_v12 = vpack.c.bf16 (!%p264_p2), %v318_v10, %v317_v9  ;;  %v448_v31 = vld [vmem:[%s1281_s2] sm:$0xff] (!%p264_p2)  ;;  %v449_v32 = vld [vmem:[%s1281_s2 + $0x8] sm:$0xff] (!%p264_p2)  ;;  %v450_v34 = vld [vmem:[%s1281_s2 + $0x10] sm:$0xff] (!%p264_p2) }
   0x9   : > { %973 = vmatpush3.bf16.msra.mxu0 (!%p264_p2), %v970_v3  ;;  %v986_v33 = vpack.c.bf16 (!%p264_p2), %v449_v32, %v448_v31  ;;  %v451_v35 = vld [vmem:[%s1281_s2 + $0x18] sm:$0xff] (!%p264_p2)  ;;  %v540_v37 = vld [vmem:[%s1282_s3] sm:$0xff] (!%p264_p2)  ;;  %v541_v38 = vld [vmem:[%s1282_s3 + $0x8] sm:$0xff] (!%p264_p2) }
   0xa   : > { %975 = vmatprep.subr.bf16.mxu0 (!%p264_p2), %v974_v5  ;;  %v990_v36 = vpack.c.bf16 (!%p264_p2), %v451_v35, %v450_v34  ;;  %v542_v39 = vld [vmem:[%s1282_s3 + $0x10] sm:$0xff] (!%p264_p2)  ;;  %v994_v40 = vpack.c.bf16 (!%p264_p2), %v541_v38, %v540_v37  ;;  %v543_v41 = vld [vmem:[%s1282_s3 + $0x18] sm:$0xff] (!%p264_p2)  ;;  %v544_v43 = vld [vmem:[%s1282_s3 + $0x20] sm:$0xff] (!%p264_p2) }
   0xb   : > { %v998_v42 = vpack.c.bf16 (!%p264_p2), %v543_v41, %v542_v39  ;;  %v545_v44 = vld [vmem:[%s1282_s3 + $0x28] sm:$0xff] (!%p264_p2)  ;;  %v546_v46 = vld [vmem:[%s1282_s3 + $0x30] sm:$0xff] (!%p264_p2)  ;;  %v547_v47 = vld [vmem:[%s1282_s3 + $0x38] sm:$0xff] (!%p264_p2) }
   0xc   : > { %995 = vmatprep.subr.bf16.mxu1 (!%p264_p2), %v994_v40  ;;  %v1002_v45 = vpack.c.bf16 (!%p264_p2), %v545_v44, %v544_v43  ;;  %v1006_v48 = vpack.c.bf16 (!%p264_p2), %v547_v47, %v546_v46  ;;  %v548_v49 = vld [vmem:[%s1282_s3 + $0x40] sm:$0xff] (!%p264_p2)  ;;  %v549_v50 = vld [vmem:[%s1282_s3 + $0x48] sm:$0xff] (!%p264_p2)  ;;  %v550_v52 = vld [vmem:[%s1282_s3 + $0x50] sm:$0xff] (!%p264_p2) }
   0xd   : > { %s1289_s13 = smov (!%p298_p3, %s834_s13), 3  ;;  %977 = vmatpush3.bf16.msra.mxu0 %v974_v5  ;;  %997 = vmatpush3.bf16.msra.mxu1 %v994_v40  ;;  %v1010_v51 = vpack.c.bf16 %v549_v50, %v548_v49  ;;  %v551_v53 = vld [vmem:[%s1282_s3 + $0x58] sm:$0xff]  ;;  %v552_v55 = vld [vmem:[%s1282_s3 + $0x60] sm:$0xff]  ;;  %v553_v56 = vld [vmem:[%s1282_s3 + $0x68] sm:$0xff] }
   0xe   : > { %s835_s20 = sshll.u32 %s1289_s13, 3  ;;  %979 = vmatprep.subr.bf16.mxu0 %v978_v8  ;;  %999 = vmatprep.subr.bf16.mxu1 %v998_v42  ;;  %v1014_v54 = vpack.c.bf16 %v551_v53, %v550_v52  ;;  %v1018_v57 = vpack.c.bf16 %v553_v56, %v552_v55  ;;  %v841_v1 = vld [vmem:[%s1283_s4 + $0x1] ss:$0 sm:$0xff]  ;;  %v842_v3 = vld [vmem:[%s1283_s4 + $0x2] ss:$0 sm:$0xff]  ;;  %v554_v10 = vld [vmem:[%s1282_s3 + $0x70] sm:$0xff] }
   0xf   : > { %s301_s28 = scalar_lea.vmem %s1279_s0, %s835_s20  ;;  %v679_v38 = vld [vmem:[%s1285_s6 + $0x8] sm:$0xff]  ;;  %v680_v40 = vld [vmem:[%s1285_s6 + $0x10] sm:$0xff]  ;;  %v681_v41 = vld [vmem:[%s1285_s6 + $0x18] sm:$0xff]  ;;  %s307_s17 = scalar_lea.vmem %s1287_s8, %s835_s20 }
  0x10   : > { %v309_v11 = vld [vmem:[%s301_s28] sm:$0xff]  ;;  %v310_v13 = vld [vmem:[%s301_s28 + $0x8] sm:$0xff] }
  0x11   : > { %910 = vmatprep.mubr.msk.f32.mxu0 %vm324_vm0, %v309_v11  ;;  %981 = vmatpush3.bf16.msra.mxu0 %v978_v8  ;;  %v555_v11 = vld [vmem:[%s1282_s3 + $0x78] sm:$0xff]  ;;  %v847_v50 = vld [vmem:[%s1283_s4 + $0x3] ss:$0 sm:$0xff]  ;;  %v848_v55 = vld [vmem:[%s1283_s4 + $0x4] ss:$0 sm:$0xff] }
  0x12   : > { %983 = vmatprep.subr.bf16.mxu0 %v982_v12  ;;  %1001 = vmatpush3.bf16.msra.mxu1 %v998_v42  ;;  %v1030_v42 = vpack.c.bf16 %v681_v41, %v680_v40 }
  0x13   : > { %1003 = vmatprep.subr.bf16.mxu1 %v1002_v45 }
  0x15   : > { %985 = vmatpush3.bf16.msra.mxu0 %v982_v12  ;;  %v1022_v12 = vpack.c.bf16 %v555_v11, %v554_v10 }
  0x16   : > { %987 = vmatprep.subr.bf16.mxu0 %v986_v33  ;;  %1005 = vmatpush3.bf16.msra.mxu1 %v1002_v45 }
  0x17   : > { %1007 = vmatprep.subr.bf16.mxu1 %v1006_v48 }
  0x18   : > { %911 = vmatmul.mubr.msk.f32.vlgmr.msra.gmra.mrb[0].mxu0 %vm324_vm0, %v310_v13  ;;  %v843_v13 = vld [vmem:[%s1284_s5] ss:$0 sm:$0xff] }
  0x19   : > { %989 = vmatpush3.bf16.msra.mxu0 %v986_v33 }
  0x1a   : > { %991 = vmatprep.subr.bf16.mxu0 %v990_v36  ;;  %1009 = vmatpush3.bf16.msra.mxu1 %v1006_v48 }
  0x1b   : > { %1011 = vmatprep.subr.bf16.mxu1 %v1010_v51 }
  0x1d   : > { %993 = vmatpush3.bf16.msra.mxu0 %v990_v36 }
  0x1e   : > { %1013 = vmatpush3.bf16.msra.mxu1 %v1010_v51 }
  0x1f   : > { %1015 = vmatprep.subr.bf16.mxu1 %v1014_v54 }
  0x22   : > { %1017 = vmatpush3.bf16.msra.mxu1 %v1014_v54 }
  0x23   : > { %1019 = vmatprep.subr.bf16.mxu1 %v1018_v57 }
  0x26   : > { %1021 = vmatpush3.bf16.msra.mxu1 %v1018_v57 }
  0x27   : > { %1023 = vmatprep.subr.bf16.mxu1 %v1022_v12 }
  0x2a   : > { %1025 = vmatpush3.bf16.msra.mxu1 %v1022_v12 }
  0xeb   : > { %v912_v15 = vpop.f32.mrb[0].mxu0 }
  0xec   : > { %v397_v16 = vpop.f32.mrb[1].mxu0  ;;  %v1148_v18 = vadd.f32 %v912_v15, %v838_v14 }
  0xed   : > { %v1146_v17 = vadd.f32 %v838_v14, %v397_v16 }
  0xee   : > { %v410_v20 = vsel %vm406_vm1, %v1148_v18, 0.0 }
  0xef   : > { %v407_v19 = vsel %vm406_vm1, %v1146_v17, 0.0 }
  0xf0   : > { %408 = vadd.xlane.f32.xlu0 %v407_v19 }
  0xf4   : > { %411 = vadd.xlane.f32.xlu0 %v410_v20  ;;  %v846_v20 = vld [vmem:[%s1283_s4 + $0x5] ss:$0 sm:$0xff] }
 0x17d   : > { %v409_v21 = vpop.xlane.xlu0 %408 }
 0x17e   : > { %v414_v22 = vmul.f32 0.03125, %v409_v21 }
 0x180   : > { %v1155_v23 = vsub.f32 %v1146_v17, %v414_v22 }
 0x181   : > { %v412_v24 = vpop.xlane.xlu0 %411 }
 0x182   : > { %v415_v25 = vmul.f32 0.03125, %v412_v24  ;;  %v418_v26 = vmul.f32 %v1155_v23, %v1155_v23 }
 0x184   : > { %v1160_v27 = vsub.f32 %v1148_v18, %v415_v25  ;;  %v420_v28 = vsel %vm406_vm1, %v418_v26, 0.0 }
 0x185   : > { %421 = vadd.xlane.f32.xlu1 %v420_v28 }
 0x186   : > { %v419_v29 = vmul.f32 %v1160_v27, %v1160_v27 }
 0x188   : > { %v423_v30 = vsel %vm406_vm1, %v419_v29, 0.0 }
 0x189   : > { %424 = vadd.xlane.f32.xlu1 %v423_v30 }
 0x212   : > { %v422_v58 = vpop.xlane.xlu1 %421 }
 0x213   : > { %v426_v59 = vmul.f32 0.03125, %v422_v58 }
 0x215   : > { %v428_v60 = vadd.f32 1e-05, %v426_v59  ;;  %v849_v59 = vld [vmem:[%s1286_s7] ss:$0 sm:$0xff] }
 0x216   : > { %v425_v61 = vpop.xlane.xlu1 %424 }
 0x217   : > { %1042 = vrsqrt.f32 %v428_v60  ;;  %v427_v62 = vmul.f32 0.03125, %v425_v61 }
 0x219   : > { %v429_v63 = vadd.f32 1e-05, %v427_v62 }
 0x21b   : > { %1044 = vrsqrt.f32 %v429_v63 }
 0x221   : > { %v1043_v0 = vpop.eup %1042 }
 0x222   : > { %v432_v2 = vmul.f32 %v1043_v0, %v1155_v23 }
 0x224   : > { %v439_v4 = vmul.f32 %v841_v1, %v432_v2 }
 0x225   : > { %v1045_v5 = vpop.eup %1044 }
 0x226   : > { %v433_v6 = vmul.f32 %v1045_v5, %v1160_v27  ;;  %v446_v7 = vadd.f32 %v842_v3, %v439_v4 }
 0x228   : > { %v440_v8 = vmul.f32 %v841_v1, %v433_v6  ;;  %921 = vmatprep.mubr.msk.f32.mxu0 %vm406_vm1, %v446_v7 }
 0x22a   : > { %v447_v9 = vadd.f32 %v842_v3, %v440_v8 }
 0x22c   : > { %922 = vmatmul.mubr.msk.f32.vlgmr.msra.gmra.mrb[2].mxu0 %vm406_vm1, %v447_v9 }
 0x2ff   : > { %v923_v14 = vpop.f32.mrb[2].mxu0 }
 0x300   : > { %v531_v15 = vpop.f32.mrb[3].mxu0  ;;  %v537_v19 = vadd.f32 %v923_v14, %v843_v13 }
 0x301   : > { %v532_v16 = vadd.f32 %v843_v13, %v531_v15 }
 0x303   : > { %956 = vmatprep.mubr.f32.mxu1 %v532_v16 }
 0x304   : > { %957 = vmatmul.mubr.f32.vlgmr.msra.gmra.mrb[0].mxu1 %v537_v19 }
 0x3d7   : > { %v958_v21 = vpop.f32.mrb[0].mxu1 }
 0x3d8   : > { %v633_v22 = vadd.f32 %v958_v21, %v846_v20  ;;  %v627_v23 = vpop.f32.mrb[1].mxu1 }
 0x3d9   : > { %v628_v24 = vadd.f32 %v846_v20, %v627_v23 }
 0x3da   : > { %v637_v25 = vadd.f32 %v633_v22, %v1148_v18 }
 0x3db   : > { %v636_v26 = vadd.f32 %v628_v24, %v1146_v17  ;;  %v678_v17 = vld [vmem:[%s1285_s6] sm:$0xff] }
 0x3dc   : > { %v641_v27 = vsel %vm406_vm1, %v637_v25, 0.0  ;;  %v1026_v39 = vpack.c.bf16 %v679_v38, %v678_v17 }
 0x3dd   : > { %642 = vadd.xlane.f32.xlu1 %v641_v27  ;;  %v638_v28 = vsel %vm406_vm1, %v636_v26, 0.0 }
 0x3de   : > { %639 = vadd.xlane.f32.xlu0 %v638_v28  ;;  %1027 = vmatprep.subr.bf16.mxu0 %v1026_v39 }
 0x3df   : > { %1029 = vmatpush3.bf16.msra.mxu0 %v1026_v39 }
 0x3e0   : > { %1031 = vmatprep.subr.bf16.mxu0 %v1030_v42 }
 0x3e3   : > { %1033 = vmatpush3.bf16.msra.mxu0 %v1030_v42 }
 0x46a   : > { %v643_v29 = vpop.xlane.xlu1 %642 }
 0x46b   : > { %v645_v30 = vmul.f32 0.03125, %v643_v29  ;;  %v640_v31 = vpop.xlane.xlu0 %639 }
 0x46c   : > { %v644_v32 = vmul.f32 0.03125, %v640_v31 }
 0x46d   : > { %v647_v33 = vsub.f32 %v637_v25, %v645_v30 }
 0x46e   : > { %v646_v34 = vsub.f32 %v636_v26, %v644_v32 }
 0x46f   : > { %v649_v35 = vmul.f32 %v647_v33, %v647_v33 }
 0x470   : > { %v648_v36 = vmul.f32 %v646_v34, %v646_v34 }
 0x471   : > { %v653_v37 = vsel %vm406_vm1, %v649_v35, 0.0 }
 0x472   : > { %654 = vadd.xlane.f32.xlu1 %v653_v37  ;;  %v650_v18 = vsel %vm406_vm1, %v648_v36, 0.0 }
 0x473   : > { %651 = vadd.xlane.f32.xlu0 %v650_v18 }
 0x4ff   : > { %v655_v43 = vpop.xlane.xlu1 %654 }
 0x500   : > { %v657_v44 = vmul.f32 0.03125, %v655_v43  ;;  %v652_v45 = vpop.xlane.xlu0 %651 }
 0x501   : > { %v656_v46 = vmul.f32 0.03125, %v652_v45 }
 0x502   : > { %v659_v47 = vadd.f32 1e-05, %v657_v44 }
 0x503   : > { %v658_v48 = vadd.f32 1e-05, %v656_v46 }
 0x504   : > { %1046 = vrsqrt.f32 %v659_v47 }
 0x505   : > { %1048 = vrsqrt.f32 %v658_v48 }
 0x50e   : > { %v1047_v49 = vpop.eup %1046 }
 0x50f   : > { %v1049_v51 = vpop.eup %1048  ;;  %v663_v52 = vmul.f32 %v1047_v49, %v647_v33 }
 0x510   : > { %v662_v53 = vmul.f32 %v1049_v51, %v646_v34 }
 0x511   : > { %v670_v54 = vmul.f32 %v847_v50, %v663_v52 }
 0x512   : > { %v669_v56 = vmul.f32 %v847_v50, %v662_v53 }
 0x513   : > { %v677_v58 = vadd.f32 %v848_v55, %v670_v54 }
 0x514   : > { %v676_v57 = vadd.f32 %v848_v55, %v669_v56 }
 0x516   : > { %967 = vmatprep.mubr.msk.f32.mxu0 %vm406_vm1, %v676_v57 }
 0x517   : > { %968 = vmatmul.mubr.msk.f32.vlgmr.msra.gmra.mrb[4].mxu0 %vm406_vm1, %v677_v58 }
 0x5ea   : > { %v969_v60 = vpop.f32.mrb[4].mxu0 }
 0x5eb   : > { %v761_v61 = vpop.f32.mrb[5].mxu0  ;;  %v767_v63 = vadd.f32 %v969_v60, %v849_v59 }
 0x5ec   : > { %v762_v62 = vadd.f32 %v849_v59, %v761_v61 }
 0x5ed   : > { %772 = vst.msk [vmem:[%s307_s17 + $0x8] sm:$0xff] %vm770_vm2, %v767_v63 }
 0x5ee   : > { %771 = vst.msk [vmem:[%s307_s17] sm:$0xff] %vm770_vm2, %v762_v62 }
 0x5ef PF: > { %s18_s27 = sadd.s32 1, %s1056_s27  }
 0x5f0   : > { %p15_p4 = scmp.ge.s32.totalorder %s18_s27, 4  }
 0x5f2   :  { %17 = sbr.rel (!%p15_p4) target bundleno = 1 (0x1), region = 82 }

</bundles_post_ra>
